<compile_context>
chip_gen: v6e
topology: v6e:2x2x1
jax: 0.10.0
libtpu: 0.0.40
codegen_flags: <defaults>
</compile_context>

<pallas_src>
import functools
import math

import jax
import jax.numpy as jnp
from jax.experimental import pallas as pl
from jax.experimental.pallas import tpu as pltpu

IN_CH = 4
HIDDEN = (8, 16)
POOL_RATIO = 0.5

_BN_EPS = 1e-5
_OUT_DIM = 750 * 5                                   # 3750
_OUT_DIM_PAD = ((_OUT_DIM + 127) // 128) * 128       # 3840, lane-dense
_EMB_PAD = 128                                       # packed [dec2 | dec1] row
_NEG = -1e30                                         # "masked out" score

_VMEM = pl.BlockSpec(memory_space=pltpu.MemorySpace.VMEM)
_ANY = pl.BlockSpec(memory_space=pl.ANY)


# ------------------------------ kernel helpers ------------------------------- #

def _bn_stats(x, eps):
    # BatchNorm1d in training mode: batch statistics, biased variance, no affine.
    mean = jnp.mean(x, axis=0, keepdims=True)
    var = jnp.mean((x - mean) ** 2, axis=0, keepdims=True)
    return (x - mean) * jax.lax.rsqrt(var + eps)


def _encode(x, adj, mlp_w, mlp_b, conv_w, conv_c, norm_g, norm_b, eps, slw):
    # One EncoderLayer body (post-pooling):
    #   Lin+ReLU -> BN -> GCNConv(add_self_loops, improved=+2I, sym-norm) -> BN -> ReLU
    # mlp_norm's affine is pre-folded into conv_w / conv_c; the GCN bias is a
    # mathematical no-op before the following batch-stats BatchNorm (dropped).
    f32 = jnp.float32
    h = jnp.maximum(jnp.dot(x, mlp_w, preferred_element_type=f32) + mlp_b, 0.0)
    h = _bn_stats(h, eps)

    m = adj.shape[0]
    eye = (jax.lax.broadcasted_iota(jnp.int32, (m, m), 0)
           == jax.lax.broadcasted_iota(jnp.int32, (m, m), 1)).astype(f32)
    adj_sl = adj + slw * eye                              # improved=True -> +2I
    deg = jnp.sum(adj_sl, axis=1, keepdims=True)          # in-degree (PyG col)
    dinv = jnp.where(deg > 0.0, jax.lax.rsqrt(deg), 0.0)
    xw = jnp.dot(h, conv_w, preferred_element_type=f32) + conv_c
    y = dinv * jnp.dot(adj_sl, dinv * xw, preferred_element_type=f32)

    y = _bn_stats(y, eps) * norm_g + norm_b
    return jnp.maximum(y, 0.0)


# ------------------------------ fused U-Net kernel ---------------------------- #

def _unet_kernel(edge_dst_ref, edge_src_ref, x_ref,
                 e0_mlp_w, e0_mlp_b, e0_conv_w, e0_conv_c, e0_ng, e0_nb,
                 pool_wn_ref,
                 e1_mlp_w, e1_mlp_b, e1_conv_w, e1_conv_c, e1_ng, e1_nb,
                 w2_ref, b2_ref, w1_ref, b1_ref, w0_hbm, b0_ref,
                 x0_ref, x1_ref, emb_ref, out_ref,
                 w0_vmem, w0_sem,
                 *, k, eps, slw):
    f32 = jnp.float32
    n = x_ref.shape[0]
    e = edge_dst_ref.shape[1]

    # (1) Prefetch the only big weight (decoder0, bf16 ~0.47 MiB) behind all of
    #     the encoder compute; wait only right before the final wide matmul.
    w0_copy = pltpu.make_async_copy(w0_hbm, w0_vmem, w0_sem)
    w0_copy.start()

    # (2) Dense adjacency adj[dst, src] from edge_index via one MXU matmul
    #     (replaces the XLA scatter-add; duplicates accumulate like .add).
    oh_dst = (jax.lax.broadcasted_iota(jnp.int32, (n, e), 0)
              == edge_dst_ref[...]).astype(f32)                     # (n, e)
    oh_src = (jax.lax.broadcasted_iota(jnp.int32, (e, n), 1)
              == edge_src_ref[...]).astype(f32)                     # (e, n)
    adj0 = jnp.dot(oh_dst, oh_src, preferred_element_type=f32)      # (n, n)

    # (3) encoder0 (pool_ratio = 1: no pooling)
    y0 = _encode(x_ref[...], adj0, e0_mlp_w[...], e0_mlp_b[...],
                 e0_conv_w[...], e0_conv_c[...], e0_ng[...], e0_nb[...],
                 eps, slw)
    x0_ref[...] = y0

    # (4) TopKPooling(ratio=0.5) fully in-kernel.
    #     score = tanh((x . w) / ||w||)  (w pre-normalized in the wrapper);
    #     k unrolled masked-argmax steps (descending score, smallest index on
    #     ties) build one-hot selection matrices sel (k,n) / sel_t (n,k).
    s_col = jnp.tanh(jnp.sum(y0 * pool_wn_ref[...], axis=1, keepdims=True))  # (n,1)
    sub_if = jax.lax.broadcasted_iota(jnp.int32, (n, 1), 0).astype(f32)
    lane_if = jax.lax.broadcasted_iota(jnp.int32, (1, n), 1).astype(f32)
    rowk_if = jax.lax.broadcasted_iota(jnp.int32, (k, 1), 0).astype(f32)
    colk_if = jax.lax.broadcasted_iota(jnp.int32, (1, k), 1).astype(f32)
    sel = jnp.zeros((k, n), f32)       # sel[i, p] = 1 iff perm[i] == p
    sel_t = jnp.zeros((n, k), f32)
    psc = jnp.zeros((k, 1), f32)       # tanh-scores of the selected nodes
    masked = s_col
    for i in range(k):                 # k small & static -> fully unrolled
        mx = jnp.max(masked, axis=0, keepdims=True)                      # (1,1)
        first = jnp.min(jnp.where(masked >= mx, sub_if, float(n)),
                        axis=0, keepdims=True)                           # (1,1)
        oh_c = (sub_if == first).astype(f32)                             # (n,1)
        oh_r = (lane_if == first).astype(f32)                            # (1,n)
        hit = (rowk_if == float(i)).astype(f32)                          # (k,1)
        sel = sel + hit * oh_r
        sel_t = sel_t + oh_c * (colk_if == float(i)).astype(f32)
        psc = psc + hit * mx
        masked = jnp.where(oh_c > 0.5, _NEG, masked)

    x1_in = jnp.dot(sel, y0, preferred_element_type=f32) * psc          # gather * score
    adj1 = jnp.dot(jnp.dot(sel, adj0, preferred_element_type=f32), sel_t,
                   preferred_element_type=f32)                          # (k, k)

    # (5) encoder1
    y1 = _encode(x1_in, adj1, e1_mlp_w[...], e1_mlp_b[...],
                 e1_conv_w[...], e1_conv_c[...], e1_ng[...], e1_nb[...],
                 eps, slw)
    x1_ref[...] = y1

    # (6) decoder head: global_mean_pool -> Lin+ReLU -> Lin+ReLU -> Lin (padded)
    xm = jnp.mean(y1, axis=0, keepdims=True)
    h2 = jnp.maximum(jnp.dot(xm, w2_ref[...], preferred_element_type=f32)
                     + b2_ref[...], 0.0)
    h1 = jnp.maximum(jnp.dot(h2, w1_ref[...], preferred_element_type=f32)
                     + b1_ref[...], 0.0)
    # decoder2/decoder1 embeddings packed into one lane-dense (1, 128) output.
    d2w = h2.shape[1]
    d1w = h1.shape[1]
    emb_ref[...] = jnp.zeros(emb_ref.shape, f32)
    emb_ref[:, 0:d2w] = h2
    emb_ref[:, d2w:d2w + d1w] = h1

    # (7) final wide matmul with the prefetched bf16 weight
    w0_copy.wait()
    out = jnp.dot(h1.astype(jnp.bfloat16), w0_vmem[...],
                  preferred_element_type=f32) + b0_ref[...]
    out_ref[...] = out


# ------------------------------- parameters ----------------------------------- #

def init_linear(key, fan_in, fan_out, scale=0.1):
    kw, kb = jax.random.split(key)
    w = scale * jax.random.normal(kw, (fan_in, fan_out), jnp.float32)
    b = scale * jax.random.normal(kb, (1, fan_out), jnp.float32)
    return w, b


def init_raw_params(key):
    # Mirrors the torch module's parameters.
    channels = (IN_CH,) + tuple(HIDDEN)
    n_enc = len(channels) - 1
    keys = jax.random.split(key, 3 * n_enc + 3)
    raw = {}
    for i in range(n_enc):
        cin, cout = channels[i], channels[i + 1]
        k_pool, k_mlp, k_conv = keys[3 * i], keys[3 * i + 1], keys[3 * i + 2]
        p = {}
        if i > 0:  # encoder0 has pool_ratio == 1 -> no TopKPooling
            p["pool_w"] = jax.random.normal(k_pool, (1, cin), jnp.float32)
        p["mlp_w"], p["mlp_b"] = init_linear(k_mlp, cin, cout)
        p["mlp_norm_g"] = jnp.ones((1, cout), jnp.float32)
        p["mlp_norm_b"] = jnp.zeros((1, cout), jnp.float32)
        p["conv_w"], p["conv_b"] = init_linear(k_conv, cout, cout)
        p["norm_g"] = jnp.ones((1, cout), jnp.float32)
        p["norm_b"] = jnp.zeros((1, cout), jnp.float32)
        raw[f"encoder{i}"] = p
    h = channels[-1]
    raw["decoder2"] = init_linear(keys[3 * n_enc + 0], h, 2 * h)
    raw["decoder1"] = init_linear(keys[3 * n_enc + 1], 2 * h, 4 * h)
    raw["decoder0"] = init_linear(keys[3 * n_enc + 2], 4 * h, _OUT_DIM)
    return raw


def prepare_params(raw):
    # One-time (outside jit) kernel-ready parameter prep: fold the mlp_norm
    # affine into the GCN weight, drop the GCN bias (cancels in the following
    # batch-stats BatchNorm), pre-normalize the TopK weight, lane-pad + bf16
    # the decoder0 weight.
    prep = {}
    for i in range(2):
        p = raw[f"encoder{i}"]
        g, b = p["mlp_norm_g"], p["mlp_norm_b"]
        conv_w = g.reshape(-1, 1) * p["conv_w"]          # gamma fold
        conv_c = b @ p["conv_w"]                         # beta fold (constant row)
        # p["conv_b"] intentionally unused: constant bias before batch-stats BN.
        prep[f"e{i}"] = dict(mlp_w=p["mlp_w"], mlp_b=p["mlp_b"],
                             conv_w=conv_w, conv_c=conv_c,
                             norm_g=p["norm_g"], norm_b=p["norm_b"])
    pw = raw["encoder1"]["pool_w"]                        # (1, 8)
    prep["pool_wn"] = pw * jax.lax.rsqrt(jnp.sum(pw * pw))
    prep["w2"], prep["b2"] = raw["decoder2"]
    prep["w1"], prep["b1"] = raw["decoder1"]
    w0, b0 = raw["decoder0"]                              # (64, 3750), (1, 3750)
    w0p = jnp.zeros((w0.shape[0], _OUT_DIM_PAD), jnp.float32).at[:, :_OUT_DIM].set(w0)
    b0p = jnp.zeros((1, _OUT_DIM_PAD), jnp.float32).at[:, :_OUT_DIM].set(b0)
    prep["w0"] = w0p.astype(jnp.bfloat16)   # halves the only big HBM transfer
    prep["b0"] = b0p
    return prep


# --------------------------------- forward ------------------------------------ #

@jax.jit
def one_d_unet_forward(prep, x, edge_index):
    n = x.shape[0]
    e = edge_index.shape[1]
    k = int(math.ceil(POOL_RATIO * n))
    # Tiny reshapes only; adjacency build, top-k and all math happen in-kernel.
    edge_dst = edge_index[1].reshape(1, e).astype(jnp.int32)
    edge_src = edge_index[0].reshape(e, 1).astype(jnp.int32)

    e0, e1 = prep["e0"], prep["e1"]
    c0 = e0["mlp_w"].shape[1]
    c1 = e1["mlp_w"].shape[1]
    d2w = prep["w2"].shape[1]
    d1w = prep["w1"].shape[1]

    kernel = functools.partial(_unet_kernel, k=k, eps=_BN_EPS, slw=2.0)
    x0, x1, emb, out_pad = pl.pallas_call(
        kernel,
        out_shape=(
            jax.ShapeDtypeStruct((n, c0), jnp.float32),        # encoder0 embedding
            jax.ShapeDtypeStruct((k, c1), jnp.float32),        # encoder1 embedding
            jax.ShapeDtypeStruct((1, _EMB_PAD), jnp.float32),  # packed [dec2|dec1]
            jax.ShapeDtypeStruct((1, _OUT_DIM_PAD), jnp.float32),
        ),
        in_specs=[_VMEM] * 20 + [_ANY, _VMEM],   # w0 stays in HBM (manual DMA)
        out_specs=(_VMEM, _VMEM, _VMEM, _VMEM),
        scratch_shapes=[
            pltpu.VMEM(prep["w0"].shape, jnp.bfloat16),        # w0 landing buffer
            pltpu.SemaphoreType.DMA,                           # its DMA semaphore
        ],
    )(edge_dst, edge_src, x,
      e0["mlp_w"], e0["mlp_b"], e0["conv_w"], e0["conv_c"],
      e0["norm_g"], e0["norm_b"],
      prep["pool_wn"],
      e1["mlp_w"], e1["mlp_b"], e1["conv_w"], e1["conv_c"],
      e1["norm_g"], e1["norm_b"],
      prep["w2"], prep["b2"], prep["w1"], prep["b1"],
      prep["w0"], prep["b0"])

    out = out_pad[:, :_OUT_DIM]
    embeddings = {
        "encoder0": x0,
        "encoder1": x1,
        "decoder2": emb[:, 0:d2w],
        "decoder1": emb[:, d2w:d2w + d1w],
        "decoder0": out,
    }
    return out.reshape(1, -1, 5), embeddings


# ----------------------------------- main -------------------------------------- #

if __name__ == "__main__":
    key = jax.random.PRNGKey(0)
    kx, kp = jax.random.split(key)

    N = 16
    x = jax.random.normal(kx, (N, IN_CH), jnp.float32)
    # bidirectional ring graph with 2N directed edges
    src = jnp.arange(N, dtype=jnp.int32)
    dst = (src + 1) % N
    edge_index = jnp.stack(
        [jnp.concatenate([src, dst]), jnp.concatenate([dst, src])], axis=0
    )  # (2, 32)

    raw = init_raw_params(kp)
    prep = prepare_params(raw)

    out, embeddings = one_d_unet_forward(prep, x, edge_index)
    out = jax.block_until_ready(out)
    assert out.shape == (1, 750, 5), out.shape
    assert bool(jnp.isfinite(out).all())
    assert embeddings["encoder0"].shape == (N, HIDDEN[0])
    assert embeddings["encoder1"].shape == (N // 2, HIDDEN[1])
    assert embeddings["decoder0"].shape == (1, _OUT_DIM)
    print("KERNEL_OK")
</pallas_src>

<mosaic_0001>
module attributes {stable_mosaic.version = 11 : i64} {
  func.func @_unet_kernel(%arg0: memref<1x32xi32, #tpu.memory_space<vmem>>, %arg1: memref<32x1xi32, #tpu.memory_space<vmem>>, %arg2: memref<16x4xf32, #tpu.memory_space<vmem>>, %arg3: memref<4x8xf32, #tpu.memory_space<vmem>>, %arg4: memref<1x8xf32, #tpu.memory_space<vmem>>, %arg5: memref<8x8xf32, #tpu.memory_space<vmem>>, %arg6: memref<1x8xf32, #tpu.memory_space<vmem>>, %arg7: memref<1x8xf32, #tpu.memory_space<vmem>>, %arg8: memref<1x8xf32, #tpu.memory_space<vmem>>, %arg9: memref<1x8xf32, #tpu.memory_space<vmem>>, %arg10: memref<8x16xf32, #tpu.memory_space<vmem>>, %arg11: memref<1x16xf32, #tpu.memory_space<vmem>>, %arg12: memref<16x16xf32, #tpu.memory_space<vmem>>, %arg13: memref<1x16xf32, #tpu.memory_space<vmem>>, %arg14: memref<1x16xf32, #tpu.memory_space<vmem>>, %arg15: memref<1x16xf32, #tpu.memory_space<vmem>>, %arg16: memref<16x32xf32, #tpu.memory_space<vmem>>, %arg17: memref<1x32xf32, #tpu.memory_space<vmem>>, %arg18: memref<32x64xf32, #tpu.memory_space<vmem>>, %arg19: memref<1x64xf32, #tpu.memory_space<vmem>>, %arg20: memref<64x3840xbf16, #tpu.memory_space<any>>, %arg21: memref<1x3840xf32, #tpu.memory_space<vmem>>, %arg22: memref<16x8xf32, #tpu.memory_space<vmem>>, %arg23: memref<8x16xf32, #tpu.memory_space<vmem>>, %arg24: memref<1x128xf32, #tpu.memory_space<vmem>>, %arg25: memref<1x3840xf32, #tpu.memory_space<vmem>>, %arg26: memref<64x3840xbf16, #tpu.memory_space<vmem>>, %arg27: memref<!tpu.dma_semaphore, #tpu.memory_space<semaphore_mem>>) attributes {dimension_semantics = [], scalar_prefetch = 0 : i64, scratch_operands = 2 : i64, tpu.core_type = #tpu.core_type<tc>} {
    tpu.enqueue_dma source(%arg20 : memref<64x3840xbf16, #tpu.memory_space<any>>) target(%arg26 : memref<64x3840xbf16, #tpu.memory_space<vmem>>) target_semaphore(%arg27 : memref<!tpu.dma_semaphore, #tpu.memory_space<semaphore_mem>>)
    %0 = tpu.iota {dimensions = array<i32: 0>} : vector<16x32xi32>
    %c0 = arith.constant 0 : index
    %c0_0 = arith.constant 0 : index
    %1 = vector.load %arg0[%c0, %c0_0] : memref<1x32xi32, #tpu.memory_space<vmem>>, vector<1x32xi32>
    %2 = vector.broadcast %1 : vector<1x32xi32> to vector<16x32xi32>
    %3 = arith.cmpi eq, %0, %2 : vector<16x32xi32>
    %4 = arith.extui %3 : vector<16x32xi1> to vector<16x32xi32>
    %5 = arith.sitofp %4 : vector<16x32xi32> to vector<16x32xf32>
    %6 = tpu.iota {dimensions = array<i32: 1>} : vector<32x16xi32>
    %c0_1 = arith.constant 0 : index
    %c0_2 = arith.constant 0 : index
    %7 = vector.load %arg1[%c0_1, %c0_2] : memref<32x1xi32, #tpu.memory_space<vmem>>, vector<32x1xi32>
    %8 = vector.broadcast %7 : vector<32x1xi32> to vector<32x16xi32>
    %9 = arith.cmpi eq, %6, %8 : vector<32x16xi32>
    %10 = arith.extui %9 : vector<32x16xi1> to vector<32x16xi32>
    %11 = arith.sitofp %10 : vector<32x16xi32> to vector<32x16xf32>
    %cst = arith.constant dense<0.000000e+00> : vector<16x16xf32>
    %12 = tpu.matmul %5, %11, %cst {dimension_numbers = #tpu.dot_dimension_numbers<[1], [0], [0], [1], [0, 0, 1, 1], [], []>} : vector<16x32xf32>, vector<32x16xf32>, vector<16x16xf32> -> vector<16x16xf32>
    %c0_3 = arith.constant 0 : index
    %c0_4 = arith.constant 0 : index
    %13 = vector.load %arg2[%c0_3, %c0_4] : memref<16x4xf32, #tpu.memory_space<vmem>>, vector<16x4xf32>
    %c0_5 = arith.constant 0 : index
    %c0_6 = arith.constant 0 : index
    %14 = vector.load %arg3[%c0_5, %c0_6] : memref<4x8xf32, #tpu.memory_space<vmem>>, vector<4x8xf32>
    %c0_7 = arith.constant 0 : index
    %c0_8 = arith.constant 0 : index
    %15 = vector.load %arg4[%c0_7, %c0_8] : memref<1x8xf32, #tpu.memory_space<vmem>>, vector<1x8xf32>
    %c0_9 = arith.constant 0 : index
    %c0_10 = arith.constant 0 : index
    %16 = vector.load %arg5[%c0_9, %c0_10] : memref<8x8xf32, #tpu.memory_space<vmem>>, vector<8x8xf32>
    %c0_11 = arith.constant 0 : index
    %c0_12 = arith.constant 0 : index
    %17 = vector.load %arg6[%c0_11, %c0_12] : memref<1x8xf32, #tpu.memory_space<vmem>>, vector<1x8xf32>
    %c0_13 = arith.constant 0 : index
    %c0_14 = arith.constant 0 : index
    %18 = vector.load %arg7[%c0_13, %c0_14] : memref<1x8xf32, #tpu.memory_space<vmem>>, vector<1x8xf32>
    %c0_15 = arith.constant 0 : index
    %c0_16 = arith.constant 0 : index
    %19 = vector.load %arg8[%c0_15, %c0_16] : memref<1x8xf32, #tpu.memory_space<vmem>>, vector<1x8xf32>
    %cst_17 = arith.constant dense<0.000000e+00> : vector<16x8xf32>
    %20 = tpu.matmul %13, %14, %cst_17 {dimension_numbers = #tpu.dot_dimension_numbers<[1], [0], [0], [1], [0, 0, 1, 1], [], []>} : vector<16x4xf32>, vector<4x8xf32>, vector<16x8xf32> -> vector<16x8xf32>
    %21 = vector.broadcast %15 : vector<1x8xf32> to vector<16x8xf32>
    %22 = arith.addf %20, %21 : vector<16x8xf32>
    %cst_18 = arith.constant 0.000000e+00 : f32
    %23 = vector.broadcast %cst_18 : f32 to vector<16x8xf32>
    %24 = arith.maximumf %22, %23 : vector<16x8xf32>
    %cst_19 = arith.constant dense<0.000000e+00> : vector<8xf32>
    %25 = vector.multi_reduction <add>, %24, %cst_19 [0] : vector<16x8xf32> to vector<8xf32>
    %26 = vector.shape_cast %25 : vector<8xf32> to vector<1x8xf32>
    %cst_20 = arith.constant 1.600000e+01 : f32
    %27 = vector.broadcast %cst_20 : f32 to vector<1x8xf32>
    %28 = arith.divf %26, %27 : vector<1x8xf32>
    %29 = vector.broadcast %28 : vector<1x8xf32> to vector<16x8xf32>
    %30 = arith.subf %24, %29 : vector<16x8xf32>
    %31 = arith.mulf %30, %30 : vector<16x8xf32>
    %cst_21 = arith.constant dense<0.000000e+00> : vector<8xf32>
    %32 = vector.multi_reduction <add>, %31, %cst_21 [0] : vector<16x8xf32> to vector<8xf32>
    %33 = vector.shape_cast %32 : vector<8xf32> to vector<1x8xf32>
    %cst_22 = arith.constant 1.600000e+01 : f32
    %34 = vector.broadcast %cst_22 : f32 to vector<1x8xf32>
    %35 = arith.divf %33, %34 : vector<1x8xf32>
    %36 = vector.broadcast %28 : vector<1x8xf32> to vector<16x8xf32>
    %37 = arith.subf %24, %36 : vector<16x8xf32>
    %cst_23 = arith.constant 9.99999974E-6 : f32
    %38 = vector.broadcast %cst_23 : f32 to vector<1x8xf32>
    %39 = arith.addf %35, %38 : vector<1x8xf32>
    %40 = math.rsqrt %39 : vector<1x8xf32>
    %41 = vector.broadcast %40 : vector<1x8xf32> to vector<16x8xf32>
    %42 = arith.mulf %37, %41 : vector<16x8xf32>
    %43 = tpu.iota {dimensions = array<i32: 0>} : vector<16x16xi32>
    %44 = tpu.iota {dimensions = array<i32: 1>} : vector<16x16xi32>
    %45 = arith.cmpi eq, %43, %44 : vector<16x16xi32>
    %46 = arith.extui %45 : vector<16x16xi1> to vector<16x16xi32>
    %47 = arith.sitofp %46 : vector<16x16xi32> to vector<16x16xf32>
    %cst_24 = arith.constant 2.000000e+00 : f32
    %48 = vector.broadcast %cst_24 : f32 to vector<16x16xf32>
    %49 = arith.mulf %48, %47 : vector<16x16xf32>
    %50 = arith.addf %12, %49 : vector<16x16xf32>
    %cst_25 = arith.constant dense<0.000000e+00> : vector<16xf32>
    %51 = vector.multi_reduction <add>, %50, %cst_25 [1] : vector<16x16xf32> to vector<16xf32>
    %52 = vector.shape_cast %51 : vector<16xf32> to vector<16x1xf32>
    %cst_26 = arith.constant 0.000000e+00 : f32
    %53 = vector.broadcast %cst_26 : f32 to vector<16x1xf32>
    %54 = arith.cmpf ogt, %52, %53 : vector<16x1xf32>
    %55 = math.rsqrt %52 : vector<16x1xf32>
    %cst_27 = arith.constant 0.000000e+00 : f32
    %56 = vector.broadcast %cst_27 : f32 to vector<16x1xf32>
    %57 = arith.select %54, %55, %56 : vector<16x1xi1>, vector<16x1xf32>
    %cst_28 = arith.constant dense<0.000000e+00> : vector<16x8xf32>
    %58 = tpu.matmul %42, %16, %cst_28 {dimension_numbers = #tpu.dot_dimension_numbers<[1], [0], [0], [1], [0, 0, 1, 1], [], []>} : vector<16x8xf32>, vector<8x8xf32>, vector<16x8xf32> -> vector<16x8xf32>
    %59 = vector.broadcast %17 : vector<1x8xf32> to vector<16x8xf32>
    %60 = arith.addf %58, %59 : vector<16x8xf32>
    %61 = vector.broadcast %57 : vector<16x1xf32> to vector<16x8xf32>
    %62 = arith.mulf %61, %60 : vector<16x8xf32>
    %cst_29 = arith.constant dense<0.000000e+00> : vector<16x8xf32>
    %63 = tpu.matmul %50, %62, %cst_29 {dimension_numbers = #tpu.dot_dimension_numbers<[1], [0], [0], [1], [0, 0, 1, 1], [], []>} : vector<16x16xf32>, vector<16x8xf32>, vector<16x8xf32> -> vector<16x8xf32>
    %64 = vector.broadcast %57 : vector<16x1xf32> to vector<16x8xf32>
    %65 = arith.mulf %64, %63 : vector<16x8xf32>
    %cst_30 = arith.constant dense<0.000000e+00> : vector<8xf32>
    %66 = vector.multi_reduction <add>, %65, %cst_30 [0] : vector<16x8xf32> to vector<8xf32>
    %67 = vector.shape_cast %66 : vector<8xf32> to vector<1x8xf32>
    %cst_31 = arith.constant 1.600000e+01 : f32
    %68 = vector.broadcast %cst_31 : f32 to vector<1x8xf32>
    %69 = arith.divf %67, %68 : vector<1x8xf32>
    %70 = vector.broadcast %69 : vector<1x8xf32> to vector<16x8xf32>
    %71 = arith.subf %65, %70 : vector<16x8xf32>
    %72 = arith.mulf %71, %71 : vector<16x8xf32>
    %cst_32 = arith.constant dense<0.000000e+00> : vector<8xf32>
    %73 = vector.multi_reduction <add>, %72, %cst_32 [0] : vector<16x8xf32> to vector<8xf32>
    %74 = vector.shape_cast %73 : vector<8xf32> to vector<1x8xf32>
    %cst_33 = arith.constant 1.600000e+01 : f32
    %75 = vector.broadcast %cst_33 : f32 to vector<1x8xf32>
    %76 = arith.divf %74, %75 : vector<1x8xf32>
    %77 = vector.broadcast %69 : vector<1x8xf32> to vector<16x8xf32>
    %78 = arith.subf %65, %77 : vector<16x8xf32>
    %cst_34 = arith.constant 9.99999974E-6 : f32
    %79 = vector.broadcast %cst_34 : f32 to vector<1x8xf32>
    %80 = arith.addf %76, %79 : vector<1x8xf32>
    %81 = math.rsqrt %80 : vector<1x8xf32>
    %82 = vector.broadcast %81 : vector<1x8xf32> to vector<16x8xf32>
    %83 = arith.mulf %78, %82 : vector<16x8xf32>
    %84 = vector.broadcast %18 : vector<1x8xf32> to vector<16x8xf32>
    %85 = arith.mulf %83, %84 : vector<16x8xf32>
    %86 = vector.broadcast %19 : vector<1x8xf32> to vector<16x8xf32>
    %87 = arith.addf %85, %86 : vector<16x8xf32>
    %cst_35 = arith.constant 0.000000e+00 : f32
    %88 = vector.broadcast %cst_35 : f32 to vector<16x8xf32>
    %89 = arith.maximumf %87, %88 : vector<16x8xf32>
    %c0_36 = arith.constant 0 : index
    %c0_37 = arith.constant 0 : index
    %90 = vector.load %arg22[%c0_36, %c0_37] : memref<16x8xf32, #tpu.memory_space<vmem>>, vector<16x8xf32>
    tpu.vector_store %arg22[%c0_36, %c0_37], %89 {strides = array<i32>} : memref<16x8xf32, #tpu.memory_space<vmem>>, vector<16x8xf32>,
    %c0_38 = arith.constant 0 : index
    %c0_39 = arith.constant 0 : index
    %91 = vector.load %arg9[%c0_38, %c0_39] : memref<1x8xf32, #tpu.memory_space<vmem>>, vector<1x8xf32>
    %92 = vector.broadcast %91 : vector<1x8xf32> to vector<16x8xf32>
    %93 = arith.mulf %89, %92 : vector<16x8xf32>
    %cst_40 = arith.constant dense<0.000000e+00> : vector<16xf32>
    %94 = vector.multi_reduction <add>, %93, %cst_40 [1] : vector<16x8xf32> to vector<16xf32>
    %95 = vector.shape_cast %94 : vector<16xf32> to vector<16x1xf32>
    %96 = math.tanh %95 : vector<16x1xf32>
    %97 = tpu.iota {dimensions = array<i32: 0>} : vector<16x1xi32>
    %98 = arith.sitofp %97 : vector<16x1xi32> to vector<16x1xf32>
    %99 = tpu.iota {dimensions = array<i32: 1>} : vector<1x16xi32>
    %100 = arith.sitofp %99 : vector<1x16xi32> to vector<1x16xf32>
    %101 = tpu.iota {dimensions = array<i32: 0>} : vector<8x1xi32>
    %102 = arith.sitofp %101 : vector<8x1xi32> to vector<8x1xf32>
    %103 = tpu.iota {dimensions = array<i32: 1>} : vector<1x8xi32>
    %104 = arith.sitofp %103 : vector<1x8xi32> to vector<1x8xf32>
    %cst_41 = arith.constant 0.000000e+00 : f32
    %105 = vector.broadcast %cst_41 : f32 to vector<8x16xf32>
    %cst_42 = arith.constant 0.000000e+00 : f32
    %106 = vector.broadcast %cst_42 : f32 to vector<16x8xf32>
    %cst_43 = arith.constant 0.000000e+00 : f32
    %107 = vector.broadcast %cst_43 : f32 to vector<8x1xf32>
    %cst_44 = arith.constant dense<0xFF800000> : vector<1xf32>
    %108 = vector.multi_reduction <maximumf>, %96, %cst_44 [0] : vector<16x1xf32> to vector<1xf32>
    %109 = vector.shape_cast %108 : vector<1xf32> to vector<1x1xf32>
    %110 = vector.broadcast %109 : vector<1x1xf32> to vector<16x1xf32>
    %111 = arith.cmpf oge, %96, %110 : vector<16x1xf32>
    %cst_45 = arith.constant 1.600000e+01 : f32
    %112 = vector.broadcast %cst_45 : f32 to vector<16x1xf32>
    %113 = arith.select %111, %98, %112 : vector<16x1xi1>, vector<16x1xf32>
    %cst_46 = arith.constant dense<0x7F800000> : vector<1xf32>
    %114 = vector.multi_reduction <minimumf>, %113, %cst_46 [0] : vector<16x1xf32> to vector<1xf32>
    %115 = vector.shape_cast %114 : vector<1xf32> to vector<1x1xf32>
    %116 = vector.broadcast %115 : vector<1x1xf32> to vector<16x1xf32>
    %117 = arith.cmpf oeq, %98, %116 : vector<16x1xf32>
    %118 = arith.extui %117 : vector<16x1xi1> to vector<16x1xi32>
    %119 = arith.sitofp %118 : vector<16x1xi32> to vector<16x1xf32>
    %120 = vector.broadcast %115 : vector<1x1xf32> to vector<1x16xf32>
    %121 = arith.cmpf oeq, %100, %120 : vector<1x16xf32>
    %122 = arith.extui %121 : vector<1x16xi1> to vector<1x16xi32>
    %123 = arith.sitofp %122 : vector<1x16xi32> to vector<1x16xf32>
    %cst_47 = arith.constant 0.000000e+00 : f32
    %124 = vector.broadcast %cst_47 : f32 to vector<8x1xf32>
    %125 = arith.cmpf oeq, %102, %124 : vector<8x1xf32>
    %126 = arith.extui %125 : vector<8x1xi1> to vector<8x1xi32>
    %127 = arith.sitofp %126 : vector<8x1xi32> to vector<8x1xf32>
    %128 = vector.broadcast %127 : vector<8x1xf32> to vector<8x16xf32>
    %129 = vector.broadcast %123 : vector<1x16xf32> to vector<8x16xf32>
    %130 = arith.mulf %128, %129 : vector<8x16xf32>
    %131 = arith.addf %105, %130 : vector<8x16xf32>
    %cst_48 = arith.constant 0.000000e+00 : f32
    %132 = vector.broadcast %cst_48 : f32 to vector<1x8xf32>
    %133 = arith.cmpf oeq, %104, %132 : vector<1x8xf32>
    %134 = arith.extui %133 : vector<1x8xi1> to vector<1x8xi32>
    %135 = arith.sitofp %134 : vector<1x8xi32> to vector<1x8xf32>
    %136 = vector.broadcast %119 : vector<16x1xf32> to vector<16x8xf32>
    %137 = vector.broadcast %135 : vector<1x8xf32> to vector<16x8xf32>
    %138 = arith.mulf %136, %137 : vector<16x8xf32>
    %139 = arith.addf %106, %138 : vector<16x8xf32>
    %140 = vector.broadcast %109 : vector<1x1xf32> to vector<8x1xf32>
    %141 = arith.mulf %127, %140 : vector<8x1xf32>
    %142 = arith.addf %107, %141 : vector<8x1xf32>
    %cst_49 = arith.constant 5.000000e-01 : f32
    %143 = vector.broadcast %cst_49 : f32 to vector<16x1xf32>
    %144 = arith.cmpf ogt, %119, %143 : vector<16x1xf32>
    %cst_50 = arith.constant -1.000000e+30 : f32
    %145 = vector.broadcast %cst_50 : f32 to vector<16x1xf32>
    %146 = arith.select %144, %145, %96 : vector<16x1xi1>, vector<16x1xf32>
    %cst_51 = arith.constant dense<0xFF800000> : vector<1xf32>
    %147 = vector.multi_reduction <maximumf>, %146, %cst_51 [0] : vector<16x1xf32> to vector<1xf32>
    %148 = vector.shape_cast %147 : vector<1xf32> to vector<1x1xf32>
    %149 = vector.broadcast %148 : vector<1x1xf32> to vector<16x1xf32>
    %150 = arith.cmpf oge, %146, %149 : vector<16x1xf32>
    %cst_52 = arith.constant 1.600000e+01 : f32
    %151 = vector.broadcast %cst_52 : f32 to vector<16x1xf32>
    %152 = arith.select %150, %98, %151 : vector<16x1xi1>, vector<16x1xf32>
    %cst_53 = arith.constant dense<0x7F800000> : vector<1xf32>
    %153 = vector.multi_reduction <minimumf>, %152, %cst_53 [0] : vector<16x1xf32> to vector<1xf32>
    %154 = vector.shape_cast %153 : vector<1xf32> to vector<1x1xf32>
    %155 = vector.broadcast %154 : vector<1x1xf32> to vector<16x1xf32>
    %156 = arith.cmpf oeq, %98, %155 : vector<16x1xf32>
    %157 = arith.extui %156 : vector<16x1xi1> to vector<16x1xi32>
    %158 = arith.sitofp %157 : vector<16x1xi32> to vector<16x1xf32>
    %159 = vector.broadcast %154 : vector<1x1xf32> to vector<1x16xf32>
    %160 = arith.cmpf oeq, %100, %159 : vector<1x16xf32>
    %161 = arith.extui %160 : vector<1x16xi1> to vector<1x16xi32>
    %162 = arith.sitofp %161 : vector<1x16xi32> to vector<1x16xf32>
    %cst_54 = arith.constant 1.000000e+00 : f32
    %163 = vector.broadcast %cst_54 : f32 to vector<8x1xf32>
    %164 = arith.cmpf oeq, %102, %163 : vector<8x1xf32>
    %165 = arith.extui %164 : vector<8x1xi1> to vector<8x1xi32>
    %166 = arith.sitofp %165 : vector<8x1xi32> to vector<8x1xf32>
    %167 = vector.broadcast %166 : vector<8x1xf32> to vector<8x16xf32>
    %168 = vector.broadcast %162 : vector<1x16xf32> to vector<8x16xf32>
    %169 = arith.mulf %167, %168 : vector<8x16xf32>
    %170 = arith.addf %131, %169 : vector<8x16xf32>
    %cst_55 = arith.constant 1.000000e+00 : f32
    %171 = vector.broadcast %cst_55 : f32 to vector<1x8xf32>
    %172 = arith.cmpf oeq, %104, %171 : vector<1x8xf32>
    %173 = arith.extui %172 : vector<1x8xi1> to vector<1x8xi32>
    %174 = arith.sitofp %173 : vector<1x8xi32> to vector<1x8xf32>
    %175 = vector.broadcast %158 : vector<16x1xf32> to vector<16x8xf32>
    %176 = vector.broadcast %174 : vector<1x8xf32> to vector<16x8xf32>
    %177 = arith.mulf %175, %176 : vector<16x8xf32>
    %178 = arith.addf %139, %177 : vector<16x8xf32>
    %179 = vector.broadcast %148 : vector<1x1xf32> to vector<8x1xf32>
    %180 = arith.mulf %166, %179 : vector<8x1xf32>
    %181 = arith.addf %142, %180 : vector<8x1xf32>
    %cst_56 = arith.constant 5.000000e-01 : f32
    %182 = vector.broadcast %cst_56 : f32 to vector<16x1xf32>
    %183 = arith.cmpf ogt, %158, %182 : vector<16x1xf32>
    %cst_57 = arith.constant -1.000000e+30 : f32
    %184 = vector.broadcast %cst_57 : f32 to vector<16x1xf32>
    %185 = arith.select %183, %184, %146 : vector<16x1xi1>, vector<16x1xf32>
    %cst_58 = arith.constant dense<0xFF800000> : vector<1xf32>
    %186 = vector.multi_reduction <maximumf>, %185, %cst_58 [0] : vector<16x1xf32> to vector<1xf32>
    %187 = vector.shape_cast %186 : vector<1xf32> to vector<1x1xf32>
    %188 = vector.broadcast %187 : vector<1x1xf32> to vector<16x1xf32>
    %189 = arith.cmpf oge, %185, %188 : vector<16x1xf32>
    %cst_59 = arith.constant 1.600000e+01 : f32
    %190 = vector.broadcast %cst_59 : f32 to vector<16x1xf32>
    %191 = arith.select %189, %98, %190 : vector<16x1xi1>, vector<16x1xf32>
    %cst_60 = arith.constant dense<0x7F800000> : vector<1xf32>
    %192 = vector.multi_reduction <minimumf>, %191, %cst_60 [0] : vector<16x1xf32> to vector<1xf32>
    %193 = vector.shape_cast %192 : vector<1xf32> to vector<1x1xf32>
    %194 = vector.broadcast %193 : vector<1x1xf32> to vector<16x1xf32>
    %195 = arith.cmpf oeq, %98, %194 : vector<16x1xf32>
    %196 = arith.extui %195 : vector<16x1xi1> to vector<16x1xi32>
    %197 = arith.sitofp %196 : vector<16x1xi32> to vector<16x1xf32>
    %198 = vector.broadcast %193 : vector<1x1xf32> to vector<1x16xf32>
    %199 = arith.cmpf oeq, %100, %198 : vector<1x16xf32>
    %200 = arith.extui %199 : vector<1x16xi1> to vector<1x16xi32>
    %201 = arith.sitofp %200 : vector<1x16xi32> to vector<1x16xf32>
    %cst_61 = arith.constant 2.000000e+00 : f32
    %202 = vector.broadcast %cst_61 : f32 to vector<8x1xf32>
    %203 = arith.cmpf oeq, %102, %202 : vector<8x1xf32>
    %204 = arith.extui %203 : vector<8x1xi1> to vector<8x1xi32>
    %205 = arith.sitofp %204 : vector<8x1xi32> to vector<8x1xf32>
    %206 = vector.broadcast %205 : vector<8x1xf32> to vector<8x16xf32>
    %207 = vector.broadcast %201 : vector<1x16xf32> to vector<8x16xf32>
    %208 = arith.mulf %206, %207 : vector<8x16xf32>
    %209 = arith.addf %170, %208 : vector<8x16xf32>
    %cst_62 = arith.constant 2.000000e+00 : f32
    %210 = vector.broadcast %cst_62 : f32 to vector<1x8xf32>
    %211 = arith.cmpf oeq, %104, %210 : vector<1x8xf32>
    %212 = arith.extui %211 : vector<1x8xi1> to vector<1x8xi32>
    %213 = arith.sitofp %212 : vector<1x8xi32> to vector<1x8xf32>
    %214 = vector.broadcast %197 : vector<16x1xf32> to vector<16x8xf32>
    %215 = vector.broadcast %213 : vector<1x8xf32> to vector<16x8xf32>
    %216 = arith.mulf %214, %215 : vector<16x8xf32>
    %217 = arith.addf %178, %216 : vector<16x8xf32>
    %218 = vector.broadcast %187 : vector<1x1xf32> to vector<8x1xf32>
    %219 = arith.mulf %205, %218 : vector<8x1xf32>
    %220 = arith.addf %181, %219 : vector<8x1xf32>
    %cst_63 = arith.constant 5.000000e-01 : f32
    %221 = vector.broadcast %cst_63 : f32 to vector<16x1xf32>
    %222 = arith.cmpf ogt, %197, %221 : vector<16x1xf32>
    %cst_64 = arith.constant -1.000000e+30 : f32
    %223 = vector.broadcast %cst_64 : f32 to vector<16x1xf32>
    %224 = arith.select %222, %223, %185 : vector<16x1xi1>, vector<16x1xf32>
    %cst_65 = arith.constant dense<0xFF800000> : vector<1xf32>
    %225 = vector.multi_reduction <maximumf>, %224, %cst_65 [0] : vector<16x1xf32> to vector<1xf32>
    %226 = vector.shape_cast %225 : vector<1xf32> to vector<1x1xf32>
    %227 = vector.broadcast %226 : vector<1x1xf32> to vector<16x1xf32>
    %228 = arith.cmpf oge, %224, %227 : vector<16x1xf32>
    %cst_66 = arith.constant 1.600000e+01 : f32
    %229 = vector.broadcast %cst_66 : f32 to vector<16x1xf32>
    %230 = arith.select %228, %98, %229 : vector<16x1xi1>, vector<16x1xf32>
    %cst_67 = arith.constant dense<0x7F800000> : vector<1xf32>
    %231 = vector.multi_reduction <minimumf>, %230, %cst_67 [0] : vector<16x1xf32> to vector<1xf32>
    %232 = vector.shape_cast %231 : vector<1xf32> to vector<1x1xf32>
    %233 = vector.broadcast %232 : vector<1x1xf32> to vector<16x1xf32>
    %234 = arith.cmpf oeq, %98, %233 : vector<16x1xf32>
    %235 = arith.extui %234 : vector<16x1xi1> to vector<16x1xi32>
    %236 = arith.sitofp %235 : vector<16x1xi32> to vector<16x1xf32>
    %237 = vector.broadcast %232 : vector<1x1xf32> to vector<1x16xf32>
    %238 = arith.cmpf oeq, %100, %237 : vector<1x16xf32>
    %239 = arith.extui %238 : vector<1x16xi1> to vector<1x16xi32>
    %240 = arith.sitofp %239 : vector<1x16xi32> to vector<1x16xf32>
    %cst_68 = arith.constant 3.000000e+00 : f32
    %241 = vector.broadcast %cst_68 : f32 to vector<8x1xf32>
    %242 = arith.cmpf oeq, %102, %241 : vector<8x1xf32>
    %243 = arith.extui %242 : vector<8x1xi1> to vector<8x1xi32>
    %244 = arith.sitofp %243 : vector<8x1xi32> to vector<8x1xf32>
    %245 = vector.broadcast %244 : vector<8x1xf32> to vector<8x16xf32>
    %246 = vector.broadcast %240 : vector<1x16xf32> to vector<8x16xf32>
    %247 = arith.mulf %245, %246 : vector<8x16xf32>
    %248 = arith.addf %209, %247 : vector<8x16xf32>
    %cst_69 = arith.constant 3.000000e+00 : f32
    %249 = vector.broadcast %cst_69 : f32 to vector<1x8xf32>
    %250 = arith.cmpf oeq, %104, %249 : vector<1x8xf32>
    %251 = arith.extui %250 : vector<1x8xi1> to vector<1x8xi32>
    %252 = arith.sitofp %251 : vector<1x8xi32> to vector<1x8xf32>
    %253 = vector.broadcast %236 : vector<16x1xf32> to vector<16x8xf32>
    %254 = vector.broadcast %252 : vector<1x8xf32> to vector<16x8xf32>
    %255 = arith.mulf %253, %254 : vector<16x8xf32>
    %256 = arith.addf %217, %255 : vector<16x8xf32>
    %257 = vector.broadcast %226 : vector<1x1xf32> to vector<8x1xf32>
    %258 = arith.mulf %244, %257 : vector<8x1xf32>
    %259 = arith.addf %220, %258 : vector<8x1xf32>
    %cst_70 = arith.constant 5.000000e-01 : f32
    %260 = vector.broadcast %cst_70 : f32 to vector<16x1xf32>
    %261 = arith.cmpf ogt, %236, %260 : vector<16x1xf32>
    %cst_71 = arith.constant -1.000000e+30 : f32
    %262 = vector.broadcast %cst_71 : f32 to vector<16x1xf32>
    %263 = arith.select %261, %262, %224 : vector<16x1xi1>, vector<16x1xf32>
    %cst_72 = arith.constant dense<0xFF800000> : vector<1xf32>
    %264 = vector.multi_reduction <maximumf>, %263, %cst_72 [0] : vector<16x1xf32> to vector<1xf32>
    %265 = vector.shape_cast %264 : vector<1xf32> to vector<1x1xf32>
    %266 = vector.broadcast %265 : vector<1x1xf32> to vector<16x1xf32>
    %267 = arith.cmpf oge, %263, %266 : vector<16x1xf32>
    %cst_73 = arith.constant 1.600000e+01 : f32
    %268 = vector.broadcast %cst_73 : f32 to vector<16x1xf32>
    %269 = arith.select %267, %98, %268 : vector<16x1xi1>, vector<16x1xf32>
    %cst_74 = arith.constant dense<0x7F800000> : vector<1xf32>
    %270 = vector.multi_reduction <minimumf>, %269, %cst_74 [0] : vector<16x1xf32> to vector<1xf32>
    %271 = vector.shape_cast %270 : vector<1xf32> to vector<1x1xf32>
    %272 = vector.broadcast %271 : vector<1x1xf32> to vector<16x1xf32>
    %273 = arith.cmpf oeq, %98, %272 : vector<16x1xf32>
    %274 = arith.extui %273 : vector<16x1xi1> to vector<16x1xi32>
    %275 = arith.sitofp %274 : vector<16x1xi32> to vector<16x1xf32>
    %276 = vector.broadcast %271 : vector<1x1xf32> to vector<1x16xf32>
    %277 = arith.cmpf oeq, %100, %276 : vector<1x16xf32>
    %278 = arith.extui %277 : vector<1x16xi1> to vector<1x16xi32>
    %279 = arith.sitofp %278 : vector<1x16xi32> to vector<1x16xf32>
    %cst_75 = arith.constant 4.000000e+00 : f32
    %280 = vector.broadcast %cst_75 : f32 to vector<8x1xf32>
    %281 = arith.cmpf oeq, %102, %280 : vector<8x1xf32>
    %282 = arith.extui %281 : vector<8x1xi1> to vector<8x1xi32>
    %283 = arith.sitofp %282 : vector<8x1xi32> to vector<8x1xf32>
    %284 = vector.broadcast %283 : vector<8x1xf32> to vector<8x16xf32>
    %285 = vector.broadcast %279 : vector<1x16xf32> to vector<8x16xf32>
    %286 = arith.mulf %284, %285 : vector<8x16xf32>
    %287 = arith.addf %248, %286 : vector<8x16xf32>
    %cst_76 = arith.constant 4.000000e+00 : f32
    %288 = vector.broadcast %cst_76 : f32 to vector<1x8xf32>
    %289 = arith.cmpf oeq, %104, %288 : vector<1x8xf32>
    %290 = arith.extui %289 : vector<1x8xi1> to vector<1x8xi32>
    %291 = arith.sitofp %290 : vector<1x8xi32> to vector<1x8xf32>
    %292 = vector.broadcast %275 : vector<16x1xf32> to vector<16x8xf32>
    %293 = vector.broadcast %291 : vector<1x8xf32> to vector<16x8xf32>
    %294 = arith.mulf %292, %293 : vector<16x8xf32>
    %295 = arith.addf %256, %294 : vector<16x8xf32>
    %296 = vector.broadcast %265 : vector<1x1xf32> to vector<8x1xf32>
    %297 = arith.mulf %283, %296 : vector<8x1xf32>
    %298 = arith.addf %259, %297 : vector<8x1xf32>
    %cst_77 = arith.constant 5.000000e-01 : f32
    %299 = vector.broadcast %cst_77 : f32 to vector<16x1xf32>
    %300 = arith.cmpf ogt, %275, %299 : vector<16x1xf32>
    %cst_78 = arith.constant -1.000000e+30 : f32
    %301 = vector.broadcast %cst_78 : f32 to vector<16x1xf32>
    %302 = arith.select %300, %301, %263 : vector<16x1xi1>, vector<16x1xf32>
    %cst_79 = arith.constant dense<0xFF800000> : vector<1xf32>
    %303 = vector.multi_reduction <maximumf>, %302, %cst_79 [0] : vector<16x1xf32> to vector<1xf32>
    %304 = vector.shape_cast %303 : vector<1xf32> to vector<1x1xf32>
    %305 = vector.broadcast %304 : vector<1x1xf32> to vector<16x1xf32>
    %306 = arith.cmpf oge, %302, %305 : vector<16x1xf32>
    %cst_80 = arith.constant 1.600000e+01 : f32
    %307 = vector.broadcast %cst_80 : f32 to vector<16x1xf32>
    %308 = arith.select %306, %98, %307 : vector<16x1xi1>, vector<16x1xf32>
    %cst_81 = arith.constant dense<0x7F800000> : vector<1xf32>
    %309 = vector.multi_reduction <minimumf>, %308, %cst_81 [0] : vector<16x1xf32> to vector<1xf32>
    %310 = vector.shape_cast %309 : vector<1xf32> to vector<1x1xf32>
    %311 = vector.broadcast %310 : vector<1x1xf32> to vector<16x1xf32>
    %312 = arith.cmpf oeq, %98, %311 : vector<16x1xf32>
    %313 = arith.extui %312 : vector<16x1xi1> to vector<16x1xi32>
    %314 = arith.sitofp %313 : vector<16x1xi32> to vector<16x1xf32>
    %315 = vector.broadcast %310 : vector<1x1xf32> to vector<1x16xf32>
    %316 = arith.cmpf oeq, %100, %315 : vector<1x16xf32>
    %317 = arith.extui %316 : vector<1x16xi1> to vector<1x16xi32>
    %318 = arith.sitofp %317 : vector<1x16xi32> to vector<1x16xf32>
    %cst_82 = arith.constant 5.000000e+00 : f32
    %319 = vector.broadcast %cst_82 : f32 to vector<8x1xf32>
    %320 = arith.cmpf oeq, %102, %319 : vector<8x1xf32>
    %321 = arith.extui %320 : vector<8x1xi1> to vector<8x1xi32>
    %322 = arith.sitofp %321 : vector<8x1xi32> to vector<8x1xf32>
    %323 = vector.broadcast %322 : vector<8x1xf32> to vector<8x16xf32>
    %324 = vector.broadcast %318 : vector<1x16xf32> to vector<8x16xf32>
    %325 = arith.mulf %323, %324 : vector<8x16xf32>
    %326 = arith.addf %287, %325 : vector<8x16xf32>
    %cst_83 = arith.constant 5.000000e+00 : f32
    %327 = vector.broadcast %cst_83 : f32 to vector<1x8xf32>
    %328 = arith.cmpf oeq, %104, %327 : vector<1x8xf32>
    %329 = arith.extui %328 : vector<1x8xi1> to vector<1x8xi32>
    %330 = arith.sitofp %329 : vector<1x8xi32> to vector<1x8xf32>
    %331 = vector.broadcast %314 : vector<16x1xf32> to vector<16x8xf32>
    %332 = vector.broadcast %330 : vector<1x8xf32> to vector<16x8xf32>
    %333 = arith.mulf %331, %332 : vector<16x8xf32>
    %334 = arith.addf %295, %333 : vector<16x8xf32>
    %335 = vector.broadcast %304 : vector<1x1xf32> to vector<8x1xf32>
    %336 = arith.mulf %322, %335 : vector<8x1xf32>
    %337 = arith.addf %298, %336 : vector<8x1xf32>
    %cst_84 = arith.constant 5.000000e-01 : f32
    %338 = vector.broadcast %cst_84 : f32 to vector<16x1xf32>
    %339 = arith.cmpf ogt, %314, %338 : vector<16x1xf32>
    %cst_85 = arith.constant -1.000000e+30 : f32
    %340 = vector.broadcast %cst_85 : f32 to vector<16x1xf32>
    %341 = arith.select %339, %340, %302 : vector<16x1xi1>, vector<16x1xf32>
    %cst_86 = arith.constant dense<0xFF800000> : vector<1xf32>
    %342 = vector.multi_reduction <maximumf>, %341, %cst_86 [0] : vector<16x1xf32> to vector<1xf32>
    %343 = vector.shape_cast %342 : vector<1xf32> to vector<1x1xf32>
    %344 = vector.broadcast %343 : vector<1x1xf32> to vector<16x1xf32>
    %345 = arith.cmpf oge, %341, %344 : vector<16x1xf32>
    %cst_87 = arith.constant 1.600000e+01 : f32
    %346 = vector.broadcast %cst_87 : f32 to vector<16x1xf32>
    %347 = arith.select %345, %98, %346 : vector<16x1xi1>, vector<16x1xf32>
    %cst_88 = arith.constant dense<0x7F800000> : vector<1xf32>
    %348 = vector.multi_reduction <minimumf>, %347, %cst_88 [0] : vector<16x1xf32> to vector<1xf32>
    %349 = vector.shape_cast %348 : vector<1xf32> to vector<1x1xf32>
    %350 = vector.broadcast %349 : vector<1x1xf32> to vector<16x1xf32>
    %351 = arith.cmpf oeq, %98, %350 : vector<16x1xf32>
    %352 = arith.extui %351 : vector<16x1xi1> to vector<16x1xi32>
    %353 = arith.sitofp %352 : vector<16x1xi32> to vector<16x1xf32>
    %354 = vector.broadcast %349 : vector<1x1xf32> to vector<1x16xf32>
    %355 = arith.cmpf oeq, %100, %354 : vector<1x16xf32>
    %356 = arith.extui %355 : vector<1x16xi1> to vector<1x16xi32>
    %357 = arith.sitofp %356 : vector<1x16xi32> to vector<1x16xf32>
    %cst_89 = arith.constant 6.000000e+00 : f32
    %358 = vector.broadcast %cst_89 : f32 to vector<8x1xf32>
    %359 = arith.cmpf oeq, %102, %358 : vector<8x1xf32>
    %360 = arith.extui %359 : vector<8x1xi1> to vector<8x1xi32>
    %361 = arith.sitofp %360 : vector<8x1xi32> to vector<8x1xf32>
    %362 = vector.broadcast %361 : vector<8x1xf32> to vector<8x16xf32>
    %363 = vector.broadcast %357 : vector<1x16xf32> to vector<8x16xf32>
    %364 = arith.mulf %362, %363 : vector<8x16xf32>
    %365 = arith.addf %326, %364 : vector<8x16xf32>
    %cst_90 = arith.constant 6.000000e+00 : f32
    %366 = vector.broadcast %cst_90 : f32 to vector<1x8xf32>
    %367 = arith.cmpf oeq, %104, %366 : vector<1x8xf32>
    %368 = arith.extui %367 : vector<1x8xi1> to vector<1x8xi32>
    %369 = arith.sitofp %368 : vector<1x8xi32> to vector<1x8xf32>
    %370 = vector.broadcast %353 : vector<16x1xf32> to vector<16x8xf32>
    %371 = vector.broadcast %369 : vector<1x8xf32> to vector<16x8xf32>
    %372 = arith.mulf %370, %371 : vector<16x8xf32>
    %373 = arith.addf %334, %372 : vector<16x8xf32>
    %374 = vector.broadcast %343 : vector<1x1xf32> to vector<8x1xf32>
    %375 = arith.mulf %361, %374 : vector<8x1xf32>
    %376 = arith.addf %337, %375 : vector<8x1xf32>
    %cst_91 = arith.constant 5.000000e-01 : f32
    %377 = vector.broadcast %cst_91 : f32 to vector<16x1xf32>
    %378 = arith.cmpf ogt, %353, %377 : vector<16x1xf32>
    %cst_92 = arith.constant -1.000000e+30 : f32
    %379 = vector.broadcast %cst_92 : f32 to vector<16x1xf32>
    %380 = arith.select %378, %379, %341 : vector<16x1xi1>, vector<16x1xf32>
    %cst_93 = arith.constant dense<0xFF800000> : vector<1xf32>
    %381 = vector.multi_reduction <maximumf>, %380, %cst_93 [0] : vector<16x1xf32> to vector<1xf32>
    %382 = vector.shape_cast %381 : vector<1xf32> to vector<1x1xf32>
    %383 = vector.broadcast %382 : vector<1x1xf32> to vector<16x1xf32>
    %384 = arith.cmpf oge, %380, %383 : vector<16x1xf32>
    %cst_94 = arith.constant 1.600000e+01 : f32
    %385 = vector.broadcast %cst_94 : f32 to vector<16x1xf32>
    %386 = arith.select %384, %98, %385 : vector<16x1xi1>, vector<16x1xf32>
    %cst_95 = arith.constant dense<0x7F800000> : vector<1xf32>
    %387 = vector.multi_reduction <minimumf>, %386, %cst_95 [0] : vector<16x1xf32> to vector<1xf32>
    %388 = vector.shape_cast %387 : vector<1xf32> to vector<1x1xf32>
    %389 = vector.broadcast %388 : vector<1x1xf32> to vector<16x1xf32>
    %390 = arith.cmpf oeq, %98, %389 : vector<16x1xf32>
    %391 = arith.extui %390 : vector<16x1xi1> to vector<16x1xi32>
    %392 = arith.sitofp %391 : vector<16x1xi32> to vector<16x1xf32>
    %393 = vector.broadcast %388 : vector<1x1xf32> to vector<1x16xf32>
    %394 = arith.cmpf oeq, %100, %393 : vector<1x16xf32>
    %395 = arith.extui %394 : vector<1x16xi1> to vector<1x16xi32>
    %396 = arith.sitofp %395 : vector<1x16xi32> to vector<1x16xf32>
    %cst_96 = arith.constant 7.000000e+00 : f32
    %397 = vector.broadcast %cst_96 : f32 to vector<8x1xf32>
    %398 = arith.cmpf oeq, %102, %397 : vector<8x1xf32>
    %399 = arith.extui %398 : vector<8x1xi1> to vector<8x1xi32>
    %400 = arith.sitofp %399 : vector<8x1xi32> to vector<8x1xf32>
    %401 = vector.broadcast %400 : vector<8x1xf32> to vector<8x16xf32>
    %402 = vector.broadcast %396 : vector<1x16xf32> to vector<8x16xf32>
    %403 = arith.mulf %401, %402 : vector<8x16xf32>
    %404 = arith.addf %365, %403 : vector<8x16xf32>
    %cst_97 = arith.constant 7.000000e+00 : f32
    %405 = vector.broadcast %cst_97 : f32 to vector<1x8xf32>
    %406 = arith.cmpf oeq, %104, %405 : vector<1x8xf32>
    %407 = arith.extui %406 : vector<1x8xi1> to vector<1x8xi32>
    %408 = arith.sitofp %407 : vector<1x8xi32> to vector<1x8xf32>
    %409 = vector.broadcast %392 : vector<16x1xf32> to vector<16x8xf32>
    %410 = vector.broadcast %408 : vector<1x8xf32> to vector<16x8xf32>
    %411 = arith.mulf %409, %410 : vector<16x8xf32>
    %412 = arith.addf %373, %411 : vector<16x8xf32>
    %413 = vector.broadcast %382 : vector<1x1xf32> to vector<8x1xf32>
    %414 = arith.mulf %400, %413 : vector<8x1xf32>
    %415 = arith.addf %376, %414 : vector<8x1xf32>
    %cst_98 = arith.constant dense<0.000000e+00> : vector<8x8xf32>
    %416 = tpu.matmul %404, %89, %cst_98 {dimension_numbers = #tpu.dot_dimension_numbers<[1], [0], [0], [1], [0, 0, 1, 1], [], []>} : vector<8x16xf32>, vector<16x8xf32>, vector<8x8xf32> -> vector<8x8xf32>
    %417 = vector.broadcast %415 : vector<8x1xf32> to vector<8x8xf32>
    %418 = arith.mulf %416, %417 : vector<8x8xf32>
    %cst_99 = arith.constant dense<0.000000e+00> : vector<8x16xf32>
    %419 = tpu.matmul %404, %12, %cst_99 {dimension_numbers = #tpu.dot_dimension_numbers<[1], [0], [0], [1], [0, 0, 1, 1], [], []>} : vector<8x16xf32>, vector<16x16xf32>, vector<8x16xf32> -> vector<8x16xf32>
    %cst_100 = arith.constant dense<0.000000e+00> : vector<8x8xf32>
    %420 = tpu.matmul %419, %412, %cst_100 {dimension_numbers = #tpu.dot_dimension_numbers<[1], [0], [0], [1], [0, 0, 1, 1], [], []>} : vector<8x16xf32>, vector<16x8xf32>, vector<8x8xf32> -> vector<8x8xf32>
    %c0_101 = arith.constant 0 : index
    %c0_102 = arith.constant 0 : index
    %421 = vector.load %arg10[%c0_101, %c0_102] : memref<8x16xf32, #tpu.memory_space<vmem>>, vector<8x16xf32>
    %c0_103 = arith.constant 0 : index
    %c0_104 = arith.constant 0 : index
    %422 = vector.load %arg11[%c0_103, %c0_104] : memref<1x16xf32, #tpu.memory_space<vmem>>, vector<1x16xf32>
    %c0_105 = arith.constant 0 : index
    %c0_106 = arith.constant 0 : index
    %423 = vector.load %arg12[%c0_105, %c0_106] : memref<16x16xf32, #tpu.memory_space<vmem>>, vector<16x16xf32>
    %c0_107 = arith.constant 0 : index
    %c0_108 = arith.constant 0 : index
    %424 = vector.load %arg13[%c0_107, %c0_108] : memref<1x16xf32, #tpu.memory_space<vmem>>, vector<1x16xf32>
    %c0_109 = arith.constant 0 : index
    %c0_110 = arith.constant 0 : index
    %425 = vector.load %arg14[%c0_109, %c0_110] : memref<1x16xf32, #tpu.memory_space<vmem>>, vector<1x16xf32>
    %c0_111 = arith.constant 0 : index
    %c0_112 = arith.constant 0 : index
    %426 = vector.load %arg15[%c0_111, %c0_112] : memref<1x16xf32, #tpu.memory_space<vmem>>, vector<1x16xf32>
    %cst_113 = arith.constant dense<0.000000e+00> : vector<8x16xf32>
    %427 = tpu.matmul %418, %421, %cst_113 {dimension_numbers = #tpu.dot_dimension_numbers<[1], [0], [0], [1], [0, 0, 1, 1], [], []>} : vector<8x8xf32>, vector<8x16xf32>, vector<8x16xf32> -> vector<8x16xf32>
    %428 = vector.broadcast %422 : vector<1x16xf32> to vector<8x16xf32>
    %429 = arith.addf %427, %428 : vector<8x16xf32>
    %cst_114 = arith.constant 0.000000e+00 : f32
    %430 = vector.broadcast %cst_114 : f32 to vector<8x16xf32>
    %431 = arith.maximumf %429, %430 : vector<8x16xf32>
    %cst_115 = arith.constant dense<0.000000e+00> : vector<16xf32>
    %432 = vector.multi_reduction <add>, %431, %cst_115 [0] : vector<8x16xf32> to vector<16xf32>
    %433 = vector.shape_cast %432 : vector<16xf32> to vector<1x16xf32>
    %cst_116 = arith.constant 8.000000e+00 : f32
    %434 = vector.broadcast %cst_116 : f32 to vector<1x16xf32>
    %435 = arith.divf %433, %434 : vector<1x16xf32>
    %436 = vector.broadcast %435 : vector<1x16xf32> to vector<8x16xf32>
    %437 = arith.subf %431, %436 : vector<8x16xf32>
    %438 = arith.mulf %437, %437 : vector<8x16xf32>
    %cst_117 = arith.constant dense<0.000000e+00> : vector<16xf32>
    %439 = vector.multi_reduction <add>, %438, %cst_117 [0] : vector<8x16xf32> to vector<16xf32>
    %440 = vector.shape_cast %439 : vector<16xf32> to vector<1x16xf32>
    %cst_118 = arith.constant 8.000000e+00 : f32
    %441 = vector.broadcast %cst_118 : f32 to vector<1x16xf32>
    %442 = arith.divf %440, %441 : vector<1x16xf32>
    %443 = vector.broadcast %435 : vector<1x16xf32> to vector<8x16xf32>
    %444 = arith.subf %431, %443 : vector<8x16xf32>
    %cst_119 = arith.constant 9.99999974E-6 : f32
    %445 = vector.broadcast %cst_119 : f32 to vector<1x16xf32>
    %446 = arith.addf %442, %445 : vector<1x16xf32>
    %447 = math.rsqrt %446 : vector<1x16xf32>
    %448 = vector.broadcast %447 : vector<1x16xf32> to vector<8x16xf32>
    %449 = arith.mulf %444, %448 : vector<8x16xf32>
    %450 = tpu.iota {dimensions = array<i32: 0>} : vector<8x8xi32>
    %451 = tpu.iota {dimensions = array<i32: 1>} : vector<8x8xi32>
    %452 = arith.cmpi eq, %450, %451 : vector<8x8xi32>
    %453 = arith.extui %452 : vector<8x8xi1> to vector<8x8xi32>
    %454 = arith.sitofp %453 : vector<8x8xi32> to vector<8x8xf32>
    %cst_120 = arith.constant 2.000000e+00 : f32
    %455 = vector.broadcast %cst_120 : f32 to vector<8x8xf32>
    %456 = arith.mulf %455, %454 : vector<8x8xf32>
    %457 = arith.addf %420, %456 : vector<8x8xf32>
    %cst_121 = arith.constant dense<0.000000e+00> : vector<8xf32>
    %458 = vector.multi_reduction <add>, %457, %cst_121 [1] : vector<8x8xf32> to vector<8xf32>
    %459 = vector.shape_cast %458 : vector<8xf32> to vector<8x1xf32>
    %cst_122 = arith.constant 0.000000e+00 : f32
    %460 = vector.broadcast %cst_122 : f32 to vector<8x1xf32>
    %461 = arith.cmpf ogt, %459, %460 : vector<8x1xf32>
    %462 = math.rsqrt %459 : vector<8x1xf32>
    %cst_123 = arith.constant 0.000000e+00 : f32
    %463 = vector.broadcast %cst_123 : f32 to vector<8x1xf32>
    %464 = arith.select %461, %462, %463 : vector<8x1xi1>, vector<8x1xf32>
    %cst_124 = arith.constant dense<0.000000e+00> : vector<8x16xf32>
    %465 = tpu.matmul %449, %423, %cst_124 {dimension_numbers = #tpu.dot_dimension_numbers<[1], [0], [0], [1], [0, 0, 1, 1], [], []>} : vector<8x16xf32>, vector<16x16xf32>, vector<8x16xf32> -> vector<8x16xf32>
    %466 = vector.broadcast %424 : vector<1x16xf32> to vector<8x16xf32>
    %467 = arith.addf %465, %466 : vector<8x16xf32>
    %468 = vector.broadcast %464 : vector<8x1xf32> to vector<8x16xf32>
    %469 = arith.mulf %468, %467 : vector<8x16xf32>
    %cst_125 = arith.constant dense<0.000000e+00> : vector<8x16xf32>
    %470 = tpu.matmul %457, %469, %cst_125 {dimension_numbers = #tpu.dot_dimension_numbers<[1], [0], [0], [1], [0, 0, 1, 1], [], []>} : vector<8x8xf32>, vector<8x16xf32>, vector<8x16xf32> -> vector<8x16xf32>
    %471 = vector.broadcast %464 : vector<8x1xf32> to vector<8x16xf32>
    %472 = arith.mulf %471, %470 : vector<8x16xf32>
    %cst_126 = arith.constant dense<0.000000e+00> : vector<16xf32>
    %473 = vector.multi_reduction <add>, %472, %cst_126 [0] : vector<8x16xf32> to vector<16xf32>
    %474 = vector.shape_cast %473 : vector<16xf32> to vector<1x16xf32>
    %cst_127 = arith.constant 8.000000e+00 : f32
    %475 = vector.broadcast %cst_127 : f32 to vector<1x16xf32>
    %476 = arith.divf %474, %475 : vector<1x16xf32>
    %477 = vector.broadcast %476 : vector<1x16xf32> to vector<8x16xf32>
    %478 = arith.subf %472, %477 : vector<8x16xf32>
    %479 = arith.mulf %478, %478 : vector<8x16xf32>
    %cst_128 = arith.constant dense<0.000000e+00> : vector<16xf32>
    %480 = vector.multi_reduction <add>, %479, %cst_128 [0] : vector<8x16xf32> to vector<16xf32>
    %481 = vector.shape_cast %480 : vector<16xf32> to vector<1x16xf32>
    %cst_129 = arith.constant 8.000000e+00 : f32
    %482 = vector.broadcast %cst_129 : f32 to vector<1x16xf32>
    %483 = arith.divf %481, %482 : vector<1x16xf32>
    %484 = vector.broadcast %476 : vector<1x16xf32> to vector<8x16xf32>
    %485 = arith.subf %472, %484 : vector<8x16xf32>
    %cst_130 = arith.constant 9.99999974E-6 : f32
    %486 = vector.broadcast %cst_130 : f32 to vector<1x16xf32>
    %487 = arith.addf %483, %486 : vector<1x16xf32>
    %488 = math.rsqrt %487 : vector<1x16xf32>
    %489 = vector.broadcast %488 : vector<1x16xf32> to vector<8x16xf32>
    %490 = arith.mulf %485, %489 : vector<8x16xf32>
    %491 = vector.broadcast %425 : vector<1x16xf32> to vector<8x16xf32>
    %492 = arith.mulf %490, %491 : vector<8x16xf32>
    %493 = vector.broadcast %426 : vector<1x16xf32> to vector<8x16xf32>
    %494 = arith.addf %492, %493 : vector<8x16xf32>
    %cst_131 = arith.constant 0.000000e+00 : f32
    %495 = vector.broadcast %cst_131 : f32 to vector<8x16xf32>
    %496 = arith.maximumf %494, %495 : vector<8x16xf32>
    %c0_132 = arith.constant 0 : index
    %c0_133 = arith.constant 0 : index
    %497 = vector.load %arg23[%c0_132, %c0_133] : memref<8x16xf32, #tpu.memory_space<vmem>>, vector<8x16xf32>
    tpu.vector_store %arg23[%c0_132, %c0_133], %496 {strides = array<i32>} : memref<8x16xf32, #tpu.memory_space<vmem>>, vector<8x16xf32>,
    %cst_134 = arith.constant dense<0.000000e+00> : vector<16xf32>
    %498 = vector.multi_reduction <add>, %496, %cst_134 [0] : vector<8x16xf32> to vector<16xf32>
    %499 = vector.shape_cast %498 : vector<16xf32> to vector<1x16xf32>
    %cst_135 = arith.constant 8.000000e+00 : f32
    %500 = vector.broadcast %cst_135 : f32 to vector<1x16xf32>
    %501 = arith.divf %499, %500 : vector<1x16xf32>
    %c0_136 = arith.constant 0 : index
    %c0_137 = arith.constant 0 : index
    %502 = vector.load %arg16[%c0_136, %c0_137] : memref<16x32xf32, #tpu.memory_space<vmem>>, vector<16x32xf32>
    %cst_138 = arith.constant dense<0.000000e+00> : vector<1x32xf32>
    %503 = tpu.matmul %501, %502, %cst_138 {dimension_numbers = #tpu.dot_dimension_numbers<[1], [0], [0], [1], [0, 0, 1, 1], [], []>} : vector<1x16xf32>, vector<16x32xf32>, vector<1x32xf32> -> vector<1x32xf32>
    %c0_139 = arith.constant 0 : index
    %c0_140 = arith.constant 0 : index
    %504 = vector.load %arg17[%c0_139, %c0_140] : memref<1x32xf32, #tpu.memory_space<vmem>>, vector<1x32xf32>
    %505 = arith.addf %503, %504 : vector<1x32xf32>
    %cst_141 = arith.constant 0.000000e+00 : f32
    %506 = vector.broadcast %cst_141 : f32 to vector<1x32xf32>
    %507 = arith.maximumf %505, %506 : vector<1x32xf32>
    %c0_142 = arith.constant 0 : index
    %c0_143 = arith.constant 0 : index
    %508 = vector.load %arg18[%c0_142, %c0_143] : memref<32x64xf32, #tpu.memory_space<vmem>>, vector<32x64xf32>
    %cst_144 = arith.constant dense<0.000000e+00> : vector<1x64xf32>
    %509 = tpu.matmul %507, %508, %cst_144 {dimension_numbers = #tpu.dot_dimension_numbers<[1], [0], [0], [1], [0, 0, 1, 1], [], []>} : vector<1x32xf32>, vector<32x64xf32>, vector<1x64xf32> -> vector<1x64xf32>
    %c0_145 = arith.constant 0 : index
    %c0_146 = arith.constant 0 : index
    %510 = vector.load %arg19[%c0_145, %c0_146] : memref<1x64xf32, #tpu.memory_space<vmem>>, vector<1x64xf32>
    %511 = arith.addf %509, %510 : vector<1x64xf32>
    %cst_147 = arith.constant 0.000000e+00 : f32
    %512 = vector.broadcast %cst_147 : f32 to vector<1x64xf32>
    %513 = arith.maximumf %511, %512 : vector<1x64xf32>
    %cst_148 = arith.constant 0.000000e+00 : f32
    %514 = vector.broadcast %cst_148 : f32 to vector<1x128xf32>
    %c0_149 = arith.constant 0 : index
    %c0_150 = arith.constant 0 : index
    %515 = vector.load %arg24[%c0_149, %c0_150] : memref<1x128xf32, #tpu.memory_space<vmem>>, vector<1x128xf32>
    tpu.vector_store %arg24[%c0_149, %c0_150], %514 {strides = array<i32>} : memref<1x128xf32, #tpu.memory_space<vmem>>, vector<1x128xf32>,
    %c0_151 = arith.constant 0 : index
    %c0_152 = arith.constant 0 : index
    %516 = vector.load %arg24[%c0_151, %c0_152] : memref<1x128xf32, #tpu.memory_space<vmem>>, vector<1x32xf32>
    tpu.vector_store %arg24[%c0_151, %c0_152], %507 {strides = array<i32>} : memref<1x128xf32, #tpu.memory_space<vmem>>, vector<1x32xf32>,
    %c0_153 = arith.constant 0 : index
    %c32 = arith.constant 32 : index
    %517 = vector.load %arg24[%c0_153, %c32] : memref<1x128xf32, #tpu.memory_space<vmem>>, vector<1x64xf32>
    tpu.vector_store %arg24[%c0_153, %c32], %513 {strides = array<i32>} : memref<1x128xf32, #tpu.memory_space<vmem>>, vector<1x64xf32>,
    tpu.wait_dma2 semaphore(%arg27 : memref<!tpu.dma_semaphore, #tpu.memory_space<semaphore_mem>>) src(%arg20 : memref<64x3840xbf16, #tpu.memory_space<any>>) dst(%arg26 : memref<64x3840xbf16, #tpu.memory_space<vmem>>)
    %518 = arith.truncf %513 : vector<1x64xf32> to vector<1x64xbf16>
    %c0_154 = arith.constant 0 : index
    %c0_155 = arith.constant 0 : index
    %519 = vector.load %arg26[%c0_154, %c0_155] : memref<64x3840xbf16, #tpu.memory_space<vmem>>, vector<64x3840xbf16>
    %cst_156 = arith.constant dense<0.000000e+00> : vector<1x3840xf32>
    %520 = tpu.matmul %518, %519, %cst_156 {dimension_numbers = #tpu.dot_dimension_numbers<[1], [0], [0], [1], [0, 0, 1, 1], [], []>} : vector<1x64xbf16>, vector<64x3840xbf16>, vector<1x3840xf32> -> vector<1x3840xf32>
    %c0_157 = arith.constant 0 : index
    %c0_158 = arith.constant 0 : index
    %521 = vector.load %arg21[%c0_157, %c0_158] : memref<1x3840xf32, #tpu.memory_space<vmem>>, vector<1x3840xf32>
    %522 = arith.addf %520, %521 : vector<1x3840xf32>
    %c0_159 = arith.constant 0 : index
    %c0_160 = arith.constant 0 : index
    %523 = vector.load %arg25[%c0_159, %c0_160] : memref<1x3840xf32, #tpu.memory_space<vmem>>, vector<1x3840xf32>
    tpu.vector_store %arg25[%c0_159, %c0_160], %522 {strides = array<i32>} : memref<1x3840xf32, #tpu.memory_space<vmem>>, vector<1x3840xf32>,
    return
  }
}

</mosaic_0001>

<bundles_post_ra>
// kernel: one_d_unet_forward.1
= control target key start
LH: loop header
LB: loop body
LE: loop exit
PB: predicated region body
PF: predicated region fallthrough
CT: control target
= control target key end

     0   :  { %s5090_s0 = inlined_call_operand.vmem [shape: s32[1,32], index: 0, kind: input, shape index: {}]   ;;  %s5091_s1 = inlined_call_operand.vmem [shape: s32[32,1], index: 1, kind: input, shape index: {}]   ;;  %s5092_s2 = inlined_call_operand.vmem [shape: f32[16,4], index: 2, kind: input, shape index: {}]   ;;  %s5093_s3 = inlined_call_operand.hbm [shape: f32[4,8], index: 3, kind: input, shape index: {}]   ;;  %s5094_s4 = inlined_call_operand.hbm [shape: f32[1,8], index: 4, kind: input, shape index: {}]   ;;  %s5095_s5 = inlined_call_operand.hbm [shape: f32[8,8], index: 5, kind: input, shape index: {}]   ;;  %s5096_s6 = inlined_call_operand.hbm [shape: f32[1,8], index: 6, kind: input, shape index: {}]   ;;  %s5097_s7 = inlined_call_operand.hbm [shape: f32[1,8], index: 7, kind: input, shape index: {}]   ;;  %s5098_s8 = inlined_call_operand.hbm [shape: f32[1,8], index: 8, kind: input, shape index: {}]   ;;  %s5099_s9 = inlined_call_operand.vmem [shape: f32[1,8], index: 9, kind: input, shape index: {}]   ;;  %s5100_s10 = inlined_call_operand.hbm [shape: f32[8,16], index: 10, kind: input, shape index: {}]   ;;  %s5101_s11 = inlined_call_operand.hbm [shape: f32[1,16], index: 11, kind: input, shape index: {}]   ;;  %s5102_s12 = inlined_call_operand.vmem [shape: f32[16,16], index: 12, kind: input, shape index: {}]   ;;  %s5103_s13 = inlined_call_operand.hbm [shape: f32[1,16], index: 13, kind: input, shape index: {}]   ;;  %s5104_s14 = inlined_call_operand.vmem [shape: f32[1,16], index: 14, kind: input, shape index: {}]   ;;  %s5105_s15 = inlined_call_operand.hbm [shape: f32[1,16], index: 15, kind: input, shape index: {}]   ;;  %s5106_s16 = inlined_call_operand.hbm [shape: f32[16,32], index: 16, kind: input, shape index: {}]   ;;  %s5107_s17 = inlined_call_operand.hbm [shape: f32[1,32], index: 17, kind: input, shape index: {}]   ;;  %s5108_s18 = inlined_call_operand.vmem [shape: f32[32,64], index: 18, kind: input, shape index: {}]   ;;  %s5109_s19 = inlined_call_operand.hbm [shape: f32[1,64], index: 19, kind: input, shape index: {}]   ;;  %s5110_s20 = inlined_call_operand.hbm [shape: bf16[64,3840], index: 20, kind: input, shape index: {}]   ;;  %s5111_s21 = inlined_call_operand.vmem [shape: f32[1,3840], index: 21, kind: input, shape index: {}]   ;;  %s5112_s22 = inlined_call_operand.vmem [shape: f32[16,8], index: 22, kind: output, shape index: {0}]   ;;  %s5113_s23 = inlined_call_operand.hbm [shape: f32[8,16], index: 23, kind: output, shape index: {1}]   ;;  %s5114_s24 = inlined_call_operand.vmem [shape: f32[1,128], index: 24, kind: output, shape index: {2}]   ;;  %s5115_s25 = inlined_call_operand.vmem [shape: f32[1,3840], index: 25, kind: output, shape index: {3}]  }
   0x1   :  { %5118 = sst [smem:[#allocation39_spill]] %s5090_s0 }
   0x2   :  { %5119 = sst [smem:[#allocation40_spill]] %s5091_s1 }
   0x3   :  { %5120 = sst [smem:[#allocation41_spill]] %s5092_s2 }
   0x4   :  { %5121 = sst [smem:[#allocation42_spill]] %s5093_s3 }
   0x5   :  { %5122 = sst [smem:[#allocation43_spill]] %s5094_s4 }
   0x6   :  { %5123 = sst [smem:[#allocation44_spill]] %s5095_s5 }
   0x7   :  { %5124 = sst [smem:[#allocation45_spill]] %s5096_s6 }
   0x8   :  { %5125 = sst [smem:[#allocation46_spill]] %s5097_s7 }
   0x9   :  { %5126 = sst [smem:[#allocation47_spill]] %s5098_s8 }
   0xa   :  { %5127 = sst [smem:[#allocation48_spill]] %s5099_s9 }
   0xb   :  { %31 = vsyncpa [#allocation5], 0 }
   0xc   :  { %32 = vsyncpa [#allocation8], 0 }
   0xd   :  { %33 = vsyncpa [#allocation11], 0 }
   0xe   :  { %34 = vsyncpa [#allocation14], 0 }
   0xf   :  { %35 = vsyncpa [#allocation17], 0 }
  0x10   :  { %36 = vsyncpa [#allocation20], 0 }
  0x11   :  { %37 = vsyncpa [#allocation23], 0 }
  0x12   :  { %38 = vsyncpa [#allocation6], 0  ;;  %s4461_s29 = smov [#allocation7]   ;;  %s4462_s6 = smov [#allocation10]  }
  0x13   :  { %s61_s2 = sshll.u32 %s4461_s29, 4  ;;  %s81_s30 = sshll.u32 %s4462_s6, 4  ;;  %s62_s2 = int_to_ptr.vmem [resolvable:$true] %s61_s2  ;;  %s82_s30 = int_to_ptr.vmem [resolvable:$true] %s81_s30 }
  0x14   :  { %s4151_s7 = scalar_lea.vmem %s62_s2, 16  ;;  %s4155_s3 = scalar_lea.vmem %s62_s2, 32 }
  0x15   :  { %p4152_p0 = scmp.ne.s32.totalorder %s62_s2, %s4151_s7  ;;  %p4156_p1 = scmp.lt.s32.totalorder %s62_s2, %s62_s2 }
  0x16   :  { %p4157_p2 = scmp.lt.s32.totalorder %s4155_s3, %s4151_s7 }
  0x18   :  { %p4158_p3 = por %p4157_p2, %p4156_p1 }
  0x1a   :  { %p4159_p4 = pnand %p4158_p3, %p4152_p0 }
  0x1c   :  { %4162 = shalt.err (!%p4159_p4)
}
  0x1d   :  { %s5128_s8 = sld [smem:[#allocation43_spill]]  ;;  %s4171_s27 = scalar_lea.vmem %s82_s30, 16 }
  0x1e   :  { %p4172_p5 = scmp.ne.s32.totalorder %s82_s30, %s4171_s27  ;;  %s4175_s4 = scalar_lea.vmem %s82_s30, 32 }
  0x1f   :  { %p4176_p6 = scmp.lt.s32.totalorder %s82_s30, %s82_s30  ;;  %p4177_p7 = scmp.lt.s32.totalorder %s4175_s4, %s4171_s27 }
  0x21   :  { %p4178_p8 = por %p4177_p7, %p4176_p6 }
  0x23   :  { %64 = dma.hbm_to_vmem [thread:$0]  %s5128_s8, 16, %s62_s2, [#allocation8]  }
  0x24   :  { %p4179_p9 = pnand %p4178_p8, %p4172_p5 }
  0x26   :  { %4182 = shalt.err (!%p4179_p9)
}
  0x27   :  { %s5129_s5 = sld [smem:[#allocation45_spill]]  ;;  %s4463_s0 = smov [#allocation13]  }
  0x28   :  { %s101_s29 = sshll.u32 %s4463_s0, 4  ;;  %s4464_s6 = smov [#allocation16]   ;;  %s102_s29 = int_to_ptr.vmem [resolvable:$true] %s101_s29 }
  0x29   :  { %s123_s7 = sshll.u32 %s4464_s6, 4  ;;  %s4191_s3 = scalar_lea.vmem %s102_s29, 16  ;;  %s124_s7 = int_to_ptr.vmem [resolvable:$true] %s123_s7 }
  0x2a   :  { %p4192_p10 = scmp.ne.s32.totalorder %s102_s29, %s4191_s3  ;;  %s4195_s2 = scalar_lea.vmem %s102_s29, 32 }
  0x2b   :  { %p4196_p11 = scmp.lt.s32.totalorder %s102_s29, %s102_s29  ;;  %p4197_p12 = scmp.lt.s32.totalorder %s4195_s2, %s4191_s3 }
  0x2d   :  { %84 = dma.hbm_to_vmem [thread:$0]  %s5129_s5, 16, %s82_s30, [#allocation11]  }
  0x2e   :  { %p4198_p13 = por %p4197_p12, %p4196_p11 }
  0x30   :  { %p4199_p0 = pnand %p4198_p13, %p4192_p10 }
  0x32   :  { %4202 = shalt.err (!%p4199_p0)
}
  0x33   :  { %s5130_s8 = sld [smem:[#allocation47_spill]]  ;;  %s4211_s27 = scalar_lea.vmem %s124_s7, 16 }
  0x34   :  { %p4212_p1 = scmp.ne.s32.totalorder %s124_s7, %s4211_s27  ;;  %s4215_s30 = scalar_lea.vmem %s124_s7, 32 }
  0x35   :  { %p4216_p2 = scmp.lt.s32.totalorder %s124_s7, %s124_s7  ;;  %p4217_p3 = scmp.lt.s32.totalorder %s4215_s30, %s4211_s27 }
  0x37   :  { %p4218_p4 = por %p4217_p3, %p4216_p2 }
  0x39   :  { %104 = dma.hbm_to_vmem [thread:$0]  %s5130_s8, 16, %s102_s29, [#allocation14]  }
  0x3a   :  { %p4219_p5 = pnand %p4218_p4, %p4212_p1 }
  0x3c   :  { %4222 = shalt.err (!%p4219_p5)
}
  0x3d   :  { %126 = dma.hbm_to_vmem [thread:$0]  %s5101_s11, 16, %s124_s7, [#allocation17]  }
  0x3e   :  { %s4465_s9 = smov [#allocation19]   ;;  %s4466_s0 = smov [#allocation22]  }
  0x3f   :  { %s147_s5 = sshll.u32 %s4465_s9, 4  ;;  %s169_s6 = sshll.u32 %s4466_s0, 4  ;;  %s148_s5 = int_to_ptr.vmem [resolvable:$true] %s147_s5  ;;  %s170_s6 = int_to_ptr.vmem [resolvable:$true] %s169_s6 }
  0x40   :  { %s4231_s3 = scalar_lea.vmem %s148_s5, 16  ;;  %s4235_s29 = scalar_lea.vmem %s148_s5, 32 }
  0x41   :  { %p4232_p6 = scmp.ne.s32.totalorder %s148_s5, %s4231_s3  ;;  %p4236_p7 = scmp.lt.s32.totalorder %s148_s5, %s148_s5 }
  0x42   :  { %p4237_p8 = scmp.lt.s32.totalorder %s4235_s29, %s4231_s3 }
  0x44   :  { %p4238_p9 = por %p4237_p8, %p4236_p7 }
  0x46   :  { %p4239_p10 = pnand %p4238_p9, %p4232_p6 }
  0x48   :  { %4242 = shalt.err (!%p4239_p10)
}
  0x49   :  { %150 = dma.hbm_to_vmem [thread:$0]  %s5105_s15, 16, %s148_s5, [#allocation20]  }
  0x4a   :  { %s4251_s1 = scalar_lea.vmem %s170_s6, 16  ;;  %s4255_s11 = scalar_lea.vmem %s170_s6, 32 }
  0x4b   :  { %p4252_p11 = scmp.ne.s32.totalorder %s170_s6, %s4251_s1  ;;  %p4256_p12 = scmp.lt.s32.totalorder %s170_s6, %s170_s6 }
  0x4c   :  { %p4257_p13 = scmp.lt.s32.totalorder %s4255_s11, %s4251_s1 }
  0x4e   :  { %p4258_p0 = por %p4257_p13, %p4256_p12 }
  0x50   :  { %p4259_p1 = pnand %p4258_p0, %p4252_p11 }
  0x52   :  { %4262 = shalt.err (!%p4259_p1)
}
  0x53   :  { %172 = dma.hbm_to_vmem [thread:$0]  %s5107_s17, 16, %s170_s6, [#allocation23]  }
  0x54   :  { %s4467_s27 = smov [#allocation4]   ;;  %s4468_s4 = smov [#allocation9]  }
  0x55   :  { %s51_s30 = sshll.u32 %s4467_s27, 4  ;;  %s71_s28 = sshll.u32 %s4468_s4, 4  ;;  %s52_s30 = int_to_ptr.vmem [resolvable:$true] %s51_s30  ;;  %s72_s28 = int_to_ptr.vmem [resolvable:$true] %s71_s28 }
  0x56   :  { %s4271_s9 = scalar_lea.vmem %s52_s30, 64  ;;  %p4276_p3 = scmp.lt.s32.totalorder %s52_s30, %s52_s30 }
  0x57   :  { %p4272_p2 = scmp.ne.s32.totalorder %s52_s30, %s4271_s9  ;;  %p4277_p4 = scmp.lt.s32.totalorder %s4271_s9, %s4271_s9 }
  0x59   :  { %p4278_p5 = por %p4277_p4, %p4276_p3 }
  0x5b   :  { %p4279_p6 = pnand %p4278_p5, %p4272_p2 }
  0x5d   :  { %4282 = shalt.err (!%p4279_p6)
}
  0x5e   :  { %s5131_s0 = sld [smem:[#allocation42_spill]]  ;;  %s4291_s3 = scalar_lea.vmem %s72_s28, 128 }
  0x5f   :  { %p4292_p7 = scmp.ne.s32.totalorder %s72_s28, %s4291_s3  ;;  %p4296_p8 = scmp.lt.s32.totalorder %s72_s28, %s72_s28 }
  0x60   :  { %p4297_p9 = scmp.lt.s32.totalorder %s4291_s3, %s4291_s3 }
  0x62   :  { %p4298_p10 = por %p4297_p9, %p4296_p8 }
  0x64   :  { %54 = dma.hbm_to_vmem [thread:$0]  %s5131_s0, 64, %s52_s30, [#allocation5]  }
  0x65   :  { %p4299_p11 = pnand %p4298_p10, %p4292_p7 }
  0x67   :  { %4302 = shalt.err (!%p4299_p11)
}
  0x68   :  { %s5132_s29 = sld [smem:[#allocation44_spill]]  ;;  %s4469_s2 = smov [#allocation12]  }
  0x69   :  { %s91_s26 = sshll.u32 %s4469_s2, 4  ;;  %s4470_s1 = smov [#allocation15]   ;;  %s92_s26 = int_to_ptr.vmem [resolvable:$true] %s91_s26 }
  0x6a   :  { %s113_s11 = sshll.u32 %s4470_s1, 4  ;;  %s4311_s7 = scalar_lea.vmem %s92_s26, 16  ;;  %s114_s11 = int_to_ptr.vmem [resolvable:$true] %s113_s11 }
  0x6b   :  { %p4312_p12 = scmp.ne.s32.totalorder %s92_s26, %s4311_s7  ;;  %s4315_s8 = scalar_lea.vmem %s92_s26, 32 }
  0x6c   :  { %p4316_p13 = scmp.lt.s32.totalorder %s92_s26, %s92_s26  ;;  %p4317_p0 = scmp.lt.s32.totalorder %s4315_s8, %s4311_s7 }
  0x6e   :  { %74 = dma.hbm_to_vmem [thread:$0]  %s5132_s29, 128, %s72_s28, [#allocation8]  }
  0x6f   :  { %p4318_p1 = por %p4317_p0, %p4316_p13 }
  0x71   :  { %p4319_p2 = pnand %p4318_p1, %p4312_p12 }
  0x73   :  { %4322 = shalt.err (!%p4319_p2)
}
  0x74   :  { %s5133_s4 = sld [smem:[#allocation46_spill]]  ;;  %s4331_s9 = scalar_lea.vmem %s114_s11, 128 }
  0x75   :  { %p4332_p3 = scmp.ne.s32.totalorder %s114_s11, %s4331_s9  ;;  %p4336_p4 = scmp.lt.s32.totalorder %s114_s11, %s114_s11 }
  0x76   :  { %p4337_p5 = scmp.lt.s32.totalorder %s4331_s9, %s4331_s9 }
  0x78   :  { %p4338_p6 = por %p4337_p5, %p4336_p4 }
  0x7a   :  { %94 = dma.hbm_to_vmem [thread:$0]  %s5133_s4, 16, %s92_s26, [#allocation11]  }
  0x7b   :  { %p4339_p7 = pnand %p4338_p6, %p4332_p3 }
  0x7d   :  { %4342 = shalt.err (!%p4339_p7)
}
  0x7e   :  { %116 = dma.hbm_to_vmem [thread:$0]  %s5100_s10, 128, %s114_s11, [#allocation14]  }
  0x7f   :  { %s4471_s5 = smov [#allocation18]   ;;  %s4472_s3 = smov [#allocation21]  }
  0x80   :  { %s135_s0 = sshll.u32 %s4471_s5, 4  ;;  %s156_s17 = sshll.u32 %s4472_s3, 4  ;;  %s136_s0 = int_to_ptr.vmem [resolvable:$true] %s135_s0  ;;  %s157_s17 = int_to_ptr.vmem [resolvable:$true] %s156_s17 }
  0x81   :  { %s4351_s6 = scalar_lea.vmem %s136_s0, 16  ;;  %s4355_s29 = scalar_lea.vmem %s136_s0, 32 }
  0x82   :  { %p4352_p8 = scmp.ne.s32.totalorder %s136_s0, %s4351_s6  ;;  %p4356_p9 = scmp.lt.s32.totalorder %s136_s0, %s136_s0 }
  0x83   :  { %p4357_p10 = scmp.lt.s32.totalorder %s4355_s29, %s4351_s6 }
  0x85   :  { %p4358_p11 = por %p4357_p10, %p4356_p9 }
  0x87   :  { %p4359_p12 = pnand %p4358_p11, %p4352_p8 }
  0x89   :  { %4362 = shalt.err (!%p4359_p12)
}
  0x8a   :  { %138 = dma.hbm_to_vmem [thread:$0]  %s5103_s13, 16, %s136_s0, [#allocation17]  }
  0x8b   :  { %s4371_s1 = scalar_lea.vmem %s157_s17, 256  ;;  %p4376_p0 = scmp.lt.s32.totalorder %s157_s17, %s157_s17 }
  0x8c   :  { %p4372_p13 = scmp.ne.s32.totalorder %s157_s17, %s4371_s1  ;;  %p4377_p1 = scmp.lt.s32.totalorder %s4371_s1, %s4371_s1 }
  0x8e   :  { %p4378_p2 = por %p4377_p1, %p4376_p0 }
  0x90   :  { %p4379_p3 = pnand %p4378_p2, %p4372_p13 }
  0x92   :  { %4382 = shalt.err (!%p4379_p3)
}
  0x93   :  { %s4473_s10 = smov 128   ;;  %s4474_s11 = smov 8  }
  0x94   :  { %162 = dma.hbm_to_vmem [thread:$0]  %s5106_s16, 256, %s157_s17, [#allocation20], %s4473_s10, %s4473_s10, %s4474_s11  }
  0x95   :  { %s4475_s27 = smov [#allocation24]  }
  0x96   :  { %s181_s30 = sshll.u32 %s4475_s27, 4  ;;  %s182_s30 = int_to_ptr.vmem [resolvable:$true] %s181_s30 }
  0x97   :  { %s4391_s4 = scalar_lea.vmem %s182_s30, 16  ;;  %s4395_s9 = scalar_lea.vmem %s182_s30, 32 }
  0x98   :  { %p4392_p4 = scmp.ne.s32.totalorder %s182_s30, %s4391_s4  ;;  %p4396_p5 = scmp.lt.s32.totalorder %s182_s30, %s182_s30 }
  0x99   :  { %p4397_p6 = scmp.lt.s32.totalorder %s4395_s9, %s4391_s4 }
  0x9b   :  { %p4398_p7 = por %p4397_p6, %p4396_p5 }
  0x9d   :  { %p4399_p8 = pnand %p4398_p7, %p4392_p4 }
  0x9f   :  { %4402 = shalt.err (!%p4399_p8)
}
  0xa0   :  { %184 = dma.hbm_to_vmem [thread:$0]  %s5109_s19, 16, %s182_s30, [#allocation23]  }
  0xa1   :  { %4443 = dma.done.wait [#allocation5], 64  }
  0xa2   :  { %4444 = vsyncadd [#allocation5], 4294967232 }
  0xa3   :  { %4445 = dma.done.wait [#allocation8], 144  }
  0xa4   :  { %4446 = vsyncadd [#allocation8], 4294967152 }
  0xa5   :  { %4447 = dma.done.wait [#allocation11], 32  }
  0xa6   :  { %4448 = vsyncadd [#allocation11], 4294967264 }
  0xa7   :  { %4449 = dma.done.wait [#allocation14], 144  }
  0xa8   :  { %4450 = vsyncadd [#allocation14], 4294967152 }
  0xa9   :  { %4451 = dma.done.wait [#allocation17], 32  }
  0xaa   :  { %4452 = vsyncadd [#allocation17], 4294967264 }
  0xab   :  { %4453 = dma.done.wait [#allocation20], 272  }
  0xac   :  { %4454 = vsyncadd [#allocation20], 4294967024 }
  0xad   :  { %4455 = dma.done.wait [#allocation23], 32  }
  0xae   :  { %4456 = vsyncadd [#allocation23], 4294967264  ;;  %v4476_v0 = vmov 0   ;;  %vm385_vm0 = vcmask 1043456   ;;  %v366_v1 = vld [vmem:[#allocation4] sm:$0xf]  ;;  %v238_v6 = vlaneseq }
  0xaf   :  { %3944 = vset.pattern.permute.xlu1 %v4476_v0  ;;  %3943 = vset.pattern.permute.xlu0 %v4476_v0  ;;  %s5134_s15 = sld [smem:[#allocation40_spill]]  ;;  %vm378_vm1 = vcmask 31744   ;;  %v4477_v11 = vmov 0.0   ;;  %vm282_vm3 = vcmask 261120   ;;  %v4478_v16 = vmov 1.0   ;;  %v368_v19 = vld [vmem:[#allocation9] sm:$0xff] }
  0xb0   :  { %3847 = vmatprep.subr.msk.mxu1 %vm385_vm0, %v366_v1  ;;  %s5135_s6 = sld [smem:[#allocation41_spill]]  ;;  %v4674_v9 = vshrl.u32 %v238_v6, 7  ;;  %1802 = vst [vmem:[%s5114_s24] sm:$0x1] %v4477_v11  ;;  %v4687_v13 = vand.u32 127, %v238_v6  ;;  %v3594_v22 = vld [vmem:[#allocation7] ss:$0 sm:$0xff] }
  0xb1   :  { %3848 = vmatpush3.msk.msra.mxu1 %vm385_vm0, %v366_v1  ;;  %s5136_s27 = sld [smem:[#allocation39_spill]]  ;;  %vm466_vm9 = vcmask 64512   ;;  %vm506_vm12 = vcmask 130048   ;;  %vm4479_vm15 = vmmov 0   ;;  %s4480_s30 = smov [#allocation2]  }
  0xb2   :  { %v4691_v17 = vadd.s32 8, %v4674_v9  ;;  %3852 = vmatprep.subr.mxu1 %v368_v19  ;;  %vm496_vm11 = vcmp.eq.s32.totalorder %v4674_v9, %v4687_v13  ;;  %s5137_s28 = sld [smem:[#allocation48_spill]]  ;;  %s234_s4 = sshll.u32 %s4480_s30, 4  ;;  %s235_s4 = int_to_ptr.vmem [resolvable:$true] %s234_s4 }
  0xb3   :  { %v3598_v58 = vsel %vm496_vm11, 1.0, %v4477_v11  ;;  %s4411_s9 = scalar_lea.vmem %s235_s4, 15360  ;;  %p4416_p10 = scmp.lt.s32.totalorder %s235_s4, %s235_s4 }
  0xb4   :  { %vm497_vm10 = vcmp.eq.s32.totalorder %v4691_v17, %v4687_v13  ;;  %v4712_v60 = vmul.f32 2.0, %v3598_v58  ;;  %p4412_p9 = scmp.ne.s32.totalorder %s235_s4, %s4411_s9  ;;  %p4417_p11 = scmp.lt.s32.totalorder %s4411_s9, %s4411_s9 }
  0xb5   :  { %v257_v2 = vld [vmem:[%s5134_s15 + $0x18] sm:$0xff]  ;;  %v255_v3 = vld [vmem:[%s5134_s15 + $0x8] sm:$0xff]  ;;  %v256_v7 = vld [vmem:[%s5134_s15 + $0x10] sm:$0xff]  ;;  %v3599_v57 = vsel %vm497_vm10, 1.0, %v4477_v11 }
  0xb6   :  { %268 = vperm.xlu0 %3943, %v257_v2   ;;  %v364_v4 = vld [vmem:[%s5135_s6] sm:$0xff]  ;;  %v365_v5 = vld [vmem:[%s5135_s6 + $0x8] sm:$0xff]  ;;  %262 = vperm.xlu1 %3944, %v255_v3   ;;  %v503_v59 = vmul.f32 2.0, %v3599_v57  ;;  %p4418_p12 = por %p4417_p11, %p4416_p10 }
  0xb7   :  { %3849 = vmatprep.mubr.msk.f32.mxu1 %vm378_vm1, %v364_v4  ;;  %v254_v8 = vld [vmem:[%s5134_s15] sm:$0xff] }
  0xb8   :  { %3850 = vmatmul.mubr.msk.f32.vlgmr.msra.gmra.mxu1 %vm378_vm1, %v365_v5  ;;  %v3581_v10 = vld [vmem:[%s5136_s27] ss:$0 sm:$0xff]  ;;  %p4419_p13 = pnand %p4418_p12, %p4412_p9 }
  0xb9   :  { %vm246_vm2 = vcmp.eq.s32.totalorder %v4674_v9, %v3581_v10  ;;  %vm247_vm6 = vcmp.eq.s32.totalorder %v4691_v17, %v3581_v10  ;;  %3853 = vmatpush3.msra.mxu1 %v368_v19 }
  0xba   :  { %265 = vperm.xlu0 %3943, %v256_v7   ;;  %259 = vperm.xlu1 %3944, %v254_v8   ;;  %v3582_v12 = vsel %vm246_vm2, 1.0, %v4477_v11  ;;  %v3583_v21 = vsel %vm247_vm6, 1.0, %v4477_v11  ;;  %v3600_v8 = vld [vmem:[#allocation10] ss:$0 sm:$0xff] }
  0xbb   :  { %3844 = vmatprep.mubr.msk.f32.mxu0 %vm282_vm3, %v3582_v12 }
 0x131   :  { %v269_v14 = vpop.permute.xlu0 %268  ;;  %v263_v15 = vpop.permute.xlu1 %262 }
 0x132   :  { %vm273_vm4 = vcmp.eq.s32.totalorder %v4687_v13, %v269_v14  ;;  %vm271_vm7 = vcmp.eq.s32.totalorder %v4687_v13, %v263_v15 }
 0x133   :  { %3836 = vmatprep.subr.msk.mxu0 %vm273_vm4, %v4478_v16 }
 0x134   :  { %3837 = vmatpush3.msk.msra.mxu0 %vm273_vm4, %v4478_v16 }
 0x135   :  { %v266_v18 = vpop.permute.xlu0 %265  ;;  %v260_v20 = vpop.permute.xlu1 %259 }
 0x136   :  { %vm272_vm5 = vcmp.eq.s32.totalorder %v4687_v13, %v266_v18  ;;  %vm270_vm8 = vcmp.eq.s32.totalorder %v4687_v13, %v260_v20 }
 0x137   :  { %3838 = vmatprep.subr.msk.mxu0 %vm272_vm5, %v4478_v16 }
 0x138   :  { %3839 = vmatpush3.msk.msra.mxu0 %vm272_vm5, %v4478_v16 }
 0x139   :  { %3840 = vmatprep.subr.msk.mxu0 %vm271_vm7, %v4478_v16 }
 0x13a   :  { %3841 = vmatpush3.msk.msra.mxu0 %vm271_vm7, %v4478_v16 }
 0x13b   :  { %3842 = vmatprep.subr.msk.mxu0 %vm270_vm8, %v4478_v16 }
 0x13c   :  { %3843 = vmatpush3.msk.msra.mxu0 %vm270_vm8, %v4478_v16 }
 0x13d   :  { %3845 = vmatmul.mubr.msk.f32.vlgmr.msra.gmra.mxu0 %vm282_vm3, %v3583_v21  ;;  %3878 = vmatprep.subr.mxu0 %v4477_v11 }
 0x13e   :  { %3880 = vmatprep.mubr.msk.f32.mxu0 %vm4479_vm15, %v4477_v11 }
 0x178   :  { %v3851_v23 = vpop.f32.mrf.mxu1 }
 0x179   :  { %v461_v24 = vadd.f32 %v3851_v23, %v3594_v22 }
 0x17a   :  { %v455_v25 = vpop.f32.mrf.mxu1 }
 0x17b   :  { %v465_v26 = vmax.f32 %v461_v24, 0.0  ;;  %v456_v27 = vadd.f32 %v3594_v22, %v455_v25 }
 0x17d   :  { %v468_v28 = vsel %vm466_vm9, %v465_v26, 0.0  ;;  %v464_v29 = vmax.f32 %v456_v27, 0.0 }
 0x17f   :  { %v467_v30 = vsel %vm466_vm9, %v464_v29, 0.0 }
 0x180   :  { %v469_v31 = vadd.f32 %v468_v28, %v467_v30 }
 0x182   :  { %v470_v32 = vrot.slane %v469_v31, 4 }
 0x184   :  { %v471_v33 = vadd.f32 %v470_v32, %v469_v31 }
 0x186   :  { %v472_v34 = vrot.slane %v471_v33, 2 }
 0x188   :  { %v473_v35 = vadd.f32 %v472_v34, %v471_v33 }
 0x18a   :  { %v474_v36 = vrot.slane %v473_v35, 1 }
 0x18c   :  { %v475_v37 = vadd.f32 %v474_v36, %v473_v35 }
 0x18e   :  { %v477_v38 = vmul.f32 0.0625, %v475_v37 }
 0x190   :  { %v478_v39 = vsub.f32 %v464_v29, %v477_v38  ;;  %v479_v40 = vsub.f32 %v465_v26, %v477_v38 }
 0x192   :  { %v480_v41 = vmul.f32 %v478_v39, %v478_v39  ;;  %v481_v42 = vmul.f32 %v479_v40, %v479_v40 }
 0x194   :  { %v482_v43 = vsel %vm466_vm9, %v480_v41, 0.0  ;;  %v483_v44 = vsel %vm466_vm9, %v481_v42, 0.0 }
 0x195   :  { %v484_v45 = vadd.f32 %v483_v44, %v482_v43 }
 0x197   :  { %v485_v46 = vrot.slane %v484_v45, 4 }
 0x199   :  { %v486_v47 = vadd.f32 %v485_v46, %v484_v45 }
 0x19b   :  { %v487_v48 = vrot.slane %v486_v47, 2 }
 0x19d   :  { %v488_v49 = vadd.f32 %v487_v48, %v486_v47 }
 0x19f   :  { %v489_v50 = vrot.slane %v488_v49, 1 }
 0x1a1   :  { %v490_v51 = vadd.f32 %v489_v50, %v488_v49 }
 0x1a3   :  { %v491_v52 = vmul.f32 0.0625, %v490_v51 }
 0x1a5   :  { %v492_v53 = vadd.f32 1e-05, %v491_v52  ;;  %v3605_v52 = vld [vmem:[#allocation12] ss:$0 sm:$0xff] }
 0x1a7   :  { %3945 = vrsqrt.f32 %v492_v53 }
 0x1b4   :  { %v3946_v54 = vpop.eup %3945 }
 0x1b5   :  { %v494_v55 = vmul.f32 %v3946_v54, %v478_v39  ;;  %v495_v56 = vmul.f32 %v3946_v54, %v479_v40 }
 0x1b7   :  { %3854 = vmatprep.mubr.msk.f32.mxu1 %vm466_vm9, %v494_v55  ;;  %v3606_v55 = vld [vmem:[#allocation13] ss:$0 sm:$0xff] }
 0x1b8   :  { %3855 = vmatmul.mubr.msk.f32.vlgmr.msra.gmra.mxu1 %vm466_vm9, %v495_v56 }
 0x1fd   :  { %v4714_v61 = vpop.f32.mrf.mxu0 }
 0x1fe   :  { %v505_v62 = vadd.f32 %v4714_v61, %v503_v59 }
 0x1ff   :  { %v4717_v63 = vpop.f32.mrf.mxu0 }
 0x200   :  { %v504_v1 = vadd.f32 %v4712_v60, %v4717_v63  ;;  %v510_v2 = vsel %vm506_vm12, %v505_v62, 0.0 }
 0x201   :  { %511 = vadd.xlane.f32.xlu0 %v510_v2 }
 0x202   :  { %3861 = vmatprep.mubr.msk.f32.mxu1 %vm506_vm12, %v504_v1  ;;  %v507_v3 = vsel %vm506_vm12, %v504_v1, 0.0 }
 0x203   :  { %508 = vadd.xlane.f32.xlu1 %v507_v3 }
 0x278   :  { %v3856_v7 = vpop.f32.mrf.mxu1 }
 0x279   :  { %v603_v14 = vadd.f32 %v3856_v7, %v3600_v8 }
 0x27a   :  { %v597_v10 = vpop.f32.mrf.mxu1 }
 0x27b   :  { %v598_v18 = vadd.f32 %v3600_v8, %v597_v10 }
 0x28a   :  { %v512_v4 = vpop.xlane.xlu0 %511 }
 0x28b   :  { %3947 = vrsqrt.f32 %v512_v4  ;;  %vm514_vm13 = vcmp.gt.f32.partialorder %v512_v4, 0.0 }
 0x28c   :  { %v509_v5 = vpop.xlane.xlu1 %508 }
 0x28d   :  { %3949 = vrsqrt.f32 %v509_v5  ;;  %vm513_vm14 = vcmp.gt.f32.partialorder %v509_v5, 0.0 }
 0x298   :  { %v3948_v12 = vpop.eup %3947 }
 0x299   :  { %v518_v15 = vsel %vm514_vm13, %v3948_v12, 0.0 }
 0x29a   :  { %v3950_v16 = vpop.eup %3949  ;;  %v607_v19 = vmul.f32 %v603_v14, %v518_v15 }
 0x29b   :  { %v517_v20 = vsel %vm513_vm14, %v3950_v16, 0.0 }
 0x29c   :  { %v606_v21 = vmul.f32 %v598_v18, %v517_v20  ;;  %3857 = vmatprep.subr.mxu1 %v607_v19  ;;  %v4750_v18 = vcvt.s32.f32 %v4674_v9 }
 0x29d   :  { %3858 = vmatpush3.msra.mxu1 %v607_v19 }
 0x29e   :  { %3859 = vmatprep.subr.mxu1 %v606_v21  ;;  %vm786_vm0 = vcmp.eq.f32.partialorder %v4750_v18, 0.0  ;;  %vm831_vm8 = vcmp.eq.f32.partialorder %v4750_v18, 1.0 }
 0x29f   :  { %3860 = vmatpush3.msra.mxu1 %v606_v21 }
 0x2a0   :  { %3862 = vmatmul.mubr.msk.f32.vlgmr.msra.gmra.mxu1 %vm506_vm12, %v505_v62  ;;  %3864 = vmatprep.subr.mxu1 %v4477_v11  ;;  %v3607_v62 = vld [vmem:[%s5137_s28] ss:$0 sm:$0xff] }
 0x2a1   :  { %3868 = vmatprep.mubr.msk.f32.mxu1 %vm4479_vm15, %v4477_v11 }
 0x360   :  { %v3863_v22 = vpop.f32.mrf.mxu1 }
 0x361   :  { %v690_v23 = vmul.f32 %v3863_v22, %v518_v15 }
 0x362   :  { %v680_v24 = vpop.f32.mrf.mxu1 }
 0x363   :  { %v689_v25 = vmul.f32 %v680_v24, %v517_v20  ;;  %v692_v26 = vsel %vm466_vm9, %v690_v23, 0.0  ;;  %v3611_v24 = vsel %vm786_vm0, 1.0, %v4477_v11 }
 0x365   :  { %v691_v27 = vsel %vm466_vm9, %v689_v25, 0.0 }
 0x366   :  { %v693_v28 = vadd.f32 %v692_v26, %v691_v27 }
 0x368   :  { %v694_v29 = vrot.slane %v693_v28, 4 }
 0x36a   :  { %v695_v30 = vadd.f32 %v694_v29, %v693_v28 }
 0x36c   :  { %v696_v31 = vrot.slane %v695_v30, 2 }
 0x36e   :  { %v697_v32 = vadd.f32 %v696_v31, %v695_v30 }
 0x370   :  { %v698_v33 = vrot.slane %v697_v32, 1 }
 0x372   :  { %v699_v34 = vadd.f32 %v698_v33, %v697_v32 }
 0x374   :  { %v700_v35 = vmul.f32 0.0625, %v699_v34 }
 0x376   :  { %v701_v36 = vsub.f32 %v689_v25, %v700_v35  ;;  %v702_v37 = vsub.f32 %v690_v23, %v700_v35  ;;  %v4754_v23 = vcvt.s32.f32 %v4691_v17 }
 0x378   :  { %v703_v38 = vmul.f32 %v701_v36, %v701_v36  ;;  %v704_v39 = vmul.f32 %v702_v37, %v702_v37 }
 0x37a   :  { %v705_v40 = vsel %vm466_vm9, %v703_v38, 0.0  ;;  %v706_v41 = vsel %vm466_vm9, %v704_v39, 0.0 }
 0x37b   :  { %v707_v42 = vadd.f32 %v706_v41, %v705_v40 }
 0x37d   :  { %v708_v43 = vrot.slane %v707_v42, 4 }
 0x37f   :  { %v709_v44 = vadd.f32 %v708_v43, %v707_v42 }
 0x381   :  { %v710_v45 = vrot.slane %v709_v44, 2 }
 0x383   :  { %v711_v46 = vadd.f32 %v710_v45, %v709_v44  ;;  %v3616_v45 = vsel %vm831_vm8, 1.0, %v4477_v11 }
 0x385   :  { %v712_v47 = vrot.slane %v711_v46, 1 }
 0x387   :  { %v713_v48 = vadd.f32 %v712_v47, %v711_v46 }
 0x389   :  { %v714_v49 = vmul.f32 0.0625, %v713_v48 }
 0x38b   :  { %v715_v50 = vadd.f32 1e-05, %v714_v49 }
 0x38d   :  { %3951 = vrsqrt.f32 %v715_v50 }
 0x39a   :  { %v3952_v51 = vpop.eup %3951 }
 0x39b   :  { %v717_v53 = vmul.f32 %v3952_v51, %v701_v36  ;;  %v718_v54 = vmul.f32 %v3952_v51, %v702_v37 }
 0x39d   :  { %v725_v56 = vmul.f32 %v3605_v52, %v717_v53  ;;  %v726_v57 = vmul.f32 %v3605_v52, %v718_v54  ;;  %v4768_v53 = vcvt.s32.f32 %v4687_v13 }
 0x39f   :  { %v734_v58 = vadd.f32 %v3606_v55, %v726_v57  ;;  %v733_v59 = vadd.f32 %v3606_v55, %v725_v56  ;;  %vm791_vm14 = vcmp.eq.f32.partialorder %v4768_v53, 0.0  ;;  %vm836_vm0 = vcmp.eq.f32.partialorder %v4768_v53, 1.0 }
 0x3a1   :  { %v736_v1 = vmax.f32 %v734_v58, 0.0  ;;  %v735_v2 = vmax.f32 %v733_v59, 0.0 }
 0x3a3   :  { %738 = vst.msk [vmem:[%s5112_s22 + $0x8] sm:$0xff] %vm466_vm9, %v736_v1  ;;  %3865 = vmatpush3.msra.mxu1 %v736_v1  ;;  %737 = vst.msk [vmem:[%s5112_s22] sm:$0xff] %vm466_vm9, %v735_v2  ;;  %v746_v3 = vmul.f32 %v3607_v62, %v735_v2  ;;  %v747_v5 = vmul.f32 %v3607_v62, %v736_v1  ;;  %v3612_v62 = vsel %vm791_vm14, 1.0, %v4477_v11  ;;  %v3617_v1 = vsel %vm836_vm0, 1.0, %v4477_v11 }
 0x3a4   :  { %3866 = vmatprep.subr.mxu1 %v4477_v11 }
 0x3a5   :  { %3867 = vmatpush3.msra.mxu1 %v735_v2  ;;  %v748_v4 = vsel %vm466_vm9, %v746_v3, 0.0  ;;  %v751_v7 = vsel %vm466_vm9, %v747_v5, 0.0 }
 0x3a6   :  { %749 = vadd.xlane.f32.xlu0 %v748_v4  ;;  %3871 = vmatprep.subr.mxu1 %v4477_v11 }
 0x3aa   :  { %752 = vadd.xlane.f32.xlu0 %v751_v7 }
 0x42f   :  { %v750_v8 = vpop.xlane.xlu0 %749 }
 0x430   :  { %3953 = vtanh.f32 %v750_v8 }
 0x433   :  { %v753_v10 = vpop.xlane.xlu0 %752 }
 0x434   :  { %3955 = vtanh.f32 %v753_v10 }
 0x43d   :  { %v3954_v12 = vpop.eup %3953 }
 0x441   :  { %v3956_v14 = vpop.eup %3955 }
 0x442   :  { %v759_v15 = vmax.f32 %v3954_v12, %v3956_v14 }
 0x444   :  { %v760_v16 = vrot.slane %v759_v15, 4 }
 0x446   :  { %v761_v19 = vmax.f32 %v759_v15, %v760_v16 }
 0x448   :  { %v762_v20 = vrot.slane %v761_v19, 2 }
 0x44a   :  { %v763_v21 = vmax.f32 %v761_v19, %v762_v20 }
 0x44c   :  { %v764_v22 = vrot.slane %v763_v21, 1 }
 0x44e   :  { %v765_v25 = vmax.f32 %v763_v21, %v764_v22 }
 0x450   :  { %vm766_vm1 = vcmp.ge.f32.partialorder %v3954_v12, %v765_v25  ;;  %vm767_vm2 = vcmp.ge.f32.partialorder %v3956_v14, %v765_v25  ;;  %v798_v26 = vmul.f32 %v3611_v24, %v765_v25 }
 0x451   :  { %v768_v27 = vsel %vm766_vm1, %v4750_v18, 16.0  ;;  %v769_v28 = vsel %vm767_vm2, %v4754_v23, 16.0 }
 0x452   :  { %v770_v29 = vmin.f32 %v768_v27, %v769_v28 }
 0x454   :  { %v771_v30 = vrot.slane %v770_v29, 4 }
 0x456   :  { %v772_v31 = vmin.f32 %v770_v29, %v771_v30 }
 0x458   :  { %v773_v32 = vrot.slane %v772_v31, 2 }
 0x45a   :  { %v774_v33 = vmin.f32 %v772_v31, %v773_v32 }
 0x45c   :  { %v775_v34 = vrot.slane %v774_v33, 1 }
 0x45e   :  { %v776_v35 = vmin.f32 %v774_v33, %v775_v34 }
 0x460   :  { %vm777_vm4 = vcmp.eq.f32.partialorder %v4750_v18, %v776_v35  ;;  %vm778_vm5 = vcmp.eq.f32.partialorder %v4754_v23, %v776_v35  ;;  %vm783_vm13 = vcmp.eq.f32.partialorder %v4768_v53, %v776_v35 }
 0x461   :  { %v3608_v17 = vsel %vm777_vm4, 1.0, %v4477_v11  ;;  %v3609_v36 = vsel %vm778_vm5, 1.0, %v4477_v11  ;;  %v3610_v58 = vsel %vm783_vm13, 1.0, %v4477_v11 }
 0x462   :  { %vm800_vm6 = vcmp.gt.f32.partialorder %v3608_v17, 0.5  ;;  %vm801_vm7 = vcmp.gt.f32.partialorder %v3609_v36, 0.5  ;;  %v789_v2 = vmul.f32 %v3611_v24, %v3610_v58  ;;  %v795_v5 = vmul.f32 %v3612_v62, %v3609_v36 }
 0x463   :  { %v802_v37 = vsel %vm800_vm6, -1e+30, %v3954_v12  ;;  %v803_v38 = vsel %vm801_vm7, -1e+30, %v3956_v14  ;;  %v794_v14 = vmul.f32 %v3612_v62, %v3608_v17  ;;  %vm876_vm7 = vcmp.eq.f32.partialorder %v4750_v18, 2.0 }
 0x464   :  { %v804_v39 = vmax.f32 %v802_v37, %v803_v38  ;;  %v3621_v28 = vsel %vm876_vm7, 1.0, %v4477_v11  ;;  %vm926_vm7 = vcmp.eq.f32.partialorder %v4768_v53, 3.0 }
 0x466   :  { %v805_v40 = vrot.slane %v804_v39, 4 }
 0x468   :  { %v806_v41 = vmax.f32 %v804_v39, %v805_v40 }
 0x46a   :  { %v807_v42 = vrot.slane %v806_v41, 2 }
 0x46c   :  { %v808_v43 = vmax.f32 %v806_v41, %v807_v42 }
 0x46e   :  { %v809_v44 = vrot.slane %v808_v43, 1 }
 0x470   :  { %v810_v46 = vmax.f32 %v808_v43, %v809_v44 }
 0x472   :  { %vm811_vm10 = vcmp.ge.f32.partialorder %v802_v37, %v810_v46  ;;  %vm812_vm11 = vcmp.ge.f32.partialorder %v803_v38, %v810_v46  ;;  %v843_v47 = vmul.f32 %v3616_v45, %v810_v46 }
 0x473   :  { %v813_v48 = vsel %vm811_vm10, %v4750_v18, 16.0  ;;  %v814_v49 = vsel %vm812_vm11, %v4754_v23, 16.0  ;;  %vm881_vm11 = vcmp.eq.f32.partialorder %v4768_v53, 2.0 }
 0x474   :  { %v815_v50 = vmin.f32 %v813_v48, %v814_v49  ;;  %v844_v51 = vadd.f32 %v843_v47, %v798_v26  ;;  %v3622_v40 = vsel %vm881_vm11, 1.0, %v4477_v11 }
 0x476   :  { %v816_v52 = vrot.slane %v815_v50, 4 }
 0x478   :  { %v817_v54 = vmin.f32 %v815_v50, %v816_v52 }
 0x47a   :  { %v818_v55 = vrot.slane %v817_v54, 2 }
 0x47c   :  { %v819_v56 = vmin.f32 %v817_v54, %v818_v55 }
 0x47e   :  { %v820_v57 = vrot.slane %v819_v56, 1 }
 0x480   :  { %v821_v59 = vmin.f32 %v819_v56, %v820_v57 }
 0x482   :  { %vm822_vm1 = vcmp.eq.f32.partialorder %v4750_v18, %v821_v59  ;;  %vm823_vm2 = vcmp.eq.f32.partialorder %v4754_v23, %v821_v59  ;;  %vm828_vm4 = vcmp.eq.f32.partialorder %v4768_v53, %v821_v59 }
 0x483   :  { %v3613_v13 = vsel %vm822_vm1, 1.0, %v4477_v11  ;;  %v3614_v3 = vsel %vm823_vm2, 1.0, %v4477_v11  ;;  %v3615_v4 = vsel %vm828_vm4, 1.0, %v4477_v11  ;;  %vm921_vm4 = vcmp.eq.f32.partialorder %v4750_v18, 3.0 }
 0x484   :  { %v834_v7 = vmul.f32 %v3616_v45, %v3615_v4  ;;  %vm845_vm5 = vcmp.gt.f32.partialorder %v3613_v13, 0.5  ;;  %vm846_vm6 = vcmp.gt.f32.partialorder %v3614_v3, 0.5  ;;  %v840_v8 = vmul.f32 %v3617_v1, %v3614_v3 }
 0x485   :  { %v847_v10 = vsel %vm845_vm5, -1e+30, %v802_v37  ;;  %v848_v12 = vsel %vm846_vm6, -1e+30, %v803_v38  ;;  %v839_v15 = vmul.f32 %v3617_v1, %v3613_v13  ;;  %v3626_v59 = vsel %vm921_vm4, 1.0, %v4477_v11 }
 0x486   :  { %v835_v16 = vadd.f32 %v834_v7, %v789_v2  ;;  %v849_v19 = vmax.f32 %v847_v10, %v848_v12  ;;  %v842_v20 = vadd.f32 %v840_v8, %v795_v5  ;;  %vm971_vm4 = vcmp.eq.f32.partialorder %v4768_v53, 4.0 }
 0x487   :  { %v841_v21 = vadd.f32 %v839_v15, %v794_v14  ;;  %v3627_v15 = vsel %vm926_vm7, 1.0, %v4477_v11 }
 0x488   :  { %v850_v22 = vrot.slane %v849_v19, 4 }
 0x48a   :  { %v851_v24 = vmax.f32 %v849_v19, %v850_v22 }
 0x48c   :  { %v852_v25 = vrot.slane %v851_v24, 2 }
 0x48e   :  { %v853_v26 = vmax.f32 %v851_v24, %v852_v25 }
 0x490   :  { %v854_v27 = vrot.slane %v853_v26, 1 }
 0x492   :  { %v855_v29 = vmax.f32 %v853_v26, %v854_v27 }
 0x494   :  { %vm856_vm8 = vcmp.ge.f32.partialorder %v847_v10, %v855_v29  ;;  %vm857_vm10 = vcmp.ge.f32.partialorder %v848_v12, %v855_v29  ;;  %v888_v30 = vmul.f32 %v3621_v28, %v855_v29 }
 0x495   :  { %v858_v31 = vsel %vm856_vm8, %v4750_v18, 16.0  ;;  %v859_v32 = vsel %vm857_vm10, %v4754_v23, 16.0 }
 0x496   :  { %v860_v33 = vmin.f32 %v858_v31, %v859_v32  ;;  %v889_v34 = vadd.f32 %v888_v30, %v844_v51 }
 0x498   :  { %v861_v35 = vrot.slane %v860_v33, 4 }
 0x49a   :  { %v862_v17 = vmin.f32 %v860_v33, %v861_v35 }
 0x49c   :  { %v863_v36 = vrot.slane %v862_v17, 2 }
 0x49e   :  { %v864_v37 = vmin.f32 %v862_v17, %v863_v36 }
 0x4a0   :  { %v865_v38 = vrot.slane %v864_v37, 1 }
 0x4a2   :  { %v866_v39 = vmin.f32 %v864_v37, %v865_v38 }
 0x4a4   :  { %vm867_vm13 = vcmp.eq.f32.partialorder %v4750_v18, %v866_v39  ;;  %vm868_vm14 = vcmp.eq.f32.partialorder %v4754_v23, %v866_v39  ;;  %vm873_vm0 = vcmp.eq.f32.partialorder %v4768_v53, %v866_v39 }
 0x4a5   :  { %v3618_v41 = vsel %vm867_vm13, 1.0, %v4477_v11  ;;  %v3619_v42 = vsel %vm868_vm14, 1.0, %v4477_v11  ;;  %v3620_v43 = vsel %vm873_vm0, 1.0, %v4477_v11  ;;  %vm966_vm0 = vcmp.eq.f32.partialorder %v4750_v18, 4.0 }
 0x4a6   :  { %v879_v44 = vmul.f32 %v3621_v28, %v3620_v43  ;;  %vm890_vm1 = vcmp.gt.f32.partialorder %v3618_v41, 0.5  ;;  %vm891_vm2 = vcmp.gt.f32.partialorder %v3619_v42, 0.5  ;;  %v885_v45 = vmul.f32 %v3622_v40, %v3619_v42 }
 0x4a7   :  { %v892_v46 = vsel %vm890_vm1, -1e+30, %v847_v10  ;;  %v893_v47 = vsel %vm891_vm2, -1e+30, %v848_v12  ;;  %v884_v48 = vmul.f32 %v3622_v40, %v3618_v41  ;;  %v3631_v17 = vsel %vm966_vm0, 1.0, %v4477_v11 }
 0x4a8   :  { %v880_v49 = vadd.f32 %v879_v44, %v835_v16  ;;  %v894_v50 = vmax.f32 %v892_v46, %v893_v47  ;;  %v887_v51 = vadd.f32 %v885_v45, %v842_v20  ;;  %vm1016_vm0 = vcmp.eq.f32.partialorder %v4768_v53, 5.0 }
 0x4a9   :  { %v886_v52 = vadd.f32 %v884_v48, %v841_v21  ;;  %v3632_v48 = vsel %vm971_vm4, 1.0, %v4477_v11 }
 0x4aa   :  { %v895_v54 = vrot.slane %v894_v50, 4 }
 0x4ac   :  { %v896_v55 = vmax.f32 %v894_v50, %v895_v54 }
 0x4ae   :  { %v897_v56 = vrot.slane %v896_v55, 2 }
 0x4b0   :  { %v898_v57 = vmax.f32 %v896_v55, %v897_v56 }
 0x4b2   :  { %v899_v58 = vrot.slane %v898_v57, 1 }
 0x4b4   :  { %v900_v62 = vmax.f32 %v898_v57, %v899_v58 }
 0x4b6   :  { %vm901_vm5 = vcmp.ge.f32.partialorder %v892_v46, %v900_v62  ;;  %vm902_vm6 = vcmp.ge.f32.partialorder %v893_v47, %v900_v62  ;;  %v933_v1 = vmul.f32 %v3626_v59, %v900_v62 }
 0x4b7   :  { %v903_v2 = vsel %vm901_vm5, %v4750_v18, 16.0  ;;  %v904_v13 = vsel %vm902_vm6, %v4754_v23, 16.0 }
 0x4b8   :  { %v905_v3 = vmin.f32 %v903_v2, %v904_v13  ;;  %v934_v4 = vadd.f32 %v933_v1, %v889_v34 }
 0x4ba   :  { %v906_v5 = vrot.slane %v905_v3, 4 }
 0x4bc   :  { %v907_v7 = vmin.f32 %v905_v3, %v906_v5 }
 0x4be   :  { %v908_v8 = vrot.slane %v907_v7, 2 }
 0x4c0   :  { %v909_v10 = vmin.f32 %v907_v7, %v908_v8 }
 0x4c2   :  { %v910_v12 = vrot.slane %v909_v10, 1 }
 0x4c4   :  { %v911_v14 = vmin.f32 %v909_v10, %v910_v12 }
 0x4c6   :  { %vm912_vm8 = vcmp.eq.f32.partialorder %v4750_v18, %v911_v14  ;;  %vm913_vm10 = vcmp.eq.f32.partialorder %v4754_v23, %v911_v14  ;;  %vm918_vm11 = vcmp.eq.f32.partialorder %v4768_v53, %v911_v14 }
 0x4c7   :  { %v3623_v16 = vsel %vm912_vm8, 1.0, %v4477_v11  ;;  %v3624_v19 = vsel %vm913_vm10, 1.0, %v4477_v11  ;;  %v3625_v20 = vsel %vm918_vm11, 1.0, %v4477_v11  ;;  %vm1011_vm11 = vcmp.eq.f32.partialorder %v4750_v18, 5.0 }
 0x4c8   :  { %v924_v21 = vmul.f32 %v3626_v59, %v3625_v20  ;;  %vm935_vm13 = vcmp.gt.f32.partialorder %v3623_v16, 0.5  ;;  %vm936_vm14 = vcmp.gt.f32.partialorder %v3624_v19, 0.5  ;;  %v930_v22 = vmul.f32 %v3627_v15, %v3624_v19 }
 0x4c9   :  { %v937_v24 = vsel %vm935_vm13, -1e+30, %v892_v46  ;;  %v938_v25 = vsel %vm936_vm14, -1e+30, %v893_v47  ;;  %v929_v26 = vmul.f32 %v3627_v15, %v3623_v16  ;;  %v3636_v7 = vsel %vm1011_vm11, 1.0, %v4477_v11 }
 0x4ca   :  { %v925_v27 = vadd.f32 %v924_v21, %v880_v49  ;;  %v939_v28 = vmax.f32 %v937_v24, %v938_v25  ;;  %v932_v29 = vadd.f32 %v930_v22, %v887_v51 }
 0x4cb   :  { %v931_v30 = vadd.f32 %v929_v26, %v886_v52  ;;  %v3637_v26 = vsel %vm1016_vm0, 1.0, %v4477_v11 }
 0x4cc   :  { %v940_v31 = vrot.slane %v939_v28, 4 }
 0x4ce   :  { %v941_v32 = vmax.f32 %v939_v28, %v940_v31 }
 0x4d0   :  { %v942_v33 = vrot.slane %v941_v32, 2 }
 0x4d2   :  { %v943_v34 = vmax.f32 %v941_v32, %v942_v33 }
 0x4d4   :  { %v944_v35 = vrot.slane %v943_v34, 1 }
 0x4d6   :  { %v945_v36 = vmax.f32 %v943_v34, %v944_v35 }
 0x4d8   :  { %vm946_vm1 = vcmp.ge.f32.partialorder %v937_v24, %v945_v36  ;;  %vm947_vm2 = vcmp.ge.f32.partialorder %v938_v25, %v945_v36  ;;  %v978_v37 = vmul.f32 %v3631_v17, %v945_v36 }
 0x4d9   :  { %v948_v38 = vsel %vm946_vm1, %v4750_v18, 16.0  ;;  %v949_v39 = vsel %vm947_vm2, %v4754_v23, 16.0 }
 0x4da   :  { %v950_v40 = vmin.f32 %v948_v38, %v949_v39  ;;  %v979_v41 = vadd.f32 %v978_v37, %v934_v4 }
 0x4dc   :  { %v951_v42 = vrot.slane %v950_v40, 4 }
 0x4de   :  { %v952_v43 = vmin.f32 %v950_v40, %v951_v42 }
 0x4e0   :  { %v953_v44 = vrot.slane %v952_v43, 2 }
 0x4e2   :  { %v954_v45 = vmin.f32 %v952_v43, %v953_v44 }
 0x4e4   :  { %v955_v46 = vrot.slane %v954_v45, 1 }
 0x4e6   :  { %v956_v47 = vmin.f32 %v954_v45, %v955_v46 }
 0x4e8   :  { %vm957_vm5 = vcmp.eq.f32.partialorder %v4750_v18, %v956_v47  ;;  %vm958_vm6 = vcmp.eq.f32.partialorder %v4754_v23, %v956_v47  ;;  %vm963_vm7 = vcmp.eq.f32.partialorder %v4768_v53, %v956_v47 }
 0x4e9   :  { %v3628_v49 = vsel %vm957_vm5, 1.0, %v4477_v11  ;;  %v3629_v50 = vsel %vm958_vm6, 1.0, %v4477_v11  ;;  %v3630_v51 = vsel %vm963_vm7, 1.0, %v4477_v11  ;;  %vm1056_vm7 = vcmp.eq.f32.partialorder %v4750_v18, 6.0 }
 0x4ea   :  { %v969_v52 = vmul.f32 %v3631_v17, %v3630_v51  ;;  %vm980_vm8 = vcmp.gt.f32.partialorder %v3628_v49, 0.5  ;;  %vm981_vm10 = vcmp.gt.f32.partialorder %v3629_v50, 0.5  ;;  %v975_v54 = vmul.f32 %v3632_v48, %v3629_v50 }
 0x4eb   :  { %v982_v55 = vsel %vm980_vm8, -1e+30, %v937_v24  ;;  %v983_v56 = vsel %vm981_vm10, -1e+30, %v938_v25  ;;  %v974_v57 = vmul.f32 %v3632_v48, %v3628_v49  ;;  %v3641_v43 = vsel %vm1056_vm7, 1.0, %v4477_v11 }
 0x4ec   :  { %v970_v58 = vadd.f32 %v969_v52, %v925_v27  ;;  %v984_v59 = vmax.f32 %v982_v55, %v983_v56  ;;  %v977_v62 = vadd.f32 %v975_v54, %v932_v29  ;;  %vm1106_vm7 = vcmp.eq.f32.partialorder %v4768_v53, 7.0 }
 0x4ed   :  { %v976_v1 = vadd.f32 %v974_v57, %v931_v30 }
 0x4ee   :  { %v985_v2 = vrot.slane %v984_v59, 4 }
 0x4f0   :  { %v986_v13 = vmax.f32 %v984_v59, %v985_v2 }
 0x4f2   :  { %v987_v3 = vrot.slane %v986_v13, 2 }
 0x4f4   :  { %v988_v4 = vmax.f32 %v986_v13, %v987_v3 }
 0x4f6   :  { %v989_v5 = vrot.slane %v988_v4, 1 }
 0x4f8   :  { %v990_v8 = vmax.f32 %v988_v4, %v989_v5 }
 0x4fa   :  { %vm991_vm13 = vcmp.ge.f32.partialorder %v982_v55, %v990_v8  ;;  %vm992_vm14 = vcmp.ge.f32.partialorder %v983_v56, %v990_v8  ;;  %v1023_v10 = vmul.f32 %v3636_v7, %v990_v8 }
 0x4fb   :  { %v993_v12 = vsel %vm991_vm13, %v4750_v18, 16.0  ;;  %v994_v14 = vsel %vm992_vm14, %v4754_v23, 16.0 }
 0x4fc   :  { %v995_v15 = vmin.f32 %v993_v12, %v994_v14  ;;  %v1024_v16 = vadd.f32 %v1023_v10, %v979_v41 }
 0x4fe   :  { %v996_v19 = vrot.slane %v995_v15, 4 }
 0x500   :  { %v997_v20 = vmin.f32 %v995_v15, %v996_v19 }
 0x502   :  { %v998_v21 = vrot.slane %v997_v20, 2 }
 0x504   :  { %v999_v22 = vmin.f32 %v997_v20, %v998_v21 }
 0x506   :  { %v1000_v24 = vrot.slane %v999_v22, 1 }
 0x508   :  { %v1001_v25 = vmin.f32 %v999_v22, %v1000_v24 }
 0x50a   :  { %vm1002_vm1 = vcmp.eq.f32.partialorder %v4750_v18, %v1001_v25  ;;  %vm1003_vm2 = vcmp.eq.f32.partialorder %v4754_v23, %v1001_v25  ;;  %vm1008_vm4 = vcmp.eq.f32.partialorder %v4768_v53, %v1001_v25 }
 0x50b   :  { %v3633_v27 = vsel %vm1002_vm1, 1.0, %v4477_v11  ;;  %v3634_v28 = vsel %vm1003_vm2, 1.0, %v4477_v11  ;;  %v3635_v29 = vsel %vm1008_vm4, 1.0, %v4477_v11  ;;  %vm1101_vm1 = vcmp.eq.f32.partialorder %v4750_v18, 7.0 }
 0x50c   :  { %v1014_v30 = vmul.f32 %v3636_v7, %v3635_v29  ;;  %vm1025_vm5 = vcmp.gt.f32.partialorder %v3633_v27, 0.5  ;;  %vm1026_vm6 = vcmp.gt.f32.partialorder %v3634_v28, 0.5  ;;  %v1020_v31 = vmul.f32 %v3637_v26, %v3634_v28 }
 0x50d   :  { %v1027_v32 = vsel %vm1025_vm5, -1e+30, %v982_v55  ;;  %v1028_v33 = vsel %vm1026_vm6, -1e+30, %v983_v56  ;;  %v1019_v34 = vmul.f32 %v3637_v26, %v3633_v27  ;;  %v3646_v7 = vsel %vm1101_vm1, 1.0, %v4477_v11 }
 0x50e   :  { %v4830_v35 = vadd.f32 %v1014_v30, %v970_v58  ;;  %v1029_v17 = vmax.f32 %v1027_v32, %v1028_v33  ;;  %v4832_v36 = vadd.f32 %v1020_v31, %v977_v62  ;;  %vm1061_vm6 = vcmp.eq.f32.partialorder %v4768_v53, 6.0 }
 0x50f   :  { %v4834_v37 = vadd.f32 %v1019_v34, %v976_v1  ;;  %v3642_v28 = vsel %vm1061_vm6, 1.0, %v4477_v11 }
 0x510   :  { %v1030_v38 = vrot.slane %v1029_v17, 4 }
 0x512   :  { %v1031_v39 = vmax.f32 %v1029_v17, %v1030_v38 }
 0x514   :  { %v1032_v40 = vrot.slane %v1031_v39, 2 }
 0x516   :  { %v1033_v41 = vmax.f32 %v1031_v39, %v1032_v40 }
 0x518   :  { %v1034_v42 = vrot.slane %v1033_v41, 1 }
 0x51a   :  { %v1035_v44 = vmax.f32 %v1033_v41, %v1034_v42 }
 0x51c   :  { %vm1036_vm8 = vcmp.ge.f32.partialorder %v1027_v32, %v1035_v44  ;;  %vm1037_vm10 = vcmp.ge.f32.partialorder %v1028_v33, %v1035_v44  ;;  %v1068_v45 = vmul.f32 %v3641_v43, %v1035_v44  ;;  %v1262_v44 = vld [vmem:[%s5102_s12 + $0x8] sm:$0xff] }
 0x51d   :  { %v1038_v46 = vsel %vm1036_vm8, %v4750_v18, 16.0  ;;  %v1039_v47 = vsel %vm1037_vm10, %v4754_v23, 16.0 }
 0x51e   :  { %v1040_v48 = vmin.f32 %v1038_v46, %v1039_v47  ;;  %v1069_v49 = vadd.f32 %v1068_v45, %v1024_v16  ;;  %v1261_v45 = vld [vmem:[%s5102_s12] sm:$0xff]  ;;  %v3650_v46 = vld [vmem:[#allocation16] ss:$0 sm:$0xff] }
 0x520   :  { %v1041_v50 = vrot.slane %v1040_v48, 4 }
 0x522   :  { %v1042_v51 = vmin.f32 %v1040_v48, %v1041_v50 }
 0x524   :  { %v1043_v52 = vrot.slane %v1042_v51, 2 }
 0x526   :  { %v1044_v54 = vmin.f32 %v1042_v51, %v1043_v52 }
 0x528   :  { %v1045_v55 = vrot.slane %v1044_v54, 1 }
 0x52a   :  { %v1046_v56 = vmin.f32 %v1044_v54, %v1045_v55 }
 0x52c   :  { %vm1047_vm11 = vcmp.eq.f32.partialorder %v4750_v18, %v1046_v56  ;;  %vm1048_vm13 = vcmp.eq.f32.partialorder %v4754_v23, %v1046_v56  ;;  %vm1053_vm5 = vcmp.eq.f32.partialorder %v4768_v53, %v1046_v56 }
 0x52d   :  { %v3638_v57 = vsel %vm1047_vm11, 1.0, %v4477_v11  ;;  %v3639_v58 = vsel %vm1048_vm13, 1.0, %v4477_v11  ;;  %v3640_v24 = vsel %vm1053_vm5, 1.0, %v4477_v11 }
 0x52e   :  { %vm1070_vm14 = vcmp.gt.f32.partialorder %v3638_v57, 0.5  ;;  %vm1071_vm0 = vcmp.gt.f32.partialorder %v3639_v58, 0.5  ;;  %v1059_v26 = vmul.f32 %v3641_v43, %v3640_v24  ;;  %v1065_v34 = vmul.f32 %v3642_v28, %v3639_v58 }
 0x52f   :  { %v1072_v59 = vsel %vm1070_vm14, -1e+30, %v1027_v32  ;;  %v1073_v62 = vsel %vm1071_vm0, -1e+30, %v1028_v33  ;;  %v3647_v33 = vsel %vm1106_vm7, 1.0, %v4477_v11  ;;  %v1064_v39 = vmul.f32 %v3642_v28, %v3638_v57 }
 0x530   :  { %v1074_v1 = vmax.f32 %v1072_v59, %v1073_v62  ;;  %v1060_v30 = vadd.f32 %v1059_v26, %v4830_v35 }
 0x531   :  { %v1066_v40 = vadd.f32 %v1064_v39, %v4834_v37 }
 0x532   :  { %v1075_v2 = vrot.slane %v1074_v1, 4 }
 0x534   :  { %v1076_v13 = vmax.f32 %v1074_v1, %v1075_v2 }
 0x536   :  { %v1077_v3 = vrot.slane %v1076_v13, 2 }
 0x538   :  { %v1078_v4 = vmax.f32 %v1076_v13, %v1077_v3 }
 0x53a   :  { %v1079_v5 = vrot.slane %v1078_v4, 1 }
 0x53c   :  { %v1080_v8 = vmax.f32 %v1078_v4, %v1079_v5 }
 0x53e   :  { %vm1081_vm2 = vcmp.ge.f32.partialorder %v1072_v59, %v1080_v8  ;;  %vm1082_vm4 = vcmp.ge.f32.partialorder %v1073_v62, %v1080_v8  ;;  %v1113_v10 = vmul.f32 %v3646_v7, %v1080_v8 }
 0x53f   :  { %v1083_v12 = vsel %vm1081_vm2, %v4750_v18, 16.0  ;;  %v1084_v14 = vsel %vm1082_vm4, %v4754_v23, 16.0 }
 0x540   :  { %v1085_v15 = vmin.f32 %v1083_v12, %v1084_v14  ;;  %v1114_v16 = vadd.f32 %v1113_v10, %v1069_v49 }
 0x542   :  { %v1086_v19 = vrot.slane %v1085_v15, 4 }
 0x544   :  { %v1087_v20 = vmin.f32 %v1085_v15, %v1086_v19 }
 0x546   :  { %v1088_v21 = vrot.slane %v1087_v20, 2 }
 0x548   :  { %v1089_v22 = vmin.f32 %v1087_v20, %v1088_v21 }
 0x54a   :  { %v1090_v25 = vrot.slane %v1089_v22, 1 }
 0x54c   :  { %v1091_v27 = vmin.f32 %v1089_v22, %v1090_v25  ;;  %v3653_v22 = vld [vmem:[#allocation18] ss:$0 sm:$0xff] }
 0x54e   :  { %vm1098_vm8 = vcmp.eq.f32.partialorder %v4768_v53, %v1091_v27  ;;  %vm1093_vm10 = vcmp.eq.f32.partialorder %v4754_v23, %v1091_v27  ;;  %vm1092_vm11 = vcmp.eq.f32.partialorder %v4750_v18, %v1091_v27  ;;  %v1067_v18 = vadd.f32 %v1065_v34, %v4832_v36 }
 0x54f   :  { %v3645_v29 = vsel %vm1098_vm8, 1.0, %v4477_v11  ;;  %v3644_v32 = vsel %vm1093_vm10, 1.0, %v4477_v11  ;;  %v3643_v38 = vsel %vm1092_vm11, 1.0, %v4477_v11 }
 0x550   :  { %v1104_v31 = vmul.f32 %v3646_v7, %v3645_v29  ;;  %v1110_v53 = vmul.f32 %v3647_v33, %v3644_v32  ;;  %v1109_v23 = vmul.f32 %v3647_v33, %v3643_v38  ;;  %v1726_v32 = vld [vmem:[%s5108_s18 + $0x18] sm:$0xff] }
 0x552   :  { %v1105_v17 = vadd.f32 %v1104_v31, %v1060_v30  ;;  %v1112_v35 = vadd.f32 %v1110_v53, %v1067_v18  ;;  %v1111_v41 = vadd.f32 %v1109_v23, %v1066_v40  ;;  %v1647_v30 = vld [vmem:[#allocation21 + $0x8] sm:$0xff]  ;;  %v1646_v31 = vld [vmem:[#allocation21] sm:$0xff] }
 0x554   :  { %3869 = vmatmul.mubr.msk.f32.vlgmr.msra.gmra.mxu1 %vm506_vm12, %v1105_v17 }
 0x555   :  { %3872 = vmatpush3.msra.mxu1 %v4714_v61  ;;  %3875 = vmatprep.mubr.msk.f32.mxu1 %vm4479_vm15, %v4477_v11  ;;  %v1259_v61 = vld [vmem:[#allocation15] sm:$0xff] }
 0x556   :  { %3873 = vmatprep.subr.mxu1 %v4477_v11  ;;  %3879 = vmatpush3.msra.mxu0 %v1259_v61 }
 0x557   :  { %3874 = vmatpush3.msra.mxu1 %v4717_v63  ;;  %3890 = vmatprep.subr.mxu0 %v4477_v11 }
 0x558   :  { %3883 = vmatprep.subr.mxu1 %v4477_v11  ;;  %3876 = vmatmul.mubr.msk.f32.vlgmr.msra.gmra.mxu1 %vm506_vm12, %v1105_v17 }
 0x559   :  { %3884 = vmatpush3.msra.mxu1 %v1112_v35  ;;  %3887 = vmatprep.mubr.msk.f32.mxu1 %vm4479_vm15, %v4477_v11 }
 0x55a   :  { %3885 = vmatprep.subr.mxu1 %v4477_v11 }
 0x55b   :  { %3886 = vmatpush3.msra.mxu1 %v1111_v41 }
 0x55c   :  { %3897 = vmatprep.subr.mxu1 %v4477_v11 }
 0x614   :  { %v1184_v63 = vpop.f32.mrf.mxu1 }
 0x615   :  { %v1188_v36 = vmul.f32 %v1184_v63, %v1114_v16 }
 0x616   :  { %v3870_v37 = vpop.f32.mrf.mxu1 }
 0x617   :  { %3881 = vmatmul.mubr.msk.f32.vlgmr.msra.gmra.mxu0 %vm466_vm9, %v1188_v36 }
 0x618   :  { %v1255_v42 = vpop.f32.mrf.mxu1  ;;  %3894 = vmatprep.mubr.msk.f32.mxu0 %vm4479_vm15, %v4477_v11  ;;  %3891 = vmatpush3.msra.mxu0 %v1262_v44 }
 0x619   :  { %3888 = vmatmul.mubr.msk.f32.vlgmr.msra.gmra.mxu1 %vm506_vm12, %v1255_v42  ;;  %3892 = vmatprep.subr.mxu0 %v4477_v11 }
 0x61a   :  { %v3877_v43 = vpop.f32.mrf.mxu1  ;;  %3899 = vmatprep.mubr.msk.f32.mxu1 %vm4479_vm15, %v4477_v11  ;;  %3893 = vmatpush3.msra.mxu0 %v1261_v45 }
 0x61b   :  { %3902 = vmatprep.subr.mxu0 %v4477_v11 }
 0x6d7   :  { %v1341_v47 = vpop.f32.mrf.mxu0 }
 0x6d8   :  { %v1342_v48 = vadd.f32 %v3650_v46, %v1341_v47 }
 0x6d9   :  { %v3882_v49 = vpop.f32.mrf.mxu0  ;;  %v1437_v50 = vpop.f32.mrf.mxu1 }
 0x6da   :  { %v1345_v51 = vmax.f32 %v1342_v48, 0.0  ;;  %v1438_v52 = vadd.f32 %v1437_v50, %v4712_v60  ;;  %v3656_v50 = vld [vmem:[%s5104_s14] ss:$0 sm:$0xff] }
 0x6db   :  { %v3889_v54 = vpop.f32.mrf.mxu1 }
 0x6dc   :  { %v1346_v55 = vsel %vm506_vm12, %v1345_v51, 0.0  ;;  %v1441_v56 = vsel %vm466_vm9, %v1438_v52, 0.0 }
 0x6dd   :  { %v1347_v57 = vrot.slane %v1346_v55, 4  ;;  %1442 = vadd.xlane.f32.xlu1 %v1441_v56 }
 0x6df   :  { %v1348_v58 = vadd.f32 %v1347_v57, %v1346_v55 }
 0x6e1   :  { %v1349_v59 = vrot.slane %v1348_v58, 2 }
 0x6e3   :  { %v1350_v62 = vadd.f32 %v1349_v59, %v1348_v58 }
 0x6e5   :  { %v1351_v1 = vrot.slane %v1350_v62, 1 }
 0x6e7   :  { %v1352_v2 = vadd.f32 %v1351_v1, %v1350_v62 }
 0x6e9   :  { %v1354_v13 = vmul.f32 0.125, %v1352_v2 }
 0x6eb   :  { %v1355_v3 = vsub.f32 %v1345_v51, %v1354_v13 }
 0x6ed   :  { %v1356_v4 = vmul.f32 %v1355_v3, %v1355_v3 }
 0x6ef   :  { %v1357_v5 = vsel %vm506_vm12, %v1356_v4, 0.0  ;;  %v1725_v4 = vld [vmem:[%s5108_s18 + $0x10] sm:$0xff] }
 0x6f0   :  { %v1358_v7 = vrot.slane %v1357_v5, 4 }
 0x6f2   :  { %v1359_v8 = vadd.f32 %v1358_v7, %v1357_v5  ;;  %v1724_v5 = vld [vmem:[%s5108_s18 + $0x8] sm:$0xff]  ;;  %v1723_v7 = vld [vmem:[%s5108_s18] sm:$0xff] }
 0x6f4   :  { %v1360_v60 = vrot.slane %v1359_v8, 2 }
 0x6f6   :  { %v1361_v10 = vadd.f32 %v1360_v60, %v1359_v8  ;;  %v1648_v8 = vld [vmem:[#allocation22] sm:$0x1] }
 0x6f8   :  { %v1362_v12 = vrot.slane %v1361_v10, 1 }
 0x6fa   :  { %v1363_v14 = vadd.f32 %v1362_v12, %v1361_v10 }
 0x6fc   :  { %v1364_v15 = vmul.f32 0.125, %v1363_v14 }
 0x6fe   :  { %v1365_v16 = vadd.f32 1e-05, %v1364_v15 }
 0x700   :  { %3957 = vrsqrt.f32 %v1365_v16 }
 0x70d   :  { %v3958_v19 = vpop.eup %3957 }
 0x70e   :  { %v1367_v20 = vmul.f32 %v3958_v19, %v1355_v3 }
 0x710   :  { %3895 = vmatmul.mubr.msk.f32.vlgmr.msra.gmra.mxu0 %vm506_vm12, %v1367_v20 }
 0x711   :  { %3906 = vmatprep.mubr.msk.f32.mxu0 %vm4479_vm15, %v4477_v11  ;;  %3903 = vmatpush3.msra.mxu0 %v1647_v30 }
 0x712   :  { %3904 = vmatprep.subr.mxu0 %v4477_v11 }
 0x713   :  { %3905 = vmatpush3.msra.mxu0 %v1646_v31 }
 0x766   :  { %v1443_v21 = vpop.xlane.xlu1 %1442 }
 0x767   :  { %3959 = vrsqrt.f32 %v1443_v21  ;;  %vm1444_vm13 = vcmp.gt.f32.partialorder %v1443_v21, 0.0 }
 0x774   :  { %v3960_v24 = vpop.eup %3959 }
 0x775   :  { %v1446_v27 = vsel %vm1444_vm13, %v3960_v24, 0.0 }
 0x7d0   :  { %v1522_v25 = vpop.f32.mrf.mxu0 }
 0x7d1   :  { %v1523_v26 = vadd.f32 %v3653_v22, %v1522_v25 }
 0x7d2   :  { %v3896_v28 = vpop.f32.mrf.mxu0 }
 0x7d3   :  { %v1526_v29 = vmul.f32 %v1523_v26, %v1446_v27 }
 0x7d5   :  { %3898 = vmatpush3.msra.mxu1 %v1526_v29 }
 0x7d6   :  { %3900 = vmatmul.mubr.msk.f32.vlgmr.msra.gmra.mxu1 %vm466_vm9, %v1438_v52  ;;  %3909 = vmatprep.subr.mxu1 %v4477_v11  ;;  %v3657_v52 = vld [vmem:[#allocation19] ss:$0 sm:$0xff]  ;;  %vm1803_vm9 = vcmask 253952  }
 0x7d7   :  { %3917 = vmatprep.mubr.msk.f32.mxu1 %vm4479_vm15, %v4477_v11  ;;  %3910 = vmatpush3.msra.mxu1 %v1726_v32 }
 0x7d8   :  { %3911 = vmatprep.subr.mxu1 %v4477_v11 }
 0x7d9   :  { %3912 = vmatpush3.msra.mxu1 %v1725_v4 }
 0x7da   :  { %3913 = vmatprep.subr.mxu1 %v4477_v11 }
 0x7db   :  { %3914 = vmatpush3.msra.mxu1 %v1724_v5 }
 0x7dc   :  { %3915 = vmatprep.subr.mxu1 %v4477_v11 }
 0x7dd   :  { %3916 = vmatpush3.msra.mxu1 %v1723_v7 }
 0x896   :  { %v1596_v33 = vpop.f32.mrf.mxu1 }
 0x897   :  { %v1600_v34 = vmul.f32 %v1596_v33, %v1446_v27 }
 0x898   :  { %v3901_v17 = vpop.f32.mrf.mxu1 }
 0x899   :  { %v1601_v38 = vsel %vm506_vm12, %v1600_v34, 0.0 }
 0x89a   :  { %v1602_v53 = vrot.slane %v1601_v38, 4 }
 0x89c   :  { %v1603_v39 = vadd.f32 %v1602_v53, %v1601_v38 }
 0x89e   :  { %v1604_v18 = vrot.slane %v1603_v39, 2 }
 0x8a0   :  { %v1605_v23 = vadd.f32 %v1604_v18, %v1603_v39 }
 0x8a2   :  { %v1606_v35 = vrot.slane %v1605_v23, 1 }
 0x8a4   :  { %v1607_v40 = vadd.f32 %v1606_v35, %v1605_v23 }
 0x8a6   :  { %v1608_v41 = vmul.f32 0.125, %v1607_v40 }
 0x8a8   :  { %v1609_v61 = vsub.f32 %v1600_v34, %v1608_v41 }
 0x8aa   :  { %v1610_v63 = vmul.f32 %v1609_v61, %v1609_v61 }
 0x8ac   :  { %v1611_v36 = vsel %vm506_vm12, %v1610_v63, 0.0 }
 0x8ad   :  { %v1612_v37 = vrot.slane %v1611_v36, 4 }
 0x8af   :  { %v1613_v42 = vadd.f32 %v1612_v37, %v1611_v36 }
 0x8b1   :  { %v1614_v43 = vrot.slane %v1613_v42, 2 }
 0x8b3   :  { %v1615_v44 = vadd.f32 %v1614_v43, %v1613_v42 }
 0x8b5   :  { %v1616_v45 = vrot.slane %v1615_v44, 1 }
 0x8b7   :  { %v1617_v46 = vadd.f32 %v1616_v45, %v1615_v44 }
 0x8b9   :  { %v1618_v47 = vmul.f32 0.125, %v1617_v46 }
 0x8bb   :  { %v1619_v48 = vadd.f32 1e-05, %v1618_v47 }
 0x8bd   :  { %3961 = vrsqrt.f32 %v1619_v48 }
 0x8ca   :  { %v3962_v49 = vpop.eup %3961 }
 0x8cb   :  { %v1621_v51 = vmul.f32 %v3962_v49, %v1609_v61 }
 0x8cd   :  { %v1628_v54 = vmul.f32 %v3656_v50, %v1621_v51 }
 0x8cf   :  { %v1635_v55 = vadd.f32 %v3657_v52, %v1628_v54 }
 0x8d1   :  { %v1636_v56 = vmax.f32 %v1635_v55, 0.0 }
 0x8d3   :  { %1637 = vst.msk [vmem:[#allocation25] sm:$0xff] %vm506_vm12, %v1636_v56  ;;  %v1638_v57 = vsel %vm506_vm12, %v1636_v56, 0.0 }
 0x8d4   :  { %v1639_v58 = vrot.slane %v1638_v57, 4 }
 0x8d6   :  { %v1640_v59 = vadd.f32 %v1639_v58, %v1638_v57 }
 0x8d8   :  { %v1641_v62 = vrot.slane %v1640_v59, 2 }
 0x8da   :  { %v1642_v1 = vadd.f32 %v1641_v62, %v1640_v59 }
 0x8dc   :  { %v1643_v2 = vrot.slane %v1642_v1, 1 }
 0x8de   :  { %v1644_v13 = vadd.f32 %v1643_v2, %v1642_v1 }
 0x8e0   :  { %v1645_v3 = vmul.f32 0.125, %v1644_v13 }
 0x8e2   :  { %3907 = vmatmul.mubr.msk.f32.vlgmr.msra.gmra.mxu0 %vm506_vm12, %v1645_v3 }
 0x9a2   :  { %v1718_v60 = vpop.f32.mrf.mxu0 }
 0x9a3   :  { %v1719_v10 = vadd.f32 %v1718_v60, %v1648_v8 }
 0x9a4   :  { %v3908_v12 = vpop.f32.mrf.mxu0 }
 0x9a5   :  { %v1722_v14 = vmax.f32 %v1719_v10, 0.0 }
 0x9a7   :  { %3918 = vmatmul.mubr.msk.f32.vlgmr.msra.gmra.mxu1 %vm282_vm3, %v1722_v14  ;;  %1804 = vst.msk [vmem:[%s5114_s24] sm:$0x1] %vm1803_vm9, %v1722_v14 }
 0x9a8   :  { %4422 = shalt.err (!%p4419_p13)  }
 0x9a9   :  { %237 = dma.hbm_to_vmem [thread:$0]  %s5110_s20, 15360, %s235_s4, [#allocation3]  ;;  %v1727_v11 = vld [vmem:[#allocation24] sm:$0x1]  ;;  %vm1809_vm3 = vcmask 778496  }
 0x9aa   :  { %s4481_s28 = smov 32  }
 0xa67   :  { %v1797_v15 = vpop.f32.mrf.mxu1 }
 0xa68   :  { %v1798_v16 = vadd.f32 %v1797_v15, %v1727_v11 }
 0xa69   :  { %v3919_v19 = vpop.f32.mrf.mxu1 }
 0xa6a   :  { %v1801_v20 = vmax.f32 %v1798_v16, 0.0 }
 0xa6c   :  { %1806 = vrot.lane.b32.xlu0 %v1801_v20, %s4481_s28 }
 0xade   :  { %v1807_v21 = vpop.permute.xlu0 %1806 }
 0xadf   :  { %1810 = vst.msk [vmem:[%s5114_s24] sm:$0x1] %vm1809_vm3, %v1807_v21 }
 0xae0   :  { %4457 = dma.done.wait [#allocation3], 15360 }
 0xae1   :  { %4458 = vsyncadd [#allocation3], 4294951936  ;;  %2730 = vmatprep.mubr.bf16.mxu0 %v4476_v0  ;;  %2771 = vmatprep.mubr.bf16.mxu1 %v4476_v0  ;;  %v3963_v22 = vld [vmem:[#allocation2 + $0x2d4] ss:$120 sps:$4 sm:$0xff]   ;;  %v3967_v25 = vld [vmem:[#allocation2 + $0x2d0] ss:$120 sps:$4 sm:$0xff]   ;;  %v4937_v35 = vpack.c.bf16 %v1801_v20, %v1801_v20 }
 0xae2   :  { %v3965_v24 = vld [vmem:[#allocation2 + $0x2dc] ss:$120 sps:$4 sm:$0xff]   ;;  %2706 = vmatprep.subr.bf16.mxu0 %v3963_v22  ;;  %v3968_v26 = vld [vmem:[#allocation2 + $0x2d8] ss:$120 sps:$4 sm:$0xff]   ;;  %v3971_v28 = vld [vmem:[#allocation2 + $0x1ec] ss:$120 sps:$4 sm:$0xff]  }
 0xae3   :  { %2747 = vmatprep.subr.bf16.mxu1 %v3965_v24  ;;  %v3969_v27 = vld [vmem:[#allocation2 + $0x1e4] ss:$120 sps:$4 sm:$0xff]   ;;  %2707 = vmatpush1.bf16.msra.mxu0 %v3967_v25  ;;  %v3973_v29 = vld [vmem:[#allocation2 + $0x1e0] ss:$120 sps:$4 sm:$0xff]   ;;  %v3975_v31 = vld [vmem:[#allocation2 + $0xf4] ss:$120 sps:$4 sm:$0xff]  }
 0xae4   :  { %2748 = vmatpush1.bf16.msra.mxu1 %v3968_v26  ;;  %2708 = vmatprep.subr.bf16.mxu0 %v3969_v27  ;;  %v3974_v30 = vld [vmem:[#allocation2 + $0x1e8] ss:$120 sps:$4 sm:$0xff]   ;;  %v3977_v32 = vld [vmem:[#allocation2 + $0xfc] ss:$120 sps:$4 sm:$0xff]   ;;  %v3980_v34 = vld [vmem:[#allocation2 + $0xf8] ss:$120 sps:$4 sm:$0xff]  }
 0xae5   :  { %2749 = vmatprep.subr.bf16.mxu1 %v3971_v28  ;;  %v3979_v33 = vld [vmem:[#allocation2 + $0xf0] ss:$120 sps:$4 sm:$0xff]   ;;  %v3981_v17 = vld [vmem:[#allocation2 + $0x4] ss:$120 sps:$4 sm:$0xff]   ;;  %v3985_v53 = vld [vmem:[#allocation2] ss:$120 sps:$4 sm:$0xff]  }
 0xae6   :  { %v3983_v38 = vld [vmem:[#allocation2 + $0xc] ss:$120 sps:$4 sm:$0xff]   ;;  %v3986_v39 = vld [vmem:[#allocation2 + $0x8] ss:$120 sps:$4 sm:$0xff]   ;;  %vm2694_vm12 = vcmask 523264   ;;  %s4482_s20 = smov [#allocation25]  }
 0xae7   :  { %2709 = vmatpush1.bf16.msra.mxu0 %v3973_v29  ;;  %v3989_v18 = vld [vmem:[#allocation2 + $0x2e4] ss:$120 sps:$4 sm:$0xff]   ;;  %v3987_v40 = vld [vmem:[#allocation2 + $0x2e0] ss:$120 sps:$4 sm:$0xff]   ;;  %v3995_v61 = vld [vmem:[#allocation2 + $0x1f4] ss:$120 sps:$4 sm:$0xff]  }
 0xae8   :  { %2750 = vmatpush1.bf16.msra.mxu1 %v3974_v30  ;;  %2710 = vmatprep.subr.bf16.mxu0 %v3975_v31  ;;  %v3992_v23 = vld [vmem:[#allocation2 + $0x2ec] ss:$120 sps:$4 sm:$0xff]   ;;  %v3990_v41 = vld [vmem:[#allocation2 + $0x2e8] ss:$120 sps:$4 sm:$0xff]   ;;  %v3998_v63 = vld [vmem:[#allocation2 + $0x1fc] ss:$120 sps:$4 sm:$0xff]  }
 0xae9   :  { %2751 = vmatprep.subr.bf16.mxu1 %v3977_v32  ;;  %v3993_v36 = vld [vmem:[#allocation2 + $0x1f0] ss:$120 sps:$4 sm:$0xff]   ;;  %v4001_v42 = vld [vmem:[#allocation2 + $0x104] ss:$120 sps:$4 sm:$0xff]   ;;  %v3999_v44 = vld [vmem:[#allocation2 + $0x100] ss:$120 sps:$4 sm:$0xff]  }
 0xaea   :  { %v3996_v37 = vld [vmem:[#allocation2 + $0x1f8] ss:$120 sps:$4 sm:$0xff]   ;;  %v4004_v43 = vld [vmem:[#allocation2 + $0x10c] ss:$120 sps:$4 sm:$0xff]   ;;  %v4002_v45 = vld [vmem:[#allocation2 + $0x108] ss:$120 sps:$4 sm:$0xff]  }
 0xaeb   :  { %2711 = vmatpush1.bf16.msra.mxu0 %v3979_v33  ;;  %v4007_v46 = vld [vmem:[#allocation2 + $0x14] ss:$120 sps:$4 sm:$0xff]   ;;  %v4005_v48 = vld [vmem:[#allocation2 + $0x10] ss:$120 sps:$4 sm:$0xff]   ;;  %v4019_v55 = vld [vmem:[#allocation2 + $0x204] ss:$120 sps:$4 sm:$0xff]  }
 0xaec   :  { %2752 = vmatpush1.bf16.msra.mxu1 %v3980_v34  ;;  %2712 = vmatprep.subr.bf16.mxu0 %v3981_v17  ;;  %v4010_v47 = vld [vmem:[#allocation2 + $0x1c] ss:$120 sps:$4 sm:$0xff]   ;;  %v4008_v49 = vld [vmem:[#allocation2 + $0x18] ss:$120 sps:$4 sm:$0xff]   ;;  %v4022_v56 = vld [vmem:[#allocation2 + $0x20c] ss:$120 sps:$4 sm:$0xff]  }
 0xaed   :  { %2753 = vmatprep.subr.bf16.mxu1 %v3983_v38  ;;  %v4013_v50 = vld [vmem:[#allocation2 + $0x2f4] ss:$120 sps:$4 sm:$0xff]   ;;  %v4011_v52 = vld [vmem:[#allocation2 + $0x2f0] ss:$120 sps:$4 sm:$0xff]   ;;  %v4017_v57 = vld [vmem:[#allocation2 + $0x200] ss:$120 sps:$4 sm:$0xff]  }
 0xaee   :  { %v4016_v51 = vld [vmem:[#allocation2 + $0x2fc] ss:$120 sps:$4 sm:$0xff]   ;;  %v4014_v54 = vld [vmem:[#allocation2 + $0x2f8] ss:$120 sps:$4 sm:$0xff]   ;;  %v4020_v58 = vld [vmem:[#allocation2 + $0x208] ss:$120 sps:$4 sm:$0xff]  }
 0xaef   :  { %2713 = vmatpush1.bf16.msra.mxu0 %v3985_v53  ;;  %v4025_v59 = vld [vmem:[#allocation2 + $0x114] ss:$120 sps:$4 sm:$0xff]   ;;  %v4023_v1 = vld [vmem:[#allocation2 + $0x110] ss:$120 sps:$4 sm:$0xff]   ;;  %v4031_v13 = vld [vmem:[#allocation2 + $0x24] ss:$120 sps:$4 sm:$0xff]  }
 0xaf0   :  { %2754 = vmatpush1.bf16.msra.mxu1 %v3986_v39  ;;  %2788 = vmatprep.subr.bf16.mxu0 %v3989_v18  ;;  %v4028_v62 = vld [vmem:[#allocation2 + $0x11c] ss:$120 sps:$4 sm:$0xff]   ;;  %v4026_v2 = vld [vmem:[#allocation2 + $0x118] ss:$120 sps:$4 sm:$0xff]   ;;  %v4034_v3 = vld [vmem:[#allocation2 + $0x2c] ss:$120 sps:$4 sm:$0xff]  }
 0xaf1   :  { %2829 = vmatprep.subr.bf16.mxu1 %v3992_v23  ;;  %v4029_v4 = vld [vmem:[#allocation2 + $0x20] ss:$120 sps:$4 sm:$0xff]   ;;  %v4037_v7 = vld [vmem:[#allocation2 + $0x304] ss:$120 sps:$4 sm:$0xff]   ;;  %v4043_v12 = vld [vmem:[#allocation2 + $0x214] ss:$120 sps:$4 sm:$0xff]  }
 0xaf2   :  { %3780 = vmatmul.mubr.msk.bf16.vlgmr.msra.gmra.mxu0 %vm2694_vm12, %v4937_v35  ;;  %v4032_v5 = vld [vmem:[#allocation2 + $0x28] ss:$120 sps:$4 sm:$0xff]   ;;  %v4040_v8 = vld [vmem:[#allocation2 + $0x30c] ss:$120 sps:$4 sm:$0xff]   ;;  %v4046_v14 = vld [vmem:[#allocation2 + $0x21c] ss:$120 sps:$4 sm:$0xff]  }
 0xaf3   :  { %3781 = vmatmul.mubr.msk.bf16.vlgmr.msra.gmra.mxu1 %vm2694_vm12, %v4937_v35  ;;  %2789 = vmatpush1.bf16.msra.mxu0 %v3987_v40  ;;  %v4035_v60 = vld [vmem:[#allocation2 + $0x300] ss:$120 sps:$4 sm:$0xff]   ;;  %v4041_v11 = vld [vmem:[#allocation2 + $0x210] ss:$120 sps:$4 sm:$0xff]   ;;  %v4049_v16 = vld [vmem:[#allocation2 + $0x124] ss:$120 sps:$4 sm:$0xff]  }
 0xaf4   :  { %2830 = vmatpush1.bf16.msra.mxu1 %v3990_v41  ;;  %2790 = vmatprep.subr.bf16.mxu0 %v3995_v61  ;;  %v4038_v10 = vld [vmem:[#allocation2 + $0x308] ss:$120 sps:$4 sm:$0xff]   ;;  %v4044_v15 = vld [vmem:[#allocation2 + $0x218] ss:$120 sps:$4 sm:$0xff]   ;;  %v4052_v19 = vld [vmem:[#allocation2 + $0x12c] ss:$120 sps:$4 sm:$0xff]  }
 0xaf5   :  { %2831 = vmatprep.subr.bf16.mxu1 %v3998_v63  ;;  %2812 = vmatprep.mubr.bf16.mxu0 %v4476_v0  ;;  %v4047_v20 = vld [vmem:[#allocation2 + $0x120] ss:$120 sps:$4 sm:$0xff]   ;;  %v4055_v22 = vld [vmem:[#allocation2 + $0x34] ss:$120 sps:$4 sm:$0xff]   ;;  %v4053_v25 = vld [vmem:[#allocation2 + $0x30] ss:$120 sps:$4 sm:$0xff]  }
 0xaf6   :  { %2853 = vmatprep.mubr.bf16.mxu1 %v4476_v0  ;;  %v4050_v21 = vld [vmem:[#allocation2 + $0x128] ss:$120 sps:$4 sm:$0xff]   ;;  %v4058_v24 = vld [vmem:[#allocation2 + $0x3c] ss:$120 sps:$4 sm:$0xff]   ;;  %v4056_v26 = vld [vmem:[#allocation2 + $0x38] ss:$120 sps:$4 sm:$0xff]  }
 0xaf7   :  { %2791 = vmatpush1.bf16.msra.mxu0 %v3993_v36  ;;  %v4061_v27 = vld [vmem:[#allocation2 + $0x314] ss:$120 sps:$4 sm:$0xff]   ;;  %v4059_v29 = vld [vmem:[#allocation2 + $0x310] ss:$120 sps:$4 sm:$0xff]   ;;  %v4067_v31 = vld [vmem:[#allocation2 + $0x224] ss:$120 sps:$4 sm:$0xff]  }
 0xaf8   :  { %2832 = vmatpush1.bf16.msra.mxu1 %v3996_v37  ;;  %2792 = vmatprep.subr.bf16.mxu0 %v4001_v42  ;;  %v4064_v28 = vld [vmem:[#allocation2 + $0x31c] ss:$120 sps:$4 sm:$0xff]   ;;  %v4062_v30 = vld [vmem:[#allocation2 + $0x318] ss:$120 sps:$4 sm:$0xff]   ;;  %v4070_v32 = vld [vmem:[#allocation2 + $0x22c] ss:$120 sps:$4 sm:$0xff]  }
 0xaf9   :  { %2833 = vmatprep.subr.bf16.mxu1 %v4004_v43  ;;  %v4065_v33 = vld [vmem:[#allocation2 + $0x220] ss:$120 sps:$4 sm:$0xff]   ;;  %v4073_v17 = vld [vmem:[#allocation2 + $0x134] ss:$120 sps:$4 sm:$0xff]   ;;  %v4071_v53 = vld [vmem:[#allocation2 + $0x130] ss:$120 sps:$4 sm:$0xff]  }
 0xafa   :  { %v4068_v34 = vld [vmem:[#allocation2 + $0x228] ss:$120 sps:$4 sm:$0xff]   ;;  %v4076_v38 = vld [vmem:[#allocation2 + $0x13c] ss:$120 sps:$4 sm:$0xff]   ;;  %v4074_v39 = vld [vmem:[#allocation2 + $0x138] ss:$120 sps:$4 sm:$0xff]  }
 0xafb   :  { %2793 = vmatpush1.bf16.msra.mxu0 %v3999_v44  ;;  %v4079_v18 = vld [vmem:[#allocation2 + $0x44] ss:$120 sps:$4 sm:$0xff]   ;;  %v4077_v40 = vld [vmem:[#allocation2 + $0x40] ss:$120 sps:$4 sm:$0xff]   ;;  %v4091_v42 = vld [vmem:[#allocation2 + $0x234] ss:$120 sps:$4 sm:$0xff]  }
 0xafc   :  { %2834 = vmatpush1.bf16.msra.mxu1 %v4002_v45  ;;  %2794 = vmatprep.subr.bf16.mxu0 %v4007_v46  ;;  %v4082_v23 = vld [vmem:[#allocation2 + $0x4c] ss:$120 sps:$4 sm:$0xff]   ;;  %v4080_v41 = vld [vmem:[#allocation2 + $0x48] ss:$120 sps:$4 sm:$0xff]   ;;  %v4094_v43 = vld [vmem:[#allocation2 + $0x23c] ss:$120 sps:$4 sm:$0xff]  }
 0xafd   :  { %2835 = vmatprep.subr.bf16.mxu1 %v4010_v47  ;;  %v4085_v61 = vld [vmem:[#allocation2 + $0x324] ss:$120 sps:$4 sm:$0xff]   ;;  %v4083_v36 = vld [vmem:[#allocation2 + $0x320] ss:$120 sps:$4 sm:$0xff]   ;;  %v4089_v44 = vld [vmem:[#allocation2 + $0x230] ss:$120 sps:$4 sm:$0xff]  }
 0xafe   :  { %v4088_v63 = vld [vmem:[#allocation2 + $0x32c] ss:$120 sps:$4 sm:$0xff]   ;;  %v4086_v37 = vld [vmem:[#allocation2 + $0x328] ss:$120 sps:$4 sm:$0xff]   ;;  %v4092_v45 = vld [vmem:[#allocation2 + $0x238] ss:$120 sps:$4 sm:$0xff]  }
 0xaff   :  { %2795 = vmatpush1.bf16.msra.mxu0 %v4005_v48  ;;  %v4097_v46 = vld [vmem:[#allocation2 + $0x144] ss:$120 sps:$4 sm:$0xff]   ;;  %v4095_v48 = vld [vmem:[#allocation2 + $0x140] ss:$120 sps:$4 sm:$0xff]   ;;  %s3550_s24 = sshll.u32 %s4482_s20, 4  ;;  %s3551_s24 = int_to_ptr.vmem [resolvable:$true] %s3550_s24 }
 0xb00   :  { %2836 = vmatpush1.bf16.msra.mxu1 %v4008_v49  ;;  %2870 = vmatprep.subr.bf16.mxu0 %v4013_v50  ;;  %v4100_v47 = vld [vmem:[#allocation2 + $0x14c] ss:$120 sps:$4 sm:$0xff]   ;;  %v4098_v49 = vld [vmem:[#allocation2 + $0x148] ss:$120 sps:$4 sm:$0xff]   ;;  %s4423_s15 = scalar_lea.vmem %s3551_s24, 128  ;;  %p4428_p1 = scmp.lt.s32.totalorder %s3551_s24, %s3551_s24 }
 0xb01   :  { %2911 = vmatprep.subr.bf16.mxu1 %v4016_v51  ;;  %v4103_v50 = vld [vmem:[#allocation2 + $0x54] ss:$120 sps:$4 sm:$0xff]   ;;  %p4424_p0 = scmp.ne.s32.totalorder %s3551_s24, %s4423_s15  ;;  %p4429_p2 = scmp.lt.s32.totalorder %s4423_s15, %s4423_s15 }
 0xb02   :  { %3782 = vmatmul.mubr.msk.bf16.vlgmr.msra.gmra.mxu0 %vm2694_vm12, %v4937_v35  ;;  %v4106_v51 = vld [vmem:[#allocation2 + $0x5c] ss:$120 sps:$4 sm:$0xff]  }
 0xb03   :  { %3783 = vmatmul.mubr.msk.bf16.vlgmr.msra.gmra.mxu1 %vm2694_vm12, %v4937_v35  ;;  %2871 = vmatpush1.bf16.msra.mxu0 %v4011_v52  ;;  %v4101_v52 = vld [vmem:[#allocation2 + $0x50] ss:$120 sps:$4 sm:$0xff]   ;;  %p4430_p3 = por %p4429_p2, %p4428_p1 }
 0xb04   :  { %2912 = vmatpush1.bf16.msra.mxu1 %v4014_v54  ;;  %2872 = vmatprep.subr.bf16.mxu0 %v4019_v55  ;;  %v4104_v54 = vld [vmem:[#allocation2 + $0x58] ss:$120 sps:$4 sm:$0xff]   ;;  %v4109_v55 = vld [vmem:[#allocation2 + $0x334] ss:$120 sps:$4 sm:$0xff]  }
 0xb05   :  { %2913 = vmatprep.subr.bf16.mxu1 %v4022_v56  ;;  %2894 = vmatprep.mubr.bf16.mxu0 %v4476_v0  ;;  %v4112_v56 = vld [vmem:[#allocation2 + $0x33c] ss:$120 sps:$4 sm:$0xff]   ;;  %p4431_p4 = pnand %p4430_p3, %p4424_p0 }
 0xb06   :  { %2935 = vmatprep.mubr.bf16.mxu1 %v4476_v0 }
 0xb07   :  { %2873 = vmatpush1.bf16.msra.mxu0 %v4017_v57  ;;  %v4107_v57 = vld [vmem:[#allocation2 + $0x330] ss:$120 sps:$4 sm:$0xff]  }
 0xb08   :  { %2914 = vmatpush1.bf16.msra.mxu1 %v4020_v58  ;;  %2874 = vmatprep.subr.bf16.mxu0 %v4025_v59  ;;  %v4110_v58 = vld [vmem:[#allocation2 + $0x338] ss:$120 sps:$4 sm:$0xff]   ;;  %v4115_v59 = vld [vmem:[#allocation2 + $0x244] ss:$120 sps:$4 sm:$0xff]  }
 0xb09   :  { %2915 = vmatprep.subr.bf16.mxu1 %v4028_v62  ;;  %v4118_v62 = vld [vmem:[#allocation2 + $0x24c] ss:$120 sps:$4 sm:$0xff]  }
 0xb0b   :  { %2875 = vmatpush1.bf16.msra.mxu0 %v4023_v1  ;;  %v4113_v1 = vld [vmem:[#allocation2 + $0x240] ss:$120 sps:$4 sm:$0xff]  }
 0xb0c   :  { %2916 = vmatpush1.bf16.msra.mxu1 %v4026_v2  ;;  %2876 = vmatprep.subr.bf16.mxu0 %v4031_v13  ;;  %v4116_v2 = vld [vmem:[#allocation2 + $0x248] ss:$120 sps:$4 sm:$0xff]   ;;  %v4121_v13 = vld [vmem:[#allocation2 + $0x154] ss:$120 sps:$4 sm:$0xff]  }
 0xb0d   :  { %2917 = vmatprep.subr.bf16.mxu1 %v4034_v3  ;;  %v4124_v3 = vld [vmem:[#allocation2 + $0x15c] ss:$120 sps:$4 sm:$0xff]  }
 0xb0f   :  { %2877 = vmatpush1.bf16.msra.mxu0 %v4029_v4  ;;  %v4119_v4 = vld [vmem:[#allocation2 + $0x150] ss:$120 sps:$4 sm:$0xff]  }
 0xb10   :  { %2918 = vmatpush1.bf16.msra.mxu1 %v4032_v5  ;;  %2952 = vmatprep.subr.bf16.mxu0 %v4037_v7  ;;  %v4122_v5 = vld [vmem:[#allocation2 + $0x158] ss:$120 sps:$4 sm:$0xff]   ;;  %v4127_v7 = vld [vmem:[#allocation2 + $0x64] ss:$120 sps:$4 sm:$0xff]  }
 0xb11   :  { %2993 = vmatprep.subr.bf16.mxu1 %v4040_v8  ;;  %v4130_v8 = vld [vmem:[#allocation2 + $0x6c] ss:$120 sps:$4 sm:$0xff]  }
 0xb12   :  { %3784 = vmatmul.mubr.msk.bf16.vlgmr.msra.gmra.mxu0 %vm2694_vm12, %v4937_v35 }
 0xb13   :  { %3785 = vmatmul.mubr.msk.bf16.vlgmr.msra.gmra.mxu1 %vm2694_vm12, %v4937_v35  ;;  %2953 = vmatpush1.bf16.msra.mxu0 %v4035_v60  ;;  %v4125_v60 = vld [vmem:[#allocation2 + $0x60] ss:$120 sps:$4 sm:$0xff]  }
 0xb14   :  { %2994 = vmatpush1.bf16.msra.mxu1 %v4038_v10  ;;  %2954 = vmatprep.subr.bf16.mxu0 %v4043_v12  ;;  %v4128_v10 = vld [vmem:[#allocation2 + $0x68] ss:$120 sps:$4 sm:$0xff]   ;;  %v4133_v12 = vld [vmem:[#allocation2 + $0x344] ss:$120 sps:$4 sm:$0xff]  }
 0xb15   :  { %2995 = vmatprep.subr.bf16.mxu1 %v4046_v14  ;;  %2976 = vmatprep.mubr.bf16.mxu0 %v4476_v0  ;;  %v4131_v14 = vld [vmem:[#allocation2 + $0x340] ss:$120 sps:$4 sm:$0xff]  }
 0xb16   :  { %3017 = vmatprep.mubr.bf16.mxu1 %v4476_v0 }
 0xb17   :  { %2955 = vmatpush1.bf16.msra.mxu0 %v4041_v11  ;;  %v4136_v11 = vld [vmem:[#allocation2 + $0x254] ss:$120 sps:$4 sm:$0xff]  }
 0xb18   :  { %2996 = vmatpush1.bf16.msra.mxu1 %v4044_v15  ;;  %2956 = vmatprep.subr.bf16.mxu0 %v4049_v16  ;;  %v4134_v15 = vld [vmem:[#allocation2 + $0x250] ss:$120 sps:$4 sm:$0xff]   ;;  %v4139_v16 = vld [vmem:[#allocation2 + $0x164] ss:$120 sps:$4 sm:$0xff]  }
 0xb19   :  { %2997 = vmatprep.subr.bf16.mxu1 %v4052_v19  ;;  %v4137_v19 = vld [vmem:[#allocation2 + $0x160] ss:$120 sps:$4 sm:$0xff]  }
 0xb1b   :  { %2957 = vmatpush1.bf16.msra.mxu0 %v4047_v20  ;;  %v4142_v20 = vld [vmem:[#allocation2 + $0x74] ss:$120 sps:$4 sm:$0xff]  }
 0xb1c   :  { %2998 = vmatpush1.bf16.msra.mxu1 %v4050_v21  ;;  %2958 = vmatprep.subr.bf16.mxu0 %v4055_v22  ;;  %v4140_v21 = vld [vmem:[#allocation2 + $0x70] ss:$120 sps:$4 sm:$0xff]  }
 0xb1d   :  { %2999 = vmatprep.subr.bf16.mxu1 %v4058_v24 }
 0xb1f   :  { %2959 = vmatpush1.bf16.msra.mxu0 %v4053_v25 }
 0xb20   :  { %3000 = vmatpush1.bf16.msra.mxu1 %v4056_v26  ;;  %3034 = vmatprep.subr.bf16.mxu0 %v4061_v27 }
 0xb21   :  { %3075 = vmatprep.subr.bf16.mxu1 %v4064_v28 }
 0xb22   :  { %3786 = vmatmul.mubr.msk.bf16.vlgmr.msra.gmra.mxu0 %vm2694_vm12, %v4937_v35 }
 0xb23   :  { %3787 = vmatmul.mubr.msk.bf16.vlgmr.msra.gmra.mxu1 %vm2694_vm12, %v4937_v35  ;;  %3035 = vmatpush1.bf16.msra.mxu0 %v4059_v29 }
 0xb24   :  { %3076 = vmatpush1.bf16.msra.mxu1 %v4062_v30  ;;  %3036 = vmatprep.subr.bf16.mxu0 %v4067_v31 }
 0xb25   :  { %3077 = vmatprep.subr.bf16.mxu1 %v4070_v32  ;;  %3058 = vmatprep.mubr.bf16.mxu0 %v4476_v0 }
 0xb26   :  { %3099 = vmatprep.mubr.bf16.mxu1 %v4476_v0 }
 0xb27   :  { %3037 = vmatpush1.bf16.msra.mxu0 %v4065_v33 }
 0xb28   :  { %3078 = vmatpush1.bf16.msra.mxu1 %v4068_v34  ;;  %3038 = vmatprep.subr.bf16.mxu0 %v4073_v17 }
 0xb29   :  { %3079 = vmatprep.subr.bf16.mxu1 %v4076_v38 }
 0xb2b   :  { %3039 = vmatpush1.bf16.msra.mxu0 %v4071_v53 }
 0xb2c   :  { %3080 = vmatpush1.bf16.msra.mxu1 %v4074_v39  ;;  %3040 = vmatprep.subr.bf16.mxu0 %v4079_v18 }
 0xb2d   :  { %3081 = vmatprep.subr.bf16.mxu1 %v4082_v23 }
 0xb2f   :  { %3041 = vmatpush1.bf16.msra.mxu0 %v4077_v40 }
 0xb30   :  { %3082 = vmatpush1.bf16.msra.mxu1 %v4080_v41  ;;  %3116 = vmatprep.subr.bf16.mxu0 %v4085_v61 }
 0xb31   :  { %3157 = vmatprep.subr.bf16.mxu1 %v4088_v63 }
 0xb32   :  { %3788 = vmatmul.mubr.msk.bf16.vlgmr.msra.gmra.mxu0 %vm2694_vm12, %v4937_v35 }
 0xb33   :  { %3789 = vmatmul.mubr.msk.bf16.vlgmr.msra.gmra.mxu1 %vm2694_vm12, %v4937_v35  ;;  %3117 = vmatpush1.bf16.msra.mxu0 %v4083_v36 }
 0xb34   :  { %3158 = vmatpush1.bf16.msra.mxu1 %v4086_v37  ;;  %3118 = vmatprep.subr.bf16.mxu0 %v4091_v42 }
 0xb35   :  { %3159 = vmatprep.subr.bf16.mxu1 %v4094_v43  ;;  %3140 = vmatprep.mubr.bf16.mxu0 %v4476_v0 }
 0xb36   :  { %3181 = vmatprep.mubr.bf16.mxu1 %v4476_v0 }
 0xb37   :  { %3119 = vmatpush1.bf16.msra.mxu0 %v4089_v44 }
 0xb38   :  { %3160 = vmatpush1.bf16.msra.mxu1 %v4092_v45  ;;  %3120 = vmatprep.subr.bf16.mxu0 %v4097_v46 }
 0xb39   :  { %3161 = vmatprep.subr.bf16.mxu1 %v4100_v47 }
 0xb3b   :  { %3121 = vmatpush1.bf16.msra.mxu0 %v4095_v48 }
 0xb3c   :  { %3162 = vmatpush1.bf16.msra.mxu1 %v4098_v49  ;;  %3122 = vmatprep.subr.bf16.mxu0 %v4103_v50 }
 0xb3d   :  { %3163 = vmatprep.subr.bf16.mxu1 %v4106_v51 }
 0xb3f   :  { %3123 = vmatpush1.bf16.msra.mxu0 %v4101_v52 }
 0xb40   :  { %3164 = vmatpush1.bf16.msra.mxu1 %v4104_v54  ;;  %3198 = vmatprep.subr.bf16.mxu0 %v4109_v55 }
 0xb41   :  { %3239 = vmatprep.subr.bf16.mxu1 %v4112_v56 }
 0xb42   :  { %3790 = vmatmul.mubr.msk.bf16.vlgmr.msra.gmra.mxu0 %vm2694_vm12, %v4937_v35 }
 0xb43   :  { %3791 = vmatmul.mubr.msk.bf16.vlgmr.msra.gmra.mxu1 %vm2694_vm12, %v4937_v35  ;;  %3199 = vmatpush1.bf16.msra.mxu0 %v4107_v57 }
 0xb44   :  { %3240 = vmatpush1.bf16.msra.mxu1 %v4110_v58  ;;  %3200 = vmatprep.subr.bf16.mxu0 %v4115_v59 }
 0xb45   :  { %3241 = vmatprep.subr.bf16.mxu1 %v4118_v62  ;;  %3222 = vmatprep.mubr.bf16.mxu0 %v4476_v0 }
 0xb46   :  { %3263 = vmatprep.mubr.bf16.mxu1 %v4476_v0 }
 0xb47   :  { %3201 = vmatpush1.bf16.msra.mxu0 %v4113_v1 }
 0xb48   :  { %3242 = vmatpush1.bf16.msra.mxu1 %v4116_v2  ;;  %3202 = vmatprep.subr.bf16.mxu0 %v4121_v13 }
 0xb49   :  { %3243 = vmatprep.subr.bf16.mxu1 %v4124_v3 }
 0xb4b   :  { %3203 = vmatpush1.bf16.msra.mxu0 %v4119_v4 }
 0xb4c   :  { %3244 = vmatpush1.bf16.msra.mxu1 %v4122_v5  ;;  %3204 = vmatprep.subr.bf16.mxu0 %v4127_v7 }
 0xb4d   :  { %3245 = vmatprep.subr.bf16.mxu1 %v4130_v8 }
 0xb4f   :  { %3205 = vmatpush1.bf16.msra.mxu0 %v4125_v60 }
 0xb50   :  { %3246 = vmatpush1.bf16.msra.mxu1 %v4128_v10  ;;  %3280 = vmatprep.subr.bf16.mxu0 %v4133_v12 }
 0xb52   :  { %3792 = vmatmul.mubr.msk.bf16.vlgmr.msra.gmra.mxu0 %vm2694_vm12, %v4937_v35 }
 0xb53   :  { %3793 = vmatmul.mubr.msk.bf16.vlgmr.msra.gmra.mxu1 %vm2694_vm12, %v4937_v35  ;;  %3281 = vmatpush1.bf16.msra.mxu0 %v4131_v14 }
 0xb54   :  { %3304 = vmatprep.mubr.bf16.mxu0 %v4476_v0  ;;  %3282 = vmatprep.subr.bf16.mxu0 %v4136_v11 }
 0xb57   :  { %3283 = vmatpush1.bf16.msra.mxu0 %v4134_v15 }
 0xb58   :  { %3284 = vmatprep.subr.bf16.mxu0 %v4139_v16 }
 0xb5b   :  { %3285 = vmatpush1.bf16.msra.mxu0 %v4137_v19 }
 0xb5c   :  { %3286 = vmatprep.subr.bf16.mxu0 %v4142_v20 }
 0xb5f   :  { %3287 = vmatpush1.bf16.msra.mxu0 %v4140_v21 }
 0xb62   :  { %3794 = vmatmul.mubr.msk.bf16.vlgmr.msra.gmra.mxu0 %vm2694_vm12, %v4937_v35 }
 0xb63   :  { %4434 = shalt.err (!%p4431_p4)
}
 0xb64   :  { %3553 = dma.vmem_to_hbm [thread:$0]  %s3551_s24, 128, %s5113_s23, [#allocation6]   ;;  %v4986_v24 = vsub.s32 0, %v4674_v9  ;;  %v4989_v26 = vsub.s32 2, %v4674_v9  ;;  %v4992_v27 = vsub.s32 1, %v4674_v9  ;;  %v4995_v28 = vsub.s32 3, %v4674_v9 }
 0xb65   :  { %v1936_v29 = vld [vmem:[%s5111_s21] sm:$0xff]  ;;  %v4483_v32 = vmov 1966171168   ;;  %v5005_v23 = vsub.s32 4, %v4674_v9  ;;  %v5008_v40 = vsub.s32 6, %v4674_v9  ;;  %v5011_v61 = vsub.s32 5, %v4674_v9 }
 0xb66   :  { %v3348_v33 = vunpack.c.l.s4 %v4483_v32  ;;  %v2547_v38 = vrot.slane %v1936_v29, %v4986_v24  ;;  %v2555_v53 = vrot.slane %v1936_v29, %v4989_v26  ;;  %v2551_v39 = vrot.slane %v1936_v29, %v4992_v27  ;;  %v1937_v21 = vld [vmem:[%s5111_s21 + $0x8] sm:$0xff] }
 0xb67   :  { %v2559_v18 = vrot.slane %v1936_v29, %v4995_v28  ;;  %v5014_v63 = vsub.s32 7, %v4674_v9  ;;  %v2563_v44 = vrot.slane %v1936_v29, %v5005_v23  ;;  %v2571_v45 = vrot.slane %v1936_v29, %v5008_v40 }
 0xb68   :  { %v3349_v41 = vunpack.c.0.s8 %v3348_v33  ;;  %v2567_v49 = vrot.slane %v1936_v29, %v5011_v61  ;;  %v2591_v32 = vrot.slane %v1937_v21, %v4995_v28  ;;  %vm3539_vm15 = vcmp.lt.s32.totalorder %v238_v6, 768 }
 0xb69   :  { %v2575_v50 = vrot.slane %v1936_v29, %v5014_v63  ;;  %v2579_v29 = vrot.slane %v1937_v21, %v4986_v24 }
 0xb6a   :  { %v5019_v46 = vsub.s32 %v3349_v41, %v4674_v9 }
 0xbb2   :  { %v2732_v0 = vpop.f32.mrf.mxu0 }
 0xbb3   :  { %v2773_v22 = vpop.f32.mrf.mxu1  ;;  %v2733_v36 = vadd.f32 %v2732_v0, %v2547_v38 }
 0xbb4   :  { %v2734_v35 = vpop.f32.mrf.mxu0  ;;  %v2774_v37 = vadd.f32 %v2773_v22, %v2555_v53  ;;  %v2595_v53 = vrot.slane %v1937_v21, %v5005_v23 }
 0xbb5   :  { %v2775_v25 = vpop.f32.mrf.mxu1  ;;  %v2735_v42 = vadd.f32 %v2734_v35, %v2551_v39  ;;  %v2603_v39 = vrot.slane %v1937_v21, %v5008_v40 }
 0xbb6   :  { %v2736_v30 = vpop.f32.mrf.mxu0  ;;  %v2776_v43 = vadd.f32 %v2775_v25, %v2559_v18 }
 0xbb7   :  { %v2777_v31 = vpop.f32.mrf.mxu1  ;;  %v3343_v47 = vcombine.low %v2733_v36, %v2735_v42  ;;  %v2587_v30 = vrot.slane %v1937_v21, %v4989_v26  ;;  %v2599_v36 = vrot.slane %v1937_v21, %v5011_v61 }
 0xbb8   :  { %v2737_v34 = vpop.f32.mrf.mxu0  ;;  %v3344_v48 = vcombine.low %v2774_v37, %v2776_v43  ;;  %v2583_v31 = vrot.slane %v1937_v21, %v4992_v27  ;;  %v2607_v37 = vrot.slane %v1937_v21, %v5014_v63 }
 0xbb9   :  { %v2778_v17 = vpop.f32.mrf.mxu1  ;;  %v3353_v58 = vrot.slane %v3343_v47, %v5019_v46 }
 0xbba   :  { %v3360_v59 = vrot.slane %v3344_v48, %v5019_v46 }
 0xbbc   :  { %v3375_v7 = vcombine.low %v3353_v58, %v3360_v59 }
 0xbbe   :  { %v3383_v12 = vrot.slane %v3375_v7, %v5019_v46 }
 0xbc2   :  { %v2814_v51 = vpop.f32.mrf.mxu0 }
 0xbc3   :  { %v2855_v52 = vpop.f32.mrf.mxu1  ;;  %v2815_v54 = vadd.f32 %v2814_v51, %v2563_v44 }
 0xbc4   :  { %v2856_v55 = vadd.f32 %v2855_v52, %v2571_v45  ;;  %v2816_v56 = vpop.f32.mrf.mxu0 }
 0xbc5   :  { %v2857_v57 = vpop.f32.mrf.mxu1  ;;  %v2817_v62 = vadd.f32 %v2816_v56, %v2567_v49 }
 0xbc6   :  { %v2858_v1 = vadd.f32 %v2857_v57, %v2575_v50  ;;  %v2818_v9 = vpop.f32.mrf.mxu0 }
 0xbc7   :  { %v2859_v2 = vpop.f32.mrf.mxu1  ;;  %v3345_v13 = vcombine.low %v2815_v54, %v2817_v62 }
 0xbc8   :  { %v3346_v3 = vcombine.low %v2856_v55, %v2858_v1  ;;  %v2819_v4 = vpop.f32.mrf.mxu0 }
 0xbc9   :  { %v2860_v5 = vpop.f32.mrf.mxu1  ;;  %v3367_v8 = vrot.slane %v3345_v13, %v5019_v46 }
 0xbca   :  { %v3374_v60 = vrot.slane %v3346_v3, %v5019_v46 }
 0xbcc   :  { %v3376_v10 = vcombine.low %v3367_v8, %v3374_v60 }
 0xbce   :  { %v3390_v14 = vrot.slane %v3376_v10, %v5019_v46  ;;  %v1938_v10 = vld [vmem:[%s5111_s21 + $0x10] sm:$0xff] }
 0xbcf   :  { %v2623_v21 = vrot.slane %v1938_v10, %v4995_v28 }
 0xbd0   :  { %v3391_v11 = vcombine.low %v3383_v12, %v3390_v14 }
 0xbd2   :  { %3534 = vst [vmem:[%s5115_s25] sm:$0xff] %v3391_v11  ;;  %v2896_v15 = vpop.f32.mrf.mxu0 }
 0xbd3   :  { %v2937_v16 = vpop.f32.mrf.mxu1  ;;  %v2897_v33 = vadd.f32 %v2896_v15, %v2579_v29  ;;  %v2627_v29 = vrot.slane %v1938_v10, %v5005_v23 }
 0xbd4   :  { %v2898_v19 = vpop.f32.mrf.mxu0  ;;  %v2938_v34 = vadd.f32 %v2937_v16, %v2587_v30  ;;  %v2611_v16 = vrot.slane %v1938_v10, %v4986_v24  ;;  %v2635_v30 = vrot.slane %v1938_v10, %v5008_v40 }
 0xbd5   :  { %v2939_v20 = vpop.f32.mrf.mxu1  ;;  %v2899_v17 = vadd.f32 %v2898_v19, %v2583_v31  ;;  %v2619_v19 = vrot.slane %v1938_v10, %v4989_v26 }
 0xbd6   :  { %v2900_v0 = vpop.f32.mrf.mxu0  ;;  %v2940_v38 = vadd.f32 %v2939_v20, %v2591_v32  ;;  %v2615_v20 = vrot.slane %v1938_v10, %v4992_v27 }
 0xbd7   :  { %v2941_v22 = vpop.f32.mrf.mxu1  ;;  %v3392_v18 = vcombine.low %v2897_v33, %v2899_v17  ;;  %v2631_v33 = vrot.slane %v1938_v10, %v5011_v61 }
 0xbd8   :  { %v2901_v35 = vpop.f32.mrf.mxu0  ;;  %v3393_v41 = vcombine.low %v2938_v34, %v2940_v38  ;;  %v2639_v34 = vrot.slane %v1938_v10, %v5014_v63 }
 0xbd9   :  { %v2942_v25 = vpop.f32.mrf.mxu1  ;;  %v3402_v49 = vrot.slane %v3392_v18, %v5019_v46 }
 0xbda   :  { %v3409_v50 = vrot.slane %v3393_v41, %v5019_v46 }
 0xbdc   :  { %v3424_v62 = vcombine.low %v3402_v49, %v3409_v50 }
 0xbde   :  { %v3432_v13 = vrot.slane %v3424_v62, %v5019_v46 }
 0xbe2   :  { %v2978_v42 = vpop.f32.mrf.mxu0 }
 0xbe3   :  { %v3019_v43 = vpop.f32.mrf.mxu1  ;;  %v2979_v44 = vadd.f32 %v2978_v42, %v2595_v53 }
 0xbe4   :  { %v3020_v45 = vadd.f32 %v3019_v43, %v2603_v39  ;;  %v2980_v47 = vpop.f32.mrf.mxu0 }
 0xbe5   :  { %v3021_v48 = vpop.f32.mrf.mxu1  ;;  %v2981_v51 = vadd.f32 %v2980_v47, %v2599_v36 }
 0xbe6   :  { %v3022_v52 = vadd.f32 %v3021_v48, %v2607_v37  ;;  %v2982_v54 = vpop.f32.mrf.mxu0 }
 0xbe7   :  { %v3023_v55 = vpop.f32.mrf.mxu1  ;;  %v3394_v56 = vcombine.low %v2979_v44, %v2981_v51 }
 0xbe8   :  { %v3395_v57 = vcombine.low %v3020_v45, %v3022_v52  ;;  %v2983_v58 = vpop.f32.mrf.mxu0 }
 0xbe9   :  { %v3024_v59 = vpop.f32.mrf.mxu1  ;;  %v3416_v1 = vrot.slane %v3394_v56, %v5019_v46 }
 0xbea   :  { %v3423_v9 = vrot.slane %v3395_v57, %v5019_v46  ;;  %v1939_v59 = vld [vmem:[%s5111_s21 + $0x18] sm:$0x3f] }
 0xbec   :  { %v3425_v2 = vcombine.low %v3416_v1, %v3423_v9 }
 0xbee   :  { %v3439_v3 = vrot.slane %v3425_v2, %v5019_v46 }
 0xbf0   :  { %v3440_v4 = vcombine.low %v3432_v13, %v3439_v3  ;;  %v2643_v13 = vrot.slane %v1939_v59, %v4986_v24  ;;  %v2651_v3 = vrot.slane %v1939_v59, %v4989_v26 }
 0xbf2   :  { %3535 = vst [vmem:[%s5115_s25 + $0x8] sm:$0xff] %v3440_v4  ;;  %v3060_v5 = vpop.f32.mrf.mxu0  ;;  %v2647_v4 = vrot.slane %v1939_v59, %v4992_v27 }
 0xbf3   :  { %v3101_v7 = vpop.f32.mrf.mxu1  ;;  %v3061_v0 = vadd.f32 %v3060_v5, %v2611_v16  ;;  %v2655_v5 = vrot.slane %v1939_v59, %v4995_v28  ;;  %v2659_v16 = vrot.slane %v1939_v59, %v5005_v23 }
 0xbf4   :  { %v3062_v8 = vpop.f32.mrf.mxu0  ;;  %v3102_v22 = vadd.f32 %v3101_v7, %v2619_v19  ;;  %v2663_v19 = vrot.slane %v1939_v59, %v5011_v61 }
 0xbf5   :  { %v3103_v60 = vpop.f32.mrf.mxu1  ;;  %v3063_v35 = vadd.f32 %v3062_v8, %v2615_v20 }
 0xbf6   :  { %v3064_v12 = vpop.f32.mrf.mxu0  ;;  %v3104_v25 = vadd.f32 %v3103_v60, %v2623_v21 }
 0xbf7   :  { %v3105_v14 = vpop.f32.mrf.mxu1  ;;  %v3441_v31 = vcombine.low %v3061_v0, %v3063_v35 }
 0xbf8   :  { %v3065_v11 = vpop.f32.mrf.mxu0  ;;  %v3442_v32 = vcombine.low %v3102_v22, %v3104_v25 }
 0xbf9   :  { %v3106_v15 = vpop.f32.mrf.mxu1  ;;  %v3451_v36 = vrot.slane %v3441_v31, %v5019_v46 }
 0xbfa   :  { %v3458_v37 = vrot.slane %v3442_v32, %v5019_v46 }
 0xbfc   :  { %v3473_v50 = vcombine.low %v3451_v36, %v3458_v37 }
 0xbfe   :  { %v3481_v54 = vrot.slane %v3473_v50, %v5019_v46 }
 0xc02   :  { %v3142_v17 = vpop.f32.mrf.mxu0 }
 0xc03   :  { %v3183_v38 = vpop.f32.mrf.mxu1  ;;  %v3143_v53 = vadd.f32 %v3142_v17, %v2627_v29 }
 0xc04   :  { %v3184_v39 = vadd.f32 %v3183_v38, %v2635_v30  ;;  %v3144_v18 = vpop.f32.mrf.mxu0 }
 0xc05   :  { %v3185_v41 = vpop.f32.mrf.mxu1  ;;  %v3145_v42 = vadd.f32 %v3144_v18, %v2631_v33 }
 0xc06   :  { %v3186_v43 = vadd.f32 %v3185_v41, %v2639_v34  ;;  %v3146_v44 = vpop.f32.mrf.mxu0 }
 0xc07   :  { %v3187_v40 = vpop.f32.mrf.mxu1  ;;  %v3443_v45 = vcombine.low %v3143_v53, %v3145_v42 }
 0xc08   :  { %v3444_v47 = vcombine.low %v3184_v39, %v3186_v43  ;;  %v3147_v48 = vpop.f32.mrf.mxu0 }
 0xc09   :  { %v3188_v49 = vpop.f32.mrf.mxu1  ;;  %v3465_v63 = vrot.slane %v3443_v45, %v5019_v46 }
 0xc0a   :  { %v3472_v51 = vrot.slane %v3444_v47, %v5019_v46 }
 0xc0c   :  { %v3474_v52 = vcombine.low %v3465_v63, %v3472_v51 }
 0xc0e   :  { %v3488_v55 = vrot.slane %v3474_v52, %v5019_v46 }
 0xc10   :  { %v3489_v56 = vcombine.low %v3481_v54, %v3488_v55 }
 0xc12   :  { %3536 = vst [vmem:[%s5115_s25 + $0x10] sm:$0xff] %v3489_v56  ;;  %v3224_v57 = vpop.f32.mrf.mxu0 }
 0xc13   :  { %v3265_v58 = vpop.f32.mrf.mxu1  ;;  %v3225_v60 = vadd.f32 %v3224_v57, %v2643_v13 }
 0xc14   :  { %v3226_v62 = vpop.f32.mrf.mxu0  ;;  %v3266_v10 = vadd.f32 %v3265_v58, %v2651_v3 }
 0xc15   :  { %v3267_v1 = vpop.f32.mrf.mxu1  ;;  %v3227_v12 = vadd.f32 %v3226_v62, %v2647_v4 }
 0xc16   :  { %v3228_v9 = vpop.f32.mrf.mxu0  ;;  %v3268_v14 = vadd.f32 %v3267_v1, %v2655_v5 }
 0xc17   :  { %v3269_v2 = vpop.f32.mrf.mxu1  ;;  %v3490_v11 = vcombine.low %v3225_v60, %v3227_v12 }
 0xc18   :  { %v3229_v7 = vpop.f32.mrf.mxu0  ;;  %v3491_v15 = vcombine.low %v3266_v10, %v3268_v14 }
 0xc19   :  { %v3270_v8 = vpop.f32.mrf.mxu1  ;;  %v3499_v24 = vrot.slane %v3490_v11, %v5019_v46 }
 0xc1a   :  { %v3506_v26 = vrot.slane %v3491_v15, %v5019_v46 }
 0xc1c   :  { %v3514_v22 = vcombine.low %v3499_v24, %v3506_v26 }
 0xc1e   :  { %v3521_v30 = vrot.slane %v3514_v22, %v5019_v46 }
 0xc22   :  { %v3306_v20 = vpop.f32.mrf.mxu0 }
 0xc23   :  { %v3307_v21 = vadd.f32 %v3306_v20, %v2659_v16 }
 0xc24   :  { %v3308_v27 = vpop.f32.mrf.mxu0 }
 0xc25   :  { %v3309_v28 = vadd.f32 %v3308_v27, %v2663_v19 }
 0xc26   :  { %v3310_v0 = vpop.f32.mrf.mxu0 }
 0xc27   :  { %v3492_v35 = vcombine.low %v3307_v21, %v3309_v28 }
 0xc28   :  { %v3311_v25 = vpop.f32.mrf.mxu0 }
 0xc29   :  { %v3513_v29 = vrot.slane %v3492_v35, %v5019_v46 }
 0xc2b   :  { %v3528_v23 = vrot.slane %v3513_v29, %v5019_v46 }
 0xc2d   :  { %v3529_v61 = vcombine.low %v3521_v30, %v3528_v23 }
 0xc2f   :  { %3541 = vst.msk [vmem:[%s5115_s25 + $0x18] sm:$0x3f] %vm3539_vm15, %v3529_v61 }
 0xc30   :  { %4459 = dma.done.wait [#allocation6], 128  }
 0xc31   :  { %4460 = vsyncadd [#allocation6], 4294967168 }
 0xc32   :  { %3567 = vsyncpa [#allocation5], 1 }
 0xc33   :  { %3568 = vsyncpa [#allocation8], 1 }
 0xc34   :  { %3569 = vsyncpa [#allocation11], 1 }
 0xc35   :  { %3570 = vsyncpa [#allocation14], 1 }
 0xc36   :  { %3571 = vsyncpa [#allocation17], 1 }
 0xc37   :  { %3572 = vsyncpa [#allocation20], 1 }
 0xc38   :  { %3573 = vsyncpa [#allocation23], 1 }
 0xc39   :  { %3574 = vsyncpa [#allocation6], 1 }
 0xc3a   :  { %3575 = vsyncmov [#allocation3] }
 0xc3d   :  { %s3576_s27 = vpop.sfrf %3575 }
 0xc3e   :  { %p3795_p5 = scmp.ne.s32.totalorder %s3576_s27, 0 }
 0xc40   :  { %3580 = shalt.err (%p3795_p5)  }

</bundles_post_ra>
